<compile_context>
chip_gen: v7x
topology: tpu7x:2x2x1
jax: 0.10.0
libtpu: 0.0.40
codegen_flags: <defaults>
</compile_context>

<pallas_src>
import functools

import jax
import jax.numpy as jnp
from jax.experimental import pallas as pl
from jax.experimental.pallas import tpu as pltpu


# ----------------------------------------------------------------------------
# Small helpers (pure Python, static shapes)
# ----------------------------------------------------------------------------
def _round_up(x, m):
    return (x + m - 1) // m * m


def _vreg_bytes(shape, dtype):
    """Rough VMEM footprint of one block, padded to (8, 128) vreg tiling."""
    shape = tuple(int(d) for d in shape)
    if len(shape) < 2:
        shape = (1,) * (2 - len(shape)) + shape
    lead = 1
    for d in shape[:-2]:
        lead *= d
    return lead * _round_up(shape[-2], 8) * _round_up(shape[-1], 128) * jnp.dtype(dtype).itemsize


def _usable_vmem_bytes():
    """Generation-aware usable VMEM (leave ~25% headroom for compiler scratch)."""
    cap = 64 * 1024 * 1024  # conservative default (v7x per-TensorCore VMEM)
    try:
        info = pltpu.get_tpu_info()
        cap = int(getattr(info, "vmem_capacity_bytes", cap)) or cap
    except Exception:
        pass
    return (cap * 3) // 4   # ~48 MiB on v7x, ~96 MiB on v5e/v6e


def _step_bytes(th, W, C_in, C_out, compute_dtype):
    """Per-grid-step VMEM estimate: blocks (double-buffered) + scratch + live f32 values."""
    rows = th * W
    return (2 * _vreg_bytes((th + 2, W + 2, C_in), compute_dtype)      # x slab block
            + _vreg_bytes((rows, 9 * C_in), compute_dtype)             # im2col scratch
            + 3 * _vreg_bytes((rows, C_out), jnp.float32)              # y + live temporaries
            + 2 * _vreg_bytes((th // 2, W // 2, C_out), jnp.float32)   # pooled output block
            + 2 * _vreg_bytes((9 * C_in, C_out), compute_dtype)        # resident weights
            + 8 * _vreg_bytes((1, C_out), jnp.float32))                # bias / scale / shift


def _pick_row_slab(H, W, C_in, C_out, compute_dtype, budget_bytes):
    """Largest even divisor of H whose per-step footprint fits the budget."""
    best = 2
    for th in range(2, H + 1, 2):
        if H % th == 0 and _step_bytes(th, W, C_in, C_out, compute_dtype) <= budget_bytes:
            best = th
    # TODO(synk): if even th=2 exceeds the budget (huge W), also tile the W axis.
    return best


# ----------------------------------------------------------------------------
# In-kernel conv core: im2col scratch built once, one MXU pass, bias + ReLU.
# ----------------------------------------------------------------------------
def _build_im2col(x3, im_ref, *, th, W, C_in):
    """Pack the 9 conv taps of a (th+2, W+2, C_in) slab into im_ref (th*W, 9*C_in)."""
    rows = th * W
    for kx in range(3):                      # one sublane shift + merge per kx (3, not 9)
        col = x3[:, kx:kx + W, :].reshape((th + 2) * W, C_in)
        for ky in range(3):                  # sublane-aligned sub-slices (offset ky*W)
            k = ky * 3 + kx
            im_ref[:, k * C_in:(k + 1) * C_in] = col[ky * W:ky * W + rows]


def _conv_relu(x_ref, w_ref, b_ref, im_ref, *, th, W, C_in):
    _build_im2col(x_ref[0], im_ref, th=th, W=W, C_in=C_in)
    acc = jnp.dot(im_ref[...], w_ref[...], preferred_element_type=jnp.float32)
    return jnp.maximum(acc + b_ref[...], 0.0)            # (th*W, C_out) f32


# ----------------------------------------------------------------------------
# Pass 1: conv + bias + ReLU -> per-slab BN statistic partials (no y writeback).
# ----------------------------------------------------------------------------
def _conv_stats_kernel(x_ref, w_ref, b_ref, ssum_ref, ssq_ref, im_ref, *, th, W, C_in):
    y = _conv_relu(x_ref, w_ref, b_ref, im_ref, th=th, W=W, C_in=C_in)
    # Each grid step owns its own partial block -> the grid axis is safely "parallel".
    # TODO(synk): for very large N*H*W use shifted / Chan-style partials to avoid
    # cancellation in E[y^2] - E[y]^2.
    ssum_ref[...] = jnp.sum(y, axis=0, keepdims=True)[None]
    ssq_ref[...] = jnp.sum(y * y, axis=0, keepdims=True)[None]


# ----------------------------------------------------------------------------
# Pass 2: recompute conv + ReLU, apply BN affine, 2x2/stride-2 max pool.
# ----------------------------------------------------------------------------
def _conv_bn_pool_kernel(x_ref, w_ref, b_ref, scale_ref, shift_ref, o_ref, im_ref,
                         *, th, W, C_in):
    y = _conv_relu(x_ref, w_ref, b_ref, im_ref, th=th, W=W, C_in=C_in)
    y = y * scale_ref[...] + shift_ref[...]               # training-mode BN (precomputed affine)
    tho, Wo, C = th // 2, W // 2, y.shape[-1]
    v = y.reshape(tho, 2, Wo, 2, C)                       # rows (h, w) -> (i, dy, j, dx)
    v = jnp.maximum(v[:, 0], v[:, 1])                     # vertical max   (tho, Wo, 2, C)
    o = jnp.maximum(v[:, :, 0], v[:, :, 1])               # horizontal max (tho, Wo, C)
    o_ref[...] = o.astype(o_ref.dtype)


# ----------------------------------------------------------------------------
# Wrapper
# ----------------------------------------------------------------------------
def conv_unit_forward(x_nchw, w_oihw, bias, gamma, beta, *, eps=1e-5,
                      compute_dtype=jnp.bfloat16):
    N, C_in, H, W = x_nchw.shape
    C_out, C_in_w, KH, KW = w_oihw.shape
    assert (KH, KW) == (3, 3) and C_in_w == C_in
    assert H % 2 == 0 and W % 2 == 0
    Ho, Wo = H // 2, W // 2

    usable = _usable_vmem_bytes()
    th = _pick_row_slab(H, W, C_in, C_out, compute_dtype, usable // 2)
    n_slabs = H // th
    G = N * n_slabs
    vmem_limit = int(min(usable, max(32 * 1024 * 1024,
                                     _step_bytes(th, W, C_in, C_out, compute_dtype)
                                     + 16 * 1024 * 1024)))

    # --- glue: NCHW -> zero-padded NHWC row-slabs with 1-row halo (input-sized, cheap) ---
    # TODO(synk): keep the surrounding model NHWC end-to-end to drop the boundary transposes.
    x_pad = jnp.pad(jnp.transpose(x_nchw, (0, 2, 3, 1)),
                    ((0, 0), (1, 1), (1, 1), (0, 0))).astype(compute_dtype)
    if n_slabs == 1:
        x_slabs = x_pad
    else:
        x_slabs = jnp.stack([x_pad[:, s * th:s * th + th + 2] for s in range(n_slabs)],
                            axis=1).reshape(G, th + 2, W + 2, C_in)

    # weight (O, I, 3, 3) -> im2col-major (9*C_in, C_out); bias -> (1, C_out) f32.
    wmat = jnp.transpose(w_oihw, (2, 3, 1, 0)).reshape(9 * C_in, C_out).astype(compute_dtype)
    b2d = bias.reshape(1, C_out).astype(jnp.float32)

    x_spec = pl.BlockSpec((1, th + 2, W + 2, C_in), lambda g: (g, 0, 0, 0))
    w_spec = pl.BlockSpec((9 * C_in, C_out), lambda g: (0, 0))        # resident weights
    vec_spec = pl.BlockSpec((1, C_out), lambda g: (0, 0))             # resident per-channel vecs
    stat_spec = pl.BlockSpec((1, 1, C_out), lambda g: (g, 0, 0))
    im2col_scratch = pltpu.VMEM((th * W, 9 * C_in), compute_dtype)
    cparams = pltpu.CompilerParams(dimension_semantics=("parallel",),
                                   vmem_limit_bytes=vmem_limit)

    # --- pass 1: per-slab BN statistic partials ---
    ssum_p, ssq_p = pl.pallas_call(
        functools.partial(_conv_stats_kernel, th=th, W=W, C_in=C_in),
        out_shape=(jax.ShapeDtypeStruct((G, 1, C_out), jnp.float32),
                   jax.ShapeDtypeStruct((G, 1, C_out), jnp.float32)),
        grid_spec=pltpu.PrefetchScalarGridSpec(
            num_scalar_prefetch=0, grid=(G,),
            in_specs=[x_spec, w_spec, vec_spec],
            out_specs=[stat_spec, stat_spec],
            scratch_shapes=[im2col_scratch]),
        compiler_params=cparams,
    )(x_slabs, wmat, b2d)

    # --- glue: finalize batch statistics -> per-channel affine (O(C) work) ---
    count = float(N * H * W)
    mean = jnp.sum(ssum_p, axis=(0, 1)) / count
    var = jnp.sum(ssq_p, axis=(0, 1)) / count - mean * mean     # biased var (training mode)
    inv = jax.lax.rsqrt(var + eps)
    g32 = gamma.astype(jnp.float32)
    scale = (g32 * inv).reshape(1, C_out)
    shift = (beta.astype(jnp.float32) - mean * g32 * inv).reshape(1, C_out)

    # --- pass 2: recompute conv + ReLU, BN affine, 2x2 max pool ---
    out = pl.pallas_call(
        functools.partial(_conv_bn_pool_kernel, th=th, W=W, C_in=C_in),
        out_shape=jax.ShapeDtypeStruct((N * Ho, Wo, C_out), jnp.float32),
        grid_spec=pltpu.PrefetchScalarGridSpec(
            num_scalar_prefetch=0, grid=(G,),
            in_specs=[x_spec, w_spec, vec_spec, vec_spec, vec_spec],
            out_specs=pl.BlockSpec((th // 2, Wo, C_out), lambda g: (g, 0, 0)),
            scratch_shapes=[im2col_scratch]),
        compiler_params=cparams,
    )(x_slabs, wmat, b2d, scale, shift)

    # --- glue: back to NCHW to match PyTorch ---
    return jnp.transpose(out.reshape(N, Ho, Wo, C_out), (0, 3, 1, 2))


# ----------------------------------------------------------------------------
# Pure-JAX reference (matches PyTorch ConvUnit.forward in training mode)
# ----------------------------------------------------------------------------
def conv_unit_reference(x, w, b, gamma, beta, eps=1e-5):
    y = jax.lax.conv_general_dilated(
        x, w, window_strides=(1, 1), padding=((1, 1), (1, 1)),
        dimension_numbers=("NCHW", "OIHW", "NCHW"))
    y = y + b[None, :, None, None]
    y = jnp.maximum(y, 0.0)
    mean = jnp.mean(y, axis=(0, 2, 3), keepdims=True)
    var = jnp.var(y, axis=(0, 2, 3), keepdims=True)
    y = gamma[None, :, None, None] * (y - mean) / jnp.sqrt(var + eps) \
        + beta[None, :, None, None]
    return jax.lax.reduce_window(
        y, -jnp.inf, jax.lax.max, (1, 1, 2, 2), (1, 1, 2, 2), "VALID")


if __name__ == "__main__":
    N, C_in, C_out, H, W = 2, 4, 8, 16, 16

    key = jax.random.PRNGKey(0)
    key_x, key_w, key_b = jax.random.split(key, 3)
    x = jax.random.normal(key_x, (N, C_in, H, W), dtype=jnp.float32)
    w = 0.1 * jax.random.normal(key_w, (C_out, C_in, 3, 3), dtype=jnp.float32)
    b = 0.1 * jax.random.normal(key_b, (C_out,), dtype=jnp.float32)
    gamma = jnp.ones((C_out,), dtype=jnp.float32)   # BatchNorm2d default init
    beta = jnp.zeros((C_out,), dtype=jnp.float32)

    ref = conv_unit_reference(x, w, b, gamma, beta)

    # f32 MXU path: tight tolerance.
    fwd_f32 = jax.jit(functools.partial(conv_unit_forward, compute_dtype=jnp.float32))
    out = jax.block_until_ready(fwd_f32(x, w, b, gamma, beta))
    assert out.shape == (N, C_out, H // 2, W // 2), out.shape
    assert jnp.allclose(out, ref, atol=1e-4, rtol=1e-4), \
        float(jnp.max(jnp.abs(out - ref)))

    # bf16-input / f32-accumulate MXU path (v6e/v7x recommendation): looser tolerance.
    fwd_bf16 = jax.jit(functools.partial(conv_unit_forward, compute_dtype=jnp.bfloat16))
    out_bf16 = jax.block_until_ready(fwd_bf16(x, w, b, gamma, beta))
    assert out_bf16.shape == (N, C_out, H // 2, W // 2), out_bf16.shape
    assert jnp.allclose(out_bf16, ref, atol=5e-2, rtol=5e-2), \
        float(jnp.max(jnp.abs(out_bf16 - ref)))

    print("KERNEL_OK")
</pallas_src>

<mosaic_0001>
module attributes {stable_mosaic.version = 11 : i64} {
  func.func @_conv_stats_kernel(%arg0: i32, %arg1: memref<1x18x18x4xf32, #tpu.memory_space<vmem>>, %arg2: memref<36x8xf32, #tpu.memory_space<vmem>>, %arg3: memref<1x8xf32, #tpu.memory_space<vmem>>, %arg4: memref<1x1x8xf32, #tpu.memory_space<vmem>>, %arg5: memref<1x1x8xf32, #tpu.memory_space<vmem>>, %arg6: memref<256x36xf32, #tpu.memory_space<vmem>>) attributes {dimension_semantics = [#tpu.dimension_semantics<parallel>], iteration_bounds = array<i64: 2>, scalar_prefetch = 0 : i64, scratch_operands = 1 : i64, tpu.core_type = #tpu.core_type<tc>, window_params = [{transform_indices = @transform_0, window_bounds = array<i64: 1, 18, 18, 4>}, {pipeline_mode = #tpu.pipeline_mode<synchronous>, transform_indices = @transform_1, window_bounds = array<i64: 36, 8>}, {pipeline_mode = #tpu.pipeline_mode<synchronous>, transform_indices = @transform_2, window_bounds = array<i64: 1, 8>}, {transform_indices = @transform_3, window_bounds = array<i64: 1, 1, 8>}, {transform_indices = @transform_4, window_bounds = array<i64: 1, 1, 8>}]} {
    %c0 = arith.constant 0 : index
    %c0_0 = arith.constant 0 : index
    %c0_1 = arith.constant 0 : index
    %c0_2 = arith.constant 0 : index
    %0 = vector.load %arg1[%c0, %c0_0, %c0_1, %c0_2] : memref<1x18x18x4xf32, #tpu.memory_space<vmem>>, vector<1x18x18x4xf32>
    %1 = vector.shape_cast %0 : vector<1x18x18x4xf32> to vector<18x18x4xf32>
    %2 = vector.extract_strided_slice %1 {offsets = [0, 0, 0], sizes = [18, 16, 4], strides = [1, 1, 1]} : vector<18x18x4xf32> to vector<18x16x4xf32>
    %3 = vector.shape_cast %2 : vector<18x16x4xf32> to vector<288x4xf32>
    %4 = vector.extract_strided_slice %3 {offsets = [0, 0], sizes = [256, 4], strides = [1, 1]} : vector<288x4xf32> to vector<256x4xf32>
    %c0_3 = arith.constant 0 : index
    %c0_4 = arith.constant 0 : index
    %5 = vector.load %arg6[%c0_3, %c0_4] : memref<256x36xf32, #tpu.memory_space<vmem>>, vector<256x4xf32>
    tpu.vector_store %arg6[%c0_3, %c0_4], %4 {strides = array<i32>} : memref<256x36xf32, #tpu.memory_space<vmem>>, vector<256x4xf32>,
    %6 = vector.extract_strided_slice %3 {offsets = [16, 0], sizes = [256, 4], strides = [1, 1]} : vector<288x4xf32> to vector<256x4xf32>
    %c0_5 = arith.constant 0 : index
    %c12 = arith.constant 12 : index
    %7 = vector.load %arg6[%c0_5, %c12] : memref<256x36xf32, #tpu.memory_space<vmem>>, vector<256x4xf32>
    tpu.vector_store %arg6[%c0_5, %c12], %6 {strides = array<i32>} : memref<256x36xf32, #tpu.memory_space<vmem>>, vector<256x4xf32>,
    %8 = vector.extract_strided_slice %3 {offsets = [32, 0], sizes = [256, 4], strides = [1, 1]} : vector<288x4xf32> to vector<256x4xf32>
    %c0_6 = arith.constant 0 : index
    %c24 = arith.constant 24 : index
    %9 = vector.load %arg6[%c0_6, %c24] : memref<256x36xf32, #tpu.memory_space<vmem>>, vector<256x4xf32>
    tpu.vector_store %arg6[%c0_6, %c24], %8 {strides = array<i32>} : memref<256x36xf32, #tpu.memory_space<vmem>>, vector<256x4xf32>,
    %10 = vector.extract_strided_slice %1 {offsets = [0, 1, 0], sizes = [18, 16, 4], strides = [1, 1, 1]} : vector<18x18x4xf32> to vector<18x16x4xf32>
    %11 = vector.shape_cast %10 : vector<18x16x4xf32> to vector<288x4xf32>
    %12 = vector.extract_strided_slice %11 {offsets = [0, 0], sizes = [256, 4], strides = [1, 1]} : vector<288x4xf32> to vector<256x4xf32>
    %c0_7 = arith.constant 0 : index
    %c4 = arith.constant 4 : index
    %13 = vector.load %arg6[%c0_7, %c4] : memref<256x36xf32, #tpu.memory_space<vmem>>, vector<256x4xf32>
    tpu.vector_store %arg6[%c0_7, %c4], %12 {strides = array<i32>} : memref<256x36xf32, #tpu.memory_space<vmem>>, vector<256x4xf32>,
    %14 = vector.extract_strided_slice %11 {offsets = [16, 0], sizes = [256, 4], strides = [1, 1]} : vector<288x4xf32> to vector<256x4xf32>
    %c0_8 = arith.constant 0 : index
    %c16 = arith.constant 16 : index
    %15 = vector.load %arg6[%c0_8, %c16] : memref<256x36xf32, #tpu.memory_space<vmem>>, vector<256x4xf32>
    tpu.vector_store %arg6[%c0_8, %c16], %14 {strides = array<i32>} : memref<256x36xf32, #tpu.memory_space<vmem>>, vector<256x4xf32>,
    %16 = vector.extract_strided_slice %11 {offsets = [32, 0], sizes = [256, 4], strides = [1, 1]} : vector<288x4xf32> to vector<256x4xf32>
    %c0_9 = arith.constant 0 : index
    %c28 = arith.constant 28 : index
    %17 = vector.load %arg6[%c0_9, %c28] : memref<256x36xf32, #tpu.memory_space<vmem>>, vector<256x4xf32>
    tpu.vector_store %arg6[%c0_9, %c28], %16 {strides = array<i32>} : memref<256x36xf32, #tpu.memory_space<vmem>>, vector<256x4xf32>,
    %18 = vector.extract_strided_slice %1 {offsets = [0, 2, 0], sizes = [18, 16, 4], strides = [1, 1, 1]} : vector<18x18x4xf32> to vector<18x16x4xf32>
    %19 = vector.shape_cast %18 : vector<18x16x4xf32> to vector<288x4xf32>
    %20 = vector.extract_strided_slice %19 {offsets = [0, 0], sizes = [256, 4], strides = [1, 1]} : vector<288x4xf32> to vector<256x4xf32>
    %c0_10 = arith.constant 0 : index
    %c8 = arith.constant 8 : index
    %21 = vector.load %arg6[%c0_10, %c8] : memref<256x36xf32, #tpu.memory_space<vmem>>, vector<256x4xf32>
    tpu.vector_store %arg6[%c0_10, %c8], %20 {strides = array<i32>} : memref<256x36xf32, #tpu.memory_space<vmem>>, vector<256x4xf32>,
    %22 = vector.extract_strided_slice %19 {offsets = [16, 0], sizes = [256, 4], strides = [1, 1]} : vector<288x4xf32> to vector<256x4xf32>
    %c0_11 = arith.constant 0 : index
    %c20 = arith.constant 20 : index
    %23 = vector.load %arg6[%c0_11, %c20] : memref<256x36xf32, #tpu.memory_space<vmem>>, vector<256x4xf32>
    tpu.vector_store %arg6[%c0_11, %c20], %22 {strides = array<i32>} : memref<256x36xf32, #tpu.memory_space<vmem>>, vector<256x4xf32>,
    %24 = vector.extract_strided_slice %19 {offsets = [32, 0], sizes = [256, 4], strides = [1, 1]} : vector<288x4xf32> to vector<256x4xf32>
    %c0_12 = arith.constant 0 : index
    %c32 = arith.constant 32 : index
    %25 = vector.load %arg6[%c0_12, %c32] : memref<256x36xf32, #tpu.memory_space<vmem>>, vector<256x4xf32>
    tpu.vector_store %arg6[%c0_12, %c32], %24 {strides = array<i32>} : memref<256x36xf32, #tpu.memory_space<vmem>>, vector<256x4xf32>,
    %c0_13 = arith.constant 0 : index
    %c0_14 = arith.constant 0 : index
    %26 = vector.load %arg6[%c0_13, %c0_14] : memref<256x36xf32, #tpu.memory_space<vmem>>, vector<256x36xf32>
    %c0_15 = arith.constant 0 : index
    %c0_16 = arith.constant 0 : index
    %27 = vector.load %arg2[%c0_15, %c0_16] : memref<36x8xf32, #tpu.memory_space<vmem>>, vector<36x8xf32>
    %cst = arith.constant dense<0.000000e+00> : vector<256x8xf32>
    %28 = tpu.matmul %26, %27, %cst {dimension_numbers = #tpu.dot_dimension_numbers<[1], [0], [0], [1], [0, 0, 1, 1], [], []>} : vector<256x36xf32>, vector<36x8xf32>, vector<256x8xf32> -> vector<256x8xf32>
    %c0_17 = arith.constant 0 : index
    %c0_18 = arith.constant 0 : index
    %29 = vector.load %arg3[%c0_17, %c0_18] : memref<1x8xf32, #tpu.memory_space<vmem>>, vector<1x8xf32>
    %30 = vector.broadcast %29 : vector<1x8xf32> to vector<256x8xf32>
    %31 = arith.addf %28, %30 : vector<256x8xf32>
    %cst_19 = arith.constant 0.000000e+00 : f32
    %32 = vector.broadcast %cst_19 : f32 to vector<256x8xf32>
    %33 = arith.maximumf %31, %32 : vector<256x8xf32>
    %cst_20 = arith.constant dense<0.000000e+00> : vector<8xf32>
    %34 = vector.multi_reduction <add>, %33, %cst_20 [0] : vector<256x8xf32> to vector<8xf32>
    %35 = vector.shape_cast %34 : vector<8xf32> to vector<1x8xf32>
    %36 = vector.shape_cast %35 : vector<1x8xf32> to vector<1x1x8xf32>
    %c0_21 = arith.constant 0 : index
    %c0_22 = arith.constant 0 : index
    %c0_23 = arith.constant 0 : index
    %37 = vector.load %arg4[%c0_21, %c0_22, %c0_23] : memref<1x1x8xf32, #tpu.memory_space<vmem>>, vector<1x1x8xf32>
    tpu.vector_store %arg4[%c0_21, %c0_22, %c0_23], %36 {strides = array<i32>} : memref<1x1x8xf32, #tpu.memory_space<vmem>>, vector<1x1x8xf32>,
    %38 = arith.mulf %33, %33 : vector<256x8xf32>
    %cst_24 = arith.constant dense<0.000000e+00> : vector<8xf32>
    %39 = vector.multi_reduction <add>, %38, %cst_24 [0] : vector<256x8xf32> to vector<8xf32>
    %40 = vector.shape_cast %39 : vector<8xf32> to vector<1x8xf32>
    %41 = vector.shape_cast %40 : vector<1x8xf32> to vector<1x1x8xf32>
    %c0_25 = arith.constant 0 : index
    %c0_26 = arith.constant 0 : index
    %c0_27 = arith.constant 0 : index
    %42 = vector.load %arg5[%c0_25, %c0_26, %c0_27] : memref<1x1x8xf32, #tpu.memory_space<vmem>>, vector<1x1x8xf32>
    tpu.vector_store %arg5[%c0_25, %c0_26, %c0_27], %41 {strides = array<i32>} : memref<1x1x8xf32, #tpu.memory_space<vmem>>, vector<1x1x8xf32>,
    return
  }
  func.func @transform_0(%arg0: i32) -> (i32, i32, i32, i32) {
    %c0_i32 = arith.constant 0 : i32
    %c0_i32_0 = arith.constant 0 : i32
    %c0_i32_1 = arith.constant 0 : i32
    %c0_i32_2 = arith.constant 0 : i32
    return %arg0, %c0_i32, %c0_i32_0, %c0_i32_1 : i32, i32, i32, i32
  }
  func.func @transform_1(%arg0: i32) -> (i32, i32) {
    %c0_i32 = arith.constant 0 : i32
    %c0_i32_0 = arith.constant 0 : i32
    %c0_i32_1 = arith.constant 0 : i32
    return %c0_i32, %c0_i32_0 : i32, i32
  }
  func.func @transform_2(%arg0: i32) -> (i32, i32) {
    %c0_i32 = arith.constant 0 : i32
    %c0_i32_0 = arith.constant 0 : i32
    %c0_i32_1 = arith.constant 0 : i32
    return %c0_i32, %c0_i32_0 : i32, i32
  }
  func.func @transform_3(%arg0: i32) -> (i32, i32, i32) {
    %c0_i32 = arith.constant 0 : i32
    %c0_i32_0 = arith.constant 0 : i32
    %c0_i32_1 = arith.constant 0 : i32
    return %arg0, %c0_i32, %c0_i32_0 : i32, i32, i32
  }
  func.func @transform_4(%arg0: i32) -> (i32, i32, i32) {
    %c0_i32 = arith.constant 0 : i32
    %c0_i32_0 = arith.constant 0 : i32
    %c0_i32_1 = arith.constant 0 : i32
    return %arg0, %c0_i32, %c0_i32_0 : i32, i32, i32
  }
}

module attributes {stable_mosaic.version = 11 : i64} {
  func.func @_conv_bn_pool_kernel(%arg0: i32, %arg1: memref<1x18x18x4xf32, #tpu.memory_space<vmem>>, %arg2: memref<36x8xf32, #tpu.memory_space<vmem>>, %arg3: memref<1x8xf32, #tpu.memory_space<vmem>>, %arg4: memref<1x8xf32, #tpu.memory_space<vmem>>, %arg5: memref<1x8xf32, #tpu.memory_space<vmem>>, %arg6: memref<8x8x8xf32, #tpu.memory_space<vmem>>, %arg7: memref<256x36xf32, #tpu.memory_space<vmem>>) attributes {dimension_semantics = [#tpu.dimension_semantics<parallel>], iteration_bounds = array<i64: 2>, scalar_prefetch = 0 : i64, scratch_operands = 1 : i64, tpu.core_type = #tpu.core_type<tc>, window_params = [{transform_indices = @transform_0, window_bounds = array<i64: 1, 18, 18, 4>}, {pipeline_mode = #tpu.pipeline_mode<synchronous>, transform_indices = @transform_1, window_bounds = array<i64: 36, 8>}, {pipeline_mode = #tpu.pipeline_mode<synchronous>, transform_indices = @transform_2, window_bounds = array<i64: 1, 8>}, {pipeline_mode = #tpu.pipeline_mode<synchronous>, transform_indices = @transform_3, window_bounds = array<i64: 1, 8>}, {pipeline_mode = #tpu.pipeline_mode<synchronous>, transform_indices = @transform_4, window_bounds = array<i64: 1, 8>}, {transform_indices = @transform_5, window_bounds = array<i64: 8, 8, 8>}]} {
    %c0 = arith.constant 0 : index
    %c0_0 = arith.constant 0 : index
    %c0_1 = arith.constant 0 : index
    %c0_2 = arith.constant 0 : index
    %0 = vector.load %arg1[%c0, %c0_0, %c0_1, %c0_2] : memref<1x18x18x4xf32, #tpu.memory_space<vmem>>, vector<1x18x18x4xf32>
    %1 = vector.shape_cast %0 : vector<1x18x18x4xf32> to vector<18x18x4xf32>
    %2 = vector.extract_strided_slice %1 {offsets = [0, 0, 0], sizes = [18, 16, 4], strides = [1, 1, 1]} : vector<18x18x4xf32> to vector<18x16x4xf32>
    %3 = vector.shape_cast %2 : vector<18x16x4xf32> to vector<288x4xf32>
    %4 = vector.extract_strided_slice %3 {offsets = [0, 0], sizes = [256, 4], strides = [1, 1]} : vector<288x4xf32> to vector<256x4xf32>
    %c0_3 = arith.constant 0 : index
    %c0_4 = arith.constant 0 : index
    %5 = vector.load %arg7[%c0_3, %c0_4] : memref<256x36xf32, #tpu.memory_space<vmem>>, vector<256x4xf32>
    tpu.vector_store %arg7[%c0_3, %c0_4], %4 {strides = array<i32>} : memref<256x36xf32, #tpu.memory_space<vmem>>, vector<256x4xf32>,
    %6 = vector.extract_strided_slice %3 {offsets = [16, 0], sizes = [256, 4], strides = [1, 1]} : vector<288x4xf32> to vector<256x4xf32>
    %c0_5 = arith.constant 0 : index
    %c12 = arith.constant 12 : index
    %7 = vector.load %arg7[%c0_5, %c12] : memref<256x36xf32, #tpu.memory_space<vmem>>, vector<256x4xf32>
    tpu.vector_store %arg7[%c0_5, %c12], %6 {strides = array<i32>} : memref<256x36xf32, #tpu.memory_space<vmem>>, vector<256x4xf32>,
    %8 = vector.extract_strided_slice %3 {offsets = [32, 0], sizes = [256, 4], strides = [1, 1]} : vector<288x4xf32> to vector<256x4xf32>
    %c0_6 = arith.constant 0 : index
    %c24 = arith.constant 24 : index
    %9 = vector.load %arg7[%c0_6, %c24] : memref<256x36xf32, #tpu.memory_space<vmem>>, vector<256x4xf32>
    tpu.vector_store %arg7[%c0_6, %c24], %8 {strides = array<i32>} : memref<256x36xf32, #tpu.memory_space<vmem>>, vector<256x4xf32>,
    %10 = vector.extract_strided_slice %1 {offsets = [0, 1, 0], sizes = [18, 16, 4], strides = [1, 1, 1]} : vector<18x18x4xf32> to vector<18x16x4xf32>
    %11 = vector.shape_cast %10 : vector<18x16x4xf32> to vector<288x4xf32>
    %12 = vector.extract_strided_slice %11 {offsets = [0, 0], sizes = [256, 4], strides = [1, 1]} : vector<288x4xf32> to vector<256x4xf32>
    %c0_7 = arith.constant 0 : index
    %c4 = arith.constant 4 : index
    %13 = vector.load %arg7[%c0_7, %c4] : memref<256x36xf32, #tpu.memory_space<vmem>>, vector<256x4xf32>
    tpu.vector_store %arg7[%c0_7, %c4], %12 {strides = array<i32>} : memref<256x36xf32, #tpu.memory_space<vmem>>, vector<256x4xf32>,
    %14 = vector.extract_strided_slice %11 {offsets = [16, 0], sizes = [256, 4], strides = [1, 1]} : vector<288x4xf32> to vector<256x4xf32>
    %c0_8 = arith.constant 0 : index
    %c16 = arith.constant 16 : index
    %15 = vector.load %arg7[%c0_8, %c16] : memref<256x36xf32, #tpu.memory_space<vmem>>, vector<256x4xf32>
    tpu.vector_store %arg7[%c0_8, %c16], %14 {strides = array<i32>} : memref<256x36xf32, #tpu.memory_space<vmem>>, vector<256x4xf32>,
    %16 = vector.extract_strided_slice %11 {offsets = [32, 0], sizes = [256, 4], strides = [1, 1]} : vector<288x4xf32> to vector<256x4xf32>
    %c0_9 = arith.constant 0 : index
    %c28 = arith.constant 28 : index
    %17 = vector.load %arg7[%c0_9, %c28] : memref<256x36xf32, #tpu.memory_space<vmem>>, vector<256x4xf32>
    tpu.vector_store %arg7[%c0_9, %c28], %16 {strides = array<i32>} : memref<256x36xf32, #tpu.memory_space<vmem>>, vector<256x4xf32>,
    %18 = vector.extract_strided_slice %1 {offsets = [0, 2, 0], sizes = [18, 16, 4], strides = [1, 1, 1]} : vector<18x18x4xf32> to vector<18x16x4xf32>
    %19 = vector.shape_cast %18 : vector<18x16x4xf32> to vector<288x4xf32>
    %20 = vector.extract_strided_slice %19 {offsets = [0, 0], sizes = [256, 4], strides = [1, 1]} : vector<288x4xf32> to vector<256x4xf32>
    %c0_10 = arith.constant 0 : index
    %c8 = arith.constant 8 : index
    %21 = vector.load %arg7[%c0_10, %c8] : memref<256x36xf32, #tpu.memory_space<vmem>>, vector<256x4xf32>
    tpu.vector_store %arg7[%c0_10, %c8], %20 {strides = array<i32>} : memref<256x36xf32, #tpu.memory_space<vmem>>, vector<256x4xf32>,
    %22 = vector.extract_strided_slice %19 {offsets = [16, 0], sizes = [256, 4], strides = [1, 1]} : vector<288x4xf32> to vector<256x4xf32>
    %c0_11 = arith.constant 0 : index
    %c20 = arith.constant 20 : index
    %23 = vector.load %arg7[%c0_11, %c20] : memref<256x36xf32, #tpu.memory_space<vmem>>, vector<256x4xf32>
    tpu.vector_store %arg7[%c0_11, %c20], %22 {strides = array<i32>} : memref<256x36xf32, #tpu.memory_space<vmem>>, vector<256x4xf32>,
    %24 = vector.extract_strided_slice %19 {offsets = [32, 0], sizes = [256, 4], strides = [1, 1]} : vector<288x4xf32> to vector<256x4xf32>
    %c0_12 = arith.constant 0 : index
    %c32 = arith.constant 32 : index
    %25 = vector.load %arg7[%c0_12, %c32] : memref<256x36xf32, #tpu.memory_space<vmem>>, vector<256x4xf32>
    tpu.vector_store %arg7[%c0_12, %c32], %24 {strides = array<i32>} : memref<256x36xf32, #tpu.memory_space<vmem>>, vector<256x4xf32>,
    %c0_13 = arith.constant 0 : index
    %c0_14 = arith.constant 0 : index
    %26 = vector.load %arg7[%c0_13, %c0_14] : memref<256x36xf32, #tpu.memory_space<vmem>>, vector<256x36xf32>
    %c0_15 = arith.constant 0 : index
    %c0_16 = arith.constant 0 : index
    %27 = vector.load %arg2[%c0_15, %c0_16] : memref<36x8xf32, #tpu.memory_space<vmem>>, vector<36x8xf32>
    %cst = arith.constant dense<0.000000e+00> : vector<256x8xf32>
    %28 = tpu.matmul %26, %27, %cst {dimension_numbers = #tpu.dot_dimension_numbers<[1], [0], [0], [1], [0, 0, 1, 1], [], []>} : vector<256x36xf32>, vector<36x8xf32>, vector<256x8xf32> -> vector<256x8xf32>
    %c0_17 = arith.constant 0 : index
    %c0_18 = arith.constant 0 : index
    %29 = vector.load %arg3[%c0_17, %c0_18] : memref<1x8xf32, #tpu.memory_space<vmem>>, vector<1x8xf32>
    %30 = vector.broadcast %29 : vector<1x8xf32> to vector<256x8xf32>
    %31 = arith.addf %28, %30 : vector<256x8xf32>
    %cst_19 = arith.constant 0.000000e+00 : f32
    %32 = vector.broadcast %cst_19 : f32 to vector<256x8xf32>
    %33 = arith.maximumf %31, %32 : vector<256x8xf32>
    %c0_20 = arith.constant 0 : index
    %c0_21 = arith.constant 0 : index
    %34 = vector.load %arg4[%c0_20, %c0_21] : memref<1x8xf32, #tpu.memory_space<vmem>>, vector<1x8xf32>
    %35 = vector.broadcast %34 : vector<1x8xf32> to vector<256x8xf32>
    %36 = arith.mulf %33, %35 : vector<256x8xf32>
    %c0_22 = arith.constant 0 : index
    %c0_23 = arith.constant 0 : index
    %37 = vector.load %arg5[%c0_22, %c0_23] : memref<1x8xf32, #tpu.memory_space<vmem>>, vector<1x8xf32>
    %38 = vector.broadcast %37 : vector<1x8xf32> to vector<256x8xf32>
    %39 = arith.addf %36, %38 : vector<256x8xf32>
    %40 = vector.shape_cast %39 : vector<256x8xf32> to vector<8x2x8x2x8xf32>
    %41 = vector.extract_strided_slice %40 {offsets = [0, 0, 0, 0, 0], sizes = [8, 1, 8, 2, 8], strides = [1, 1, 1, 1, 1]} : vector<8x2x8x2x8xf32> to vector<8x1x8x2x8xf32>
    %42 = vector.shape_cast %41 : vector<8x1x8x2x8xf32> to vector<8x8x2x8xf32>
    %43 = vector.extract_strided_slice %40 {offsets = [0, 1, 0, 0, 0], sizes = [8, 1, 8, 2, 8], strides = [1, 1, 1, 1, 1]} : vector<8x2x8x2x8xf32> to vector<8x1x8x2x8xf32>
    %44 = vector.shape_cast %43 : vector<8x1x8x2x8xf32> to vector<8x8x2x8xf32>
    %45 = arith.maximumf %42, %44 : vector<8x8x2x8xf32>
    %46 = vector.extract_strided_slice %45 {offsets = [0, 0, 0, 0], sizes = [8, 8, 1, 8], strides = [1, 1, 1, 1]} : vector<8x8x2x8xf32> to vector<8x8x1x8xf32>
    %47 = vector.shape_cast %46 : vector<8x8x1x8xf32> to vector<8x8x8xf32>
    %48 = vector.extract_strided_slice %45 {offsets = [0, 0, 1, 0], sizes = [8, 8, 1, 8], strides = [1, 1, 1, 1]} : vector<8x8x2x8xf32> to vector<8x8x1x8xf32>
    %49 = vector.shape_cast %48 : vector<8x8x1x8xf32> to vector<8x8x8xf32>
    %50 = arith.maximumf %47, %49 : vector<8x8x8xf32>
    %c0_24 = arith.constant 0 : index
    %c0_25 = arith.constant 0 : index
    %c0_26 = arith.constant 0 : index
    %51 = vector.load %arg6[%c0_24, %c0_25, %c0_26] : memref<8x8x8xf32, #tpu.memory_space<vmem>>, vector<8x8x8xf32>
    tpu.vector_store %arg6[%c0_24, %c0_25, %c0_26], %50 {strides = array<i32>} : memref<8x8x8xf32, #tpu.memory_space<vmem>>, vector<8x8x8xf32>,
    return
  }
  func.func @transform_0(%arg0: i32) -> (i32, i32, i32, i32) {
    %c0_i32 = arith.constant 0 : i32
    %c0_i32_0 = arith.constant 0 : i32
    %c0_i32_1 = arith.constant 0 : i32
    %c0_i32_2 = arith.constant 0 : i32
    return %arg0, %c0_i32, %c0_i32_0, %c0_i32_1 : i32, i32, i32, i32
  }
  func.func @transform_1(%arg0: i32) -> (i32, i32) {
    %c0_i32 = arith.constant 0 : i32
    %c0_i32_0 = arith.constant 0 : i32
    %c0_i32_1 = arith.constant 0 : i32
    return %c0_i32, %c0_i32_0 : i32, i32
  }
  func.func @transform_2(%arg0: i32) -> (i32, i32) {
    %c0_i32 = arith.constant 0 : i32
    %c0_i32_0 = arith.constant 0 : i32
    %c0_i32_1 = arith.constant 0 : i32
    return %c0_i32, %c0_i32_0 : i32, i32
  }
  func.func @transform_3(%arg0: i32) -> (i32, i32) {
    %c0_i32 = arith.constant 0 : i32
    %c0_i32_0 = arith.constant 0 : i32
    %c0_i32_1 = arith.constant 0 : i32
    return %c0_i32, %c0_i32_0 : i32, i32
  }
  func.func @transform_4(%arg0: i32) -> (i32, i32) {
    %c0_i32 = arith.constant 0 : i32
    %c0_i32_0 = arith.constant 0 : i32
    %c0_i32_1 = arith.constant 0 : i32
    return %c0_i32, %c0_i32_0 : i32, i32
  }
  func.func @transform_5(%arg0: i32) -> (i32, i32, i32) {
    %c0_i32 = arith.constant 0 : i32
    %c0_i32_0 = arith.constant 0 : i32
    %c0_i32_1 = arith.constant 0 : i32
    return %arg0, %c0_i32, %c0_i32_0 : i32, i32, i32
  }
}

</mosaic_0001>

<bundles_post_ra>
// kernel: conv_unit_forward.2
= control target key start
LH: loop header
LB: loop body
LE: loop exit
PB: predicated region body
PF: predicated region fallthrough
CT: control target
= control target key end

     0   :  { %s2419_s15 = smov 0   ;;  %s3847_s0 = inlined_call_operand.vmem [shape: f32[2,18,18,4], index: 0, kind: input, shape index: {}]   ;;  %s3848_s1 = inlined_call_operand.vmem [shape: f32[36,8], index: 1, kind: input, shape index: {}]   ;;  %s3849_s2 = inlined_call_operand.vmem [shape: f32[1,8], index: 2, kind: input, shape index: {}]   ;;  %s3850_s3 = inlined_call_operand.vmem [shape: f32[2,1,8], index: 3, kind: output, shape index: {0}]   ;;  %s3851_s4 = inlined_call_operand.vmem [shape: f32[2,1,8], index: 4, kind: output, shape index: {1}]  }
   0x1 LB: > { %s2206_s16 = sadd.s32 4294967295, %s2384_s15   ;;  %p2210_p0 = scmp.ge.s32.totalorder %s2384_s15, 1  ;;  %s2384_s15 = sphi %s2419_s15, %s15_s15  }
   0x2   : > { %p165_p1 = scmp.lt.s32.totalorder %s2384_s15, 3 }
   0x4   : > { %p166_p2 = pnand %p2210_p0, %p165_p1 }
   0x5   : > { %p192_p3 = scmp.lt.s32.totalorder (!%p166_p2), %s2206_s16, 1  ;;  %vm257_vm0 = vcmask (!%p166_p2), 31744   ;;  %s2386_s21 = smov (!%p166_p2), 12   ;;  %vm602_vm1 = vcmask (!%p166_p2), 1046528   ;;  %vm1080_vm2 = vcmask (!%p166_p2), 1045504   ;;  %vm418_vm3 = vcmask (!%p166_p2), 130144  }
   0x6   : > { %169 = sbr.rel (%p166_p2) target bundleno = 887 (0x377), region = 32  ;;  %s2387_s22 = smov (!%p166_p2), 24   ;;  %vm1699_vm4 = vcmask (!%p166_p2), 1043456   ;;  %vm549_vm5 = vcmask (!%p166_p2), 228544   ;;  %vm789_vm6 = vcmask (!%p166_p2), 64544   ;;  %vm918_vm7 = vcmask (!%p166_p2), 162944  }
   0x7   : > { %s2388_s23 = smov (!%p166_p2), 4   ;;  %s2389_s24 = smov (!%p166_p2), 16   ;;  %vm1047_vm8 = vcmask (!%p166_p2), 261344   ;;  %vm1267_vm9 = vcmask (!%p166_p2), 97344   ;;  %vm1396_vm10 = vcmask (!%p166_p2), 195744   ;;  %vm1525_vm11 = vcmask (!%p166_p2), 294144  }
   0x8   : > { %s2390_s25 = smov (!%p166_p2), 28   ;;  %s2391_s30 = smov (!%p166_p2), 8   ;;  %vm1602_vm12 = vcmask (!%p166_p2), 293888   ;;  %vm1960_vm13 = vcmask (!%p166_p2), 64512   ;;  %vm2030_vm14 = vcmask (!%p166_p2), 57344  }
   0x9   : > { %s2392_s9 = smov (!%p166_p2), 20   ;;  %s2393_s12 = smov (!%p166_p2), 32  }
   0xd   : > { %s3853_s16 = smov (!%p192_p3, %s2206_s16), 1 }
   0xe   : > { %s2357_s17 = smul.u32 432, %s3853_s16  ;;  %s199_s19 = scalar_lea.vmem %s3850_s3, %s3853_s16 }
  0x10   : > { %s2433_s20 = scalar_lea.vmem %s3847_s0, %s2357_s17 }
  0x11   : > { %v2436_v0 = vld [vmem:[%s2433_s20 + $0x30] sm:$0xff]  ;;  %v2439_v1 = vld [vmem:[%s2433_s20 + $0x18] sm:$0xff]  ;;  %v2449_v3 = vld [vmem:[%s2433_s20 + $0x20] sm:$0xff] }
  0x12   : > { %v2442_v2 = vld [vmem:[%s2433_s20 + $0x38] sm:$0xff]  ;;  %326 = vrot.lane.b32.xlu1 %v2436_v0, %s2386_s21  ;;  %322 = vrot.lane.b32.xlu0 %v2439_v1, %s2386_s21  ;;  %v2452_v4 = vld [vmem:[%s2433_s20 + $0x50] sm:$0xff]  ;;  %260 = vst.msk [vmem:[#allocation2 + $0x10] sm:$0xff] %vm257_vm0, %v2439_v1  ;;  %262 = vst.msk [vmem:[#allocation2 + $0x20] sm:$0xff] %vm257_vm0, %v2436_v0  ;;  %v609_v8 = vrot.slane %v2449_v3, 1  ;;  %v608_v9 = vrot.slane %v2439_v1, 1 }
  0x13   : > { %263 = vst.msk [vmem:[#allocation2 + $0x28] sm:$0xff] %vm257_vm0, %v2442_v2  ;;  %v2461_v5 = vld [vmem:[%s2433_s20 + $0x48] sm:$0xff]  ;;  %v2467_v7 = vld [vmem:[%s2433_s20 + $0x60] sm:$0xff]  ;;  %261 = vst.msk [vmem:[#allocation2 + $0x18] sm:$0xff] %vm257_vm0, %v2449_v3  ;;  %v614_v22 = vrot.slane %v2442_v2, 1  ;;  %v613_v23 = vrot.slane %v2436_v0, 1 }
  0x14   : > { %v2464_v6 = vld [vmem:[%s2433_s20 + $0x68] sm:$0xff]  ;;  %265 = vst.msk [vmem:[#allocation2 + $0x38] sm:$0xff] %vm257_vm0, %v2452_v4  ;;  %v2476_v10 = vld [vmem:[%s2433_s20 + $0x80] sm:$0xff]  ;;  %v2479_v11 = vld [vmem:[%s2433_s20 + $0x78] sm:$0xff]  ;;  %v2508_v16 = vsel %vm602_vm1, %v608_v9, %v609_v8  ;;  %v1086_v44 = vrot.slane %v2439_v1, 2  ;;  %v1087_v45 = vrot.slane %v2449_v3, 2 }
  0x15   : > { %v2482_v12 = vld [vmem:[%s2433_s20 + $0x98] sm:$0xff]  ;;  %264 = vst.msk [vmem:[#allocation2 + $0x30] sm:$0xff] %vm257_vm0, %v2461_v5  ;;  %266 = vst.msk [vmem:[#allocation2 + $0x40] sm:$0xff] %vm257_vm0, %v2467_v7  ;;  %v2491_v13 = vld [vmem:[%s2433_s20 + $0x90] sm:$0xff]  ;;  %v2574_v30 = vsel %vm602_vm1, %v613_v23, %v614_v22  ;;  %v1091_v47 = vrot.slane %v2436_v0, 2  ;;  %v1092_v48 = vrot.slane %v2442_v2, 2 }
  0x16   : > { %267 = vst.msk [vmem:[#allocation2 + $0x48] sm:$0xff] %vm257_vm0, %v2464_v6  ;;  %v2494_v14 = vld [vmem:[%s2433_s20 + $0xb0] sm:$0xff]  ;;  %v2497_v15 = vld [vmem:[%s2433_s20 + $0xa8] sm:$0xff]  ;;  %268 = vst.msk [vmem:[#allocation2 + $0x50] sm:$0xff] %vm257_vm0, %v2479_v11  ;;  %328 = vrot.lane.b32.xlu1 %v2442_v2, %s2386_s21  ;;  %324 = vrot.lane.b32.xlu0 %v2449_v3, %s2386_s21  ;;  %v2651_v46 = vsel %vm1080_vm2, %v1086_v44, %v1087_v45 }
  0x17   : > { %269 = vst.msk [vmem:[#allocation2 + $0x58] sm:$0xff] %vm257_vm0, %v2476_v10  ;;  %271 = vst.msk [vmem:[#allocation2 + $0x68] sm:$0xff] %vm257_vm0, %v2482_v12  ;;  %v2515_v17 = vld [vmem:[%s2433_s20 + $0xc8] sm:$0xff]  ;;  %v2518_v18 = vld [vmem:[%s2433_s20 + $0xc0] sm:$0xff]  ;;  %v2666_v49 = vsel %vm1080_vm2, %v1091_v47, %v1092_v48 }
  0x18   : > { %270 = vst.msk [vmem:[#allocation2 + $0x60] sm:$0xff] %vm257_vm0, %v2491_v13  ;;  %272 = vst.msk [vmem:[#allocation2 + $0x70] sm:$0xff] %vm257_vm0, %v2497_v15  ;;  %v2527_v19 = vld [vmem:[%s2433_s20 + $0xe0] sm:$0xff]  ;;  %v2530_v20 = vld [vmem:[%s2433_s20 + $0xd8] sm:$0xff] }
  0x19   : > { %273 = vst.msk [vmem:[#allocation2 + $0x78] sm:$0xff] %vm257_vm0, %v2494_v14  ;;  %v2533_v21 = vld [vmem:[%s2433_s20 + $0xf8] sm:$0xff]  ;;  %274 = vst.msk [vmem:[#allocation2 + $0x80] sm:$0xff] %vm257_vm0, %v2518_v18  ;;  %v2542_v24 = vld [vmem:[%s2433_s20 + $0xf0] sm:$0xff] }
  0x1a   : > { %275 = vst.msk [vmem:[#allocation2 + $0x88] sm:$0xff] %vm257_vm0, %v2515_v17  ;;  %v2545_v25 = vld [vmem:[%s2433_s20 + $0x110] sm:$0xff]  ;;  %v2548_v26 = vld [vmem:[%s2433_s20 + $0x108] sm:$0xff]  ;;  %276 = vst.msk [vmem:[#allocation2 + $0x90] sm:$0xff] %vm257_vm0, %v2530_v20  ;;  %332 = vrot.lane.b32.xlu1 %v2452_v4, %s2386_s21  ;;  %330 = vrot.lane.b32.xlu0 %v2461_v5, %s2386_s21 }
  0x1b   : > { %277 = vst.msk [vmem:[#allocation2 + $0x98] sm:$0xff] %vm257_vm0, %v2527_v19  ;;  %279 = vst.msk [vmem:[#allocation2 + $0xa8] sm:$0xff] %vm257_vm0, %v2533_v21  ;;  %v2557_v27 = vld [vmem:[%s2433_s20 + $0x128] sm:$0xff]  ;;  %v2560_v28 = vld [vmem:[%s2433_s20 + $0x120] sm:$0xff] }
  0x1c   : > { %v2563_v29 = vld [vmem:[%s2433_s20 + $0x140] sm:$0xff]  ;;  %278 = vst.msk [vmem:[#allocation2 + $0xa0] sm:$0xff] %vm257_vm0, %v2542_v24  ;;  %280 = vst.msk [vmem:[#allocation2 + $0xb0] sm:$0xff] %vm257_vm0, %v2548_v26  ;;  %v2581_v31 = vld [vmem:[%s2433_s20 + $0x138] sm:$0xff] }
  0x1d   : > { %281 = vst.msk [vmem:[#allocation2 + $0xb8] sm:$0xff] %vm257_vm0, %v2545_v25  ;;  %v2584_v32 = vld [vmem:[%s2433_s20 + $0x158] sm:$0xff]  ;;  %282 = vst.msk [vmem:[#allocation2 + $0xc0] sm:$0xff] %vm257_vm0, %v2560_v28  ;;  %v2593_v33 = vld [vmem:[%s2433_s20 + $0x150] sm:$0xff] }
  0x1e   : > { %283 = vst.msk [vmem:[#allocation2 + $0xc8] sm:$0xff] %vm257_vm0, %v2557_v27  ;;  %285 = vst.msk [vmem:[#allocation2 + $0xd8] sm:$0xff] %vm257_vm0, %v2563_v29  ;;  %v2596_v34 = vld [vmem:[%s2433_s20 + $0x170] sm:$0xff]  ;;  %v2599_v35 = vld [vmem:[%s2433_s20 + $0x168] sm:$0xff]  ;;  %336 = vrot.lane.b32.xlu1 %v2464_v6, %s2386_s21  ;;  %334 = vrot.lane.b32.xlu0 %v2467_v7, %s2386_s21 }
  0x1f   : > { %284 = vst.msk [vmem:[#allocation2 + $0xd0] sm:$0xff] %vm257_vm0, %v2581_v31  ;;  %287 = vst.msk [vmem:[#allocation2 + $0xe8] sm:$0xff] %vm257_vm0, %v2584_v32  ;;  %v203_v36 = vld [vmem:[%s2433_s20] sm:$0xff]  ;;  %v2614_v37 = vld [vmem:[%s2433_s20 + $0x8] sm:$0xff] }
  0x20   : > { %286 = vst.msk [vmem:[#allocation2 + $0xe0] sm:$0xff] %vm257_vm0, %v2593_v33  ;;  %288 = vst.msk [vmem:[#allocation2 + $0xf0] sm:$0xff] %vm257_vm0, %v2599_v35  ;;  %v604_v38 = vrot.slane %v2614_v37, 1  ;;  %v603_v39 = vrot.slane %v203_v36, 1  ;;  %v1081_v41 = vrot.slane %v203_v36, 2  ;;  %v1082_v42 = vrot.slane %v2614_v37, 2 }
  0x21   : > { %289 = vst.msk [vmem:[#allocation2 + $0xf8] sm:$0xff] %vm257_vm0, %v2596_v34  ;;  %258 = vst.msk [vmem:[#allocation2] sm:$0xff] %vm257_vm0, %v203_v36  ;;  %v252_v50 = vld [vmem:[%s2433_s20 + $0x188] sm:$0xff]  ;;  %v251_v51 = vld [vmem:[%s2433_s20 + $0x180] sm:$0xff] }
  0x22   : > { %259 = vst.msk [vmem:[#allocation2 + $0x8] sm:$0xff] %vm257_vm0, %v2614_v37  ;;  %v2626_v40 = vsel %vm602_vm1, %v603_v39, %v604_v38  ;;  %340 = vrot.lane.b32.xlu1 %v2476_v10, %s2386_s21  ;;  %338 = vrot.lane.b32.xlu0 %v2479_v11, %s2386_s21  ;;  %v2640_v43 = vsel %vm1080_vm2, %v1081_v41, %v1082_v42  ;;  %v2755_v56 = vld [vmem:[%s2433_s20 + $0x10] sm:$0x3]  ;;  %v255_v57 = vld [vmem:[%s2433_s20 + $0x1a0] sm:$0xff] }
  0x23   : > { %v254_v58 = vld [vmem:[%s2433_s20 + $0x198] sm:$0xff]  ;;  %v606_v59 = vrot.slane %v2755_v56, 1  ;;  %v2765_v62 = vld [vmem:[%s2433_s20 + $0x28] sm:$0x3]  ;;  %v2776_v23 = vld [vmem:[%s2433_s20 + $0x40] sm:$0x3] }
  0x24   : > { %v2788_v44 = vld [vmem:[%s2433_s20 + $0x58] sm:$0x3]  ;;  %v1594_v3 = vld [vmem:[%s3848_s1 + $0x20] sm:$0xf] }
  0x25   : > { %v607_v63 = vsel %vm602_vm1, %v604_v38, %v606_v59  ;;  %v616_v38 = vrot.slane %v2776_v23, 1  ;;  %v621_v47 = vrot.slane %v2788_v44, 1 }
  0x26   : > { %344 = vrot.lane.b32.xlu1 %v2482_v12, %s2386_s21  ;;  %342 = vrot.lane.b32.xlu0 %v2491_v13, %s2386_s21 }
  0x2a   : > { %348 = vrot.lane.b32.xlu1 %v2494_v14, %s2386_s21  ;;  %346 = vrot.lane.b32.xlu0 %v2497_v15, %s2386_s21 }
  0x2e   : > { %352 = vrot.lane.b32.xlu1 %v2515_v17, %s2386_s21  ;;  %350 = vrot.lane.b32.xlu0 %v2518_v18, %s2386_s21 }
  0x32   : > { %356 = vrot.lane.b32.xlu1 %v2527_v19, %s2386_s21  ;;  %354 = vrot.lane.b32.xlu0 %v2530_v20, %s2386_s21 }
  0x36   : > { %360 = vrot.lane.b32.xlu1 %v2533_v21, %s2386_s21  ;;  %358 = vrot.lane.b32.xlu0 %v2542_v24, %s2386_s21 }
  0x3a   : > { %364 = vrot.lane.b32.xlu1 %v2545_v25, %s2386_s21  ;;  %362 = vrot.lane.b32.xlu0 %v2548_v26, %s2386_s21 }
  0x3e   : > { %368 = vrot.lane.b32.xlu1 %v2557_v27, %s2386_s21  ;;  %366 = vrot.lane.b32.xlu0 %v2560_v28, %s2386_s21 }
  0x42   : > { %372 = vrot.lane.b32.xlu1 %v2563_v29, %s2386_s21  ;;  %370 = vrot.lane.b32.xlu0 %v2581_v31, %s2386_s21 }
  0x46   : > { %376 = vrot.lane.b32.xlu1 %v2584_v32, %s2386_s21  ;;  %374 = vrot.lane.b32.xlu0 %v2593_v33, %s2386_s21 }
  0x4a   : > { %380 = vrot.lane.b32.xlu1 %v2596_v34, %s2386_s21  ;;  %378 = vrot.lane.b32.xlu0 %v2599_v35, %s2386_s21 }
  0x4e   : > { %384 = vrot.lane.b32.xlu1 %v252_v50, %s2386_s21  ;;  %382 = vrot.lane.b32.xlu0 %v251_v51, %s2386_s21 }
  0x52   : > { %455 = vrot.lane.b32.xlu1 %v2442_v2, %s2387_s22  ;;  %453 = vrot.lane.b32.xlu0 %v2436_v0, %s2387_s22  ;;  %v611_v0 = vrot.slane %v2765_v62, 1 }
  0x54   : > { %v612_v36 = vsel %vm602_vm1, %v609_v8, %v611_v0  ;;  %v619_v8 = vrot.slane %v2452_v4, 1 }
  0x56   : > { %459 = vrot.lane.b32.xlu1 %v2452_v4, %s2387_s22  ;;  %457 = vrot.lane.b32.xlu0 %v2461_v5, %s2387_s22 }
  0x5a   : > { %463 = vrot.lane.b32.xlu1 %v2464_v6, %s2387_s22  ;;  %461 = vrot.lane.b32.xlu0 %v2467_v7, %s2387_s22 }
  0x5e   : > { %467 = vrot.lane.b32.xlu1 %v2476_v10, %s2387_s22  ;;  %465 = vrot.lane.b32.xlu0 %v2479_v11, %s2387_s22 }
  0x62   : > { %471 = vrot.lane.b32.xlu1 %v2482_v12, %s2387_s22  ;;  %469 = vrot.lane.b32.xlu0 %v2491_v13, %s2387_s22 }
  0x66   : > { %475 = vrot.lane.b32.xlu1 %v2494_v14, %s2387_s22  ;;  %473 = vrot.lane.b32.xlu0 %v2497_v15, %s2387_s22 }
  0x6a   : > { %479 = vrot.lane.b32.xlu1 %v2515_v17, %s2387_s22  ;;  %477 = vrot.lane.b32.xlu0 %v2518_v18, %s2387_s22 }
  0x6e   : > { %483 = vrot.lane.b32.xlu1 %v2527_v19, %s2387_s22  ;;  %481 = vrot.lane.b32.xlu0 %v2530_v20, %s2387_s22 }
  0x72   : > { %487 = vrot.lane.b32.xlu1 %v2533_v21, %s2387_s22  ;;  %485 = vrot.lane.b32.xlu0 %v2542_v24, %s2387_s22 }
  0x76   : > { %491 = vrot.lane.b32.xlu1 %v2545_v25, %s2387_s22  ;;  %489 = vrot.lane.b32.xlu0 %v2548_v26, %s2387_s22 }
  0x7a   : > { %495 = vrot.lane.b32.xlu1 %v2557_v27, %s2387_s22  ;;  %493 = vrot.lane.b32.xlu0 %v2560_v28, %s2387_s22 }
  0x7e   : > { %499 = vrot.lane.b32.xlu1 %v2563_v29, %s2387_s22  ;;  %497 = vrot.lane.b32.xlu0 %v2581_v31, %s2387_s22 }
  0x82   : > { %503 = vrot.lane.b32.xlu1 %v2584_v32, %s2387_s22  ;;  %501 = vrot.lane.b32.xlu0 %v2593_v33, %s2387_s22 }
  0x84   : > { %v327_v52 = vpop.permute.xlu1 %326  ;;  %v323_v53 = vpop.permute.xlu0 %322 }
  0x85   : > { %421 = vst.msk [vmem:[#allocation2 + $0x10] sm:$0xff] %vm418_vm3, %v327_v52  ;;  %419 = vst.msk [vmem:[#allocation2] sm:$0xff] %vm418_vm3, %v323_v53 }
  0x86   : > { %507 = vrot.lane.b32.xlu1 %v2596_v34, %s2387_s22  ;;  %505 = vrot.lane.b32.xlu0 %v2599_v35, %s2387_s22 }
  0x88   : > { %v329_v54 = vpop.permute.xlu1 %328  ;;  %v325_v55 = vpop.permute.xlu0 %324 }
  0x89   : > { %422 = vst.msk [vmem:[#allocation2 + $0x18] sm:$0xff] %vm418_vm3, %v329_v54  ;;  %420 = vst.msk [vmem:[#allocation2 + $0x8] sm:$0xff] %vm418_vm3, %v325_v55  ;;  %v623_v54 = vrot.slane %v2467_v7, 1  ;;  %v624_v55 = vrot.slane %v2464_v6, 1 }
  0x8a   : > { %511 = vrot.lane.b32.xlu1 %v252_v50, %s2387_s22  ;;  %509 = vrot.lane.b32.xlu0 %v251_v51, %s2387_s22  ;;  %v618_v50 = vrot.slane %v2461_v5, 1 }
  0x8b   : > { %v2826_v59 = vsel %vm602_vm1, %v623_v54, %v624_v55 }
  0x8c   : > { %v333_v60 = vpop.permute.xlu1 %332  ;;  %v331_v61 = vpop.permute.xlu0 %330  ;;  %v2813_v53 = vsel %vm602_vm1, %v618_v50, %v619_v8  ;;  %v1592_v50 = vld [vmem:[%s3848_s1 + $0x10] sm:$0xff] }
  0x8d   : > { %424 = vst.msk [vmem:[#allocation2 + $0x28] sm:$0xff] %vm418_vm3, %v333_v60  ;;  %423 = vst.msk [vmem:[#allocation2 + $0x20] sm:$0xff] %vm418_vm3, %v331_v61 }
  0x8e   : > { %515 = vrot.lane.b32.xlu1 %v255_v57, %s2387_s22  ;;  %513 = vrot.lane.b32.xlu0 %v254_v58, %s2387_s22  ;;  %s202_s22 = scalar_lea.vmem %s3851_s4, %s3853_s16 }
  0x90   : > { %v337_v1 = vpop.permute.xlu1 %336  ;;  %v335_v9 = vpop.permute.xlu0 %334 }
  0x91   : > { %426 = vst.msk [vmem:[#allocation2 + $0x38] sm:$0xff] %vm418_vm3, %v337_v1  ;;  %425 = vst.msk [vmem:[#allocation2 + $0x30] sm:$0xff] %vm418_vm3, %v335_v9  ;;  %v1084_v1 = vrot.slane %v2755_v56, 2 }
  0x92   : > { %695 = vrot.lane.b32.xlu1 %v607_v63, %s2388_s23  ;;  %693 = vrot.lane.b32.xlu0 %v2626_v40, %s2388_s23  ;;  %v2798_v40 = vsel %vm602_vm1, %v614_v22, %v616_v38  ;;  %v2810_v22 = vsel %vm602_vm1, %v619_v8, %v621_v47 }
  0x93   : > { %v1085_v56 = vsel %vm1080_vm2, %v1082_v42, %v1084_v1  ;;  %v1099_v1 = vrot.slane %v2788_v44, 2 }
  0x94   : > { %v341_v39 = vpop.permute.xlu1 %340  ;;  %v339_v41 = vpop.permute.xlu0 %338 }
  0x95   : > { %428 = vst.msk [vmem:[#allocation2 + $0x48] sm:$0xff] %vm418_vm3, %v341_v39  ;;  %427 = vst.msk [vmem:[#allocation2 + $0x40] sm:$0xff] %vm418_vm3, %v339_v41  ;;  %v1591_v39 = vld [vmem:[%s3848_s1 + $0x8] sm:$0xff] }
  0x96   : > { %699 = vrot.lane.b32.xlu1 %v612_v36, %s2388_s23  ;;  %697 = vrot.lane.b32.xlu0 %v2508_v16, %s2388_s23 }
  0x98   : > { %v345_v51 = vpop.permute.xlu1 %344  ;;  %v343_v52 = vpop.permute.xlu0 %342 }
  0x99   : > { %430 = vst.msk [vmem:[#allocation2 + $0x58] sm:$0xff] %vm418_vm3, %v345_v51  ;;  %429 = vst.msk [vmem:[#allocation2 + $0x50] sm:$0xff] %vm418_vm3, %v343_v52 }
  0x9a   : > { %703 = vrot.lane.b32.xlu1 %v2798_v40, %s2388_s23  ;;  %701 = vrot.lane.b32.xlu0 %v2574_v30, %s2388_s23 }
  0x9c   : > { %v349_v57 = vpop.permute.xlu1 %348  ;;  %v347_v58 = vpop.permute.xlu0 %346 }
  0x9d   : > { %432 = vst.msk [vmem:[#allocation2 + $0x68] sm:$0xff] %vm418_vm3, %v349_v57  ;;  %431 = vst.msk [vmem:[#allocation2 + $0x60] sm:$0xff] %vm418_vm3, %v347_v58 }
  0x9e   : > { %707 = vrot.lane.b32.xlu1 %v2810_v22, %s2388_s23  ;;  %705 = vrot.lane.b32.xlu0 %v2813_v53, %s2388_s23 }
  0xa0   : > { %v353_v60 = vpop.permute.xlu1 %352  ;;  %v351_v61 = vpop.permute.xlu0 %350 }
  0xa1   : > { %434 = vst.msk [vmem:[#allocation2 + $0x78] sm:$0xff] %vm418_vm3, %v353_v60  ;;  %433 = vst.msk [vmem:[#allocation2 + $0x70] sm:$0xff] %vm418_vm3, %v351_v61  ;;  %v1096_v60 = vrot.slane %v2461_v5, 2 }
  0xa2   : > { %822 = vrot.lane.b32.xlu1 %v2508_v16, %s2389_s24  ;;  %709 = vrot.lane.b32.xlu0 %v2826_v59, %s2388_s23  ;;  %v1590_v16 = vld [vmem:[%s3848_s1] sm:$0xff] }
  0xa3   : > { %v2343_v41 = vpack.c.bf16 %v1591_v39, %v1590_v16 }
  0xa4   : > { %v357_v63 = vpop.permute.xlu1 %356  ;;  %v355_v0 = vpop.permute.xlu0 %354 }
  0xa5   : > { %436 = vst.msk [vmem:[#allocation2 + $0x88] sm:$0xff] %vm418_vm3, %v357_v63  ;;  %435 = vst.msk [vmem:[#allocation2 + $0x80] sm:$0xff] %vm418_vm3, %v355_v0  ;;  %2344 = vmatprep.subr.bf16.mxu0 %v2343_v41  ;;  %2351 = vmatprep.subr.bf16.mxu1 %v2343_v41 }
  0xa6   : > { %951 = vrot.lane.b32.xlu1 %v2574_v30, %s2390_s25  ;;  %824 = vrot.lane.b32.xlu0 %v612_v36, %s2389_s24  ;;  %v1089_v36 = vrot.slane %v2765_v62, 2 }
  0xa7   : > { %2346 = vmatpush3.bf16.msra.mxu0 %v2343_v41  ;;  %2354 = vmatpush3.bf16.msra.mxu1 %v2343_v41 }
  0xa8   : > { %v361_v9 = vpop.permute.xlu1 %360  ;;  %v359_v38 = vpop.permute.xlu0 %358  ;;  %v1090_v42 = vsel %vm1080_vm2, %v1087_v45, %v1089_v36  ;;  %v1094_v45 = vrot.slane %v2776_v23, 2 }
  0xa9   : > { %438 = vst.msk [vmem:[#allocation2 + $0x98] sm:$0xff] %vm418_vm3, %v361_v9  ;;  %437 = vst.msk [vmem:[#allocation2 + $0x90] sm:$0xff] %vm418_vm3, %v359_v38  ;;  %v217_v38 = vld [vmem:[%s2433_s20 + $0x70] sm:$0x3] }
  0xaa   : > { %1171 = vrot.lane.b32.xlu1 %v2640_v43, %s2391_s30  ;;  %953 = vrot.lane.b32.xlu0 %v2798_v40, %s2390_s25  ;;  %v1593_v43 = vld [vmem:[%s3848_s1 + $0x18] sm:$0xff] }
  0xab   : > { %v2347_v37 = vpack.c.bf16 %v1593_v43, %v1592_v50  ;;  %v1104_v43 = vrot.slane %v217_v38, 2 }
  0xac   : > { %v365_v8 = vpop.permute.xlu1 %364  ;;  %v363_v47 = vpop.permute.xlu0 %362 }
  0xad   : > { %440 = vst.msk [vmem:[#allocation2 + $0xa8] sm:$0xff] %vm418_vm3, %v365_v8  ;;  %439 = vst.msk [vmem:[#allocation2 + $0xa0] sm:$0xff] %vm418_vm3, %v363_v47  ;;  %2348 = vmatprep.subr.bf16.mxu0 %v2347_v37  ;;  %2352 = vmatprep.subr.bf16.mxu1 %v2347_v37  ;;  %v1102_v8 = vrot.slane %v2464_v6, 2 }
  0xae   : > { %1300 = vrot.lane.b32.xlu1 %v2651_v46, %s2392_s9  ;;  %1173 = vrot.lane.b32.xlu0 %v1085_v56, %s2391_s30 }
  0xaf   : > { %2350 = vmatpush3.bf16.msra.mxu0 %v2347_v37  ;;  %2355 = vmatpush3.bf16.msra.mxu1 %v2347_v37  ;;  %v628_v37 = vrot.slane %v2479_v11, 1 }
  0xb0   : > { %v369_v62 = vpop.permute.xlu1 %368  ;;  %v367_v51 = vpop.permute.xlu0 %366  ;;  %2293 = vmatprep.subr.msk.mxu0 %vm1699_vm4, %v1594_v3  ;;  %2353 = vmatprep.subr.msk.mxu1 %vm1699_vm4, %v1594_v3 }
  0xb1   : > { %442 = vst.msk [vmem:[#allocation2 + $0xb8] sm:$0xff] %vm418_vm3, %v369_v62  ;;  %441 = vst.msk [vmem:[#allocation2 + $0xb0] sm:$0xff] %vm418_vm3, %v367_v51  ;;  %v220_v62 = vld [vmem:[%s2433_s20 + $0x88] sm:$0x3] }
  0xb2   : > { %1302 = vrot.lane.b32.xlu1 %v1090_v42, %s2392_s9  ;;  %826 = vrot.lane.b32.xlu0 %v2574_v30, %s2389_s24  ;;  %v1095_v30 = vsel %vm1080_vm2, %v1092_v48, %v1094_v45 }
  0xb3   : > { %2294 = vmatpush3.msk.msra.mxu0 %vm1699_vm4, %v1594_v3  ;;  %2356 = vmatpush3.msk.msra.mxu1 %vm1699_vm4, %v1594_v3  ;;  %v631_v3 = vrot.slane %v220_v62, 1 }
  0xb4   : > { %v373_v52 = vpop.permute.xlu1 %372  ;;  %v371_v54 = vpop.permute.xlu0 %370 }
  0xb5   : > { %444 = vst.msk [vmem:[#allocation2 + $0xc8] sm:$0xff] %vm418_vm3, %v373_v52  ;;  %443 = vst.msk [vmem:[#allocation2 + $0xc0] sm:$0xff] %vm418_vm3, %v371_v54 }
  0xb6   : > { %828 = vrot.lane.b32.xlu1 %v2798_v40, %s2389_s24  ;;  %1429 = vrot.lane.b32.xlu0 %v2666_v49, %s2393_s12 }
  0xb8   : > { %v377_v23 = vpop.permute.xlu1 %376  ;;  %v375_v57 = vpop.permute.xlu0 %374 }
  0xb9   : > { %446 = vst.msk [vmem:[#allocation2 + $0xd8] sm:$0xff] %vm418_vm3, %v377_v23  ;;  %445 = vst.msk [vmem:[#allocation2 + $0xd0] sm:$0xff] %vm418_vm3, %v375_v57 }
  0xba   : > { %1431 = vrot.lane.b32.xlu1 %v1095_v30, %s2393_s12  ;;  %955 = vrot.lane.b32.xlu0 %v2813_v53, %s2390_s25 }
  0xbc   : > { %v381_v40 = vpop.permute.xlu1 %380  ;;  %v379_v58 = vpop.permute.xlu0 %378 }
  0xbd   : > { %448 = vst.msk [vmem:[#allocation2 + $0xe8] sm:$0xff] %vm418_vm3, %v381_v40  ;;  %447 = vst.msk [vmem:[#allocation2 + $0xe0] sm:$0xff] %vm418_vm3, %v379_v58  ;;  %v1106_v58 = vrot.slane %v2479_v11, 2 }
  0xbe   : > { %1175 = vrot.lane.b32.xlu1 %v2651_v46, %s2391_s30  ;;  %957 = vrot.lane.b32.xlu0 %v2810_v22, %s2390_s25  ;;  %v1097_v46 = vrot.slane %v2452_v4, 2 }
  0xc0   : > { %v385_v2 = vpop.permute.xlu1 %384  ;;  %v383_v48 = vpop.permute.xlu0 %382  ;;  %v2912_v0 = vsel %vm1080_vm2, %v1096_v60, %v1097_v46  ;;  %v1100_v4 = vsel %vm1080_vm2, %v1097_v46, %v1099_v1 }
  0xc1   : > { %450 = vst.msk [vmem:[#allocation2 + $0xf8] sm:$0xff] %vm418_vm3, %v385_v2  ;;  %449 = vst.msk [vmem:[#allocation2 + $0xf0] sm:$0xff] %vm418_vm3, %v383_v48  ;;  %v1107_v2 = vrot.slane %v2476_v10, 2 }
  0xc2   : > { %1304 = vrot.lane.b32.xlu1 %v2666_v49, %s2392_s9  ;;  %1177 = vrot.lane.b32.xlu0 %v1090_v42, %s2391_s30 }
  0xc3   : > { %v2989_v46 = vsel %vm1080_vm2, %v1106_v58, %v1107_v2  ;;  %v1116_v58 = vrot.slane %v2497_v15, 2 }
  0xc4   : > { %v456_v61 = vpop.permute.xlu1 %455  ;;  %v454_v63 = vpop.permute.xlu0 %453 }
  0xc5   : > { %551 = vst.msk [vmem:[#allocation2 + $0x8] sm:$0xff] %vm549_vm5, %v456_v61  ;;  %550 = vst.msk [vmem:[#allocation2] sm:$0xff] %vm549_vm5, %v454_v63  ;;  %v633_v61 = vrot.slane %v2491_v13, 1  ;;  %v634_v63 = vrot.slane %v2482_v12, 1 }
  0xc6   : > { %1306 = vrot.lane.b32.xlu1 %v1095_v30, %s2392_s9  ;;  %830 = vrot.lane.b32.xlu0 %v2813_v53, %s2389_s24  ;;  %v626_v53 = vrot.slane %v217_v38, 1 }
  0xc7   : > { %v3003_v1 = vsel %vm602_vm1, %v633_v61, %v634_v63 }
  0xc8   : > { %v460_v9 = vpop.permute.xlu1 %459  ;;  %v458_v5 = vpop.permute.xlu0 %457  ;;  %v627_v44 = vsel %vm602_vm1, %v624_v55, %v626_v53  ;;  %v1101_v55 = vrot.slane %v2467_v7, 2  ;;  %v629_v7 = vrot.slane %v2476_v10, 1  ;;  %v2994_v10 = vld [vmem:[%s2433_s20 + $0xa0] sm:$0x3] }
  0xc9   : > { %553 = vst.msk [vmem:[#allocation2 + $0x18] sm:$0xff] %vm549_vm5, %v460_v9  ;;  %552 = vst.msk [vmem:[#allocation2 + $0x10] sm:$0xff] %vm549_vm5, %v458_v5  ;;  %v1109_v9 = vrot.slane %v220_v62, 2  ;;  %v636_v5 = vrot.slane %v2994_v10, 1 }
  0xca   : > { %832 = vrot.lane.b32.xlu1 %v2810_v22, %s2389_s24  ;;  %1433 = vrot.lane.b32.xlu0 %v2912_v0, %s2393_s12  ;;  %v2949_v50 = vsel %vm1080_vm2, %v1101_v55, %v1102_v8  ;;  %v630_v51 = vsel %vm602_vm1, %v628_v37, %v629_v7  ;;  %v2969_v54 = vsel %vm602_vm1, %v629_v7, %v631_v3  ;;  %v1111_v55 = vrot.slane %v2491_v13, 2  ;;  %v3049_v7 = vld [vmem:[%s2433_s20 + $0xb8] sm:$0x3] }
  0xcb   : > { %v3013_v53 = vsel %vm1080_vm2, %v1107_v2, %v1109_v9  ;;  %v639_v13 = vrot.slane %v2494_v14, 1  ;;  %v641_v62 = vrot.slane %v3049_v7, 1  ;;  %v1117_v2 = vrot.slane %v2494_v14, 2 }
  0xcc   : > { %v464_v16 = vpop.permute.xlu1 %463  ;;  %v462_v39 = vpop.permute.xlu0 %461  ;;  %v644_v14 = vrot.slane %v2515_v17, 1 }
  0xcd   : > { %555 = vst.msk [vmem:[#allocation2 + $0x28] sm:$0xff] %vm549_vm5, %v464_v16  ;;  %554 = vst.msk [vmem:[#allocation2 + $0x20] sm:$0xff] %vm549_vm5, %v462_v39  ;;  %v3016_v16 = vsel %vm602_vm1, %v634_v63, %v636_v5 }
  0xce   : > { %1435 = vrot.lane.b32.xlu1 %v1100_v4, %s2393_s12  ;;  %959 = vrot.lane.b32.xlu0 %v2826_v59, %s2390_s25 }
  0xd0   : > { %v468_v22 = vpop.permute.xlu1 %467  ;;  %v466_v41 = vpop.permute.xlu0 %465 }
  0xd1   : > { %557 = vst.msk [vmem:[#allocation2 + $0x38] sm:$0xff] %vm549_vm5, %v468_v22  ;;  %556 = vst.msk [vmem:[#allocation2 + $0x30] sm:$0xff] %vm549_vm5, %v466_v41 }
  0xd2   : > { %1179 = vrot.lane.b32.xlu1 %v2666_v49, %s2391_s30  ;;  %961 = vrot.lane.b32.xlu0 %v627_v44, %s2390_s25 }
  0xd4   : > { %v472_v56 = vpop.permute.xlu1 %471  ;;  %v470_v36 = vpop.permute.xlu0 %469 }
  0xd5   : > { %559 = vst.msk [vmem:[#allocation2 + $0x48] sm:$0xff] %vm549_vm5, %v472_v56  ;;  %558 = vst.msk [vmem:[#allocation2 + $0x40] sm:$0xff] %vm549_vm5, %v470_v36 }
  0xd6   : > { %1308 = vrot.lane.b32.xlu1 %v2912_v0, %s2392_s9  ;;  %1181 = vrot.lane.b32.xlu0 %v1095_v30, %s2391_s30 }
  0xd8   : > { %v476_v47 = vpop.permute.xlu1 %475  ;;  %v474_v49 = vpop.permute.xlu0 %473 }
  0xd9   : > { %561 = vst.msk [vmem:[#allocation2 + $0x58] sm:$0xff] %vm549_vm5, %v476_v47  ;;  %560 = vst.msk [vmem:[#allocation2 + $0x50] sm:$0xff] %vm549_vm5, %v474_v49 }
  0xda   : > { %1310 = vrot.lane.b32.xlu1 %v1100_v4, %s2392_s9  ;;  %834 = vrot.lane.b32.xlu0 %v2826_v59, %s2389_s24  ;;  %v2960_v59 = vsel %vm1080_vm2, %v1102_v8, %v1104_v43  ;;  %v1112_v8 = vrot.slane %v2482_v12, 2  ;;  %v638_v43 = vrot.slane %v2497_v15, 1  ;;  %v643_v15 = vrot.slane %v2518_v18, 1 }
  0xdc   : > { %v480_v6 = vpop.permute.xlu1 %479  ;;  %v478_v42 = vpop.permute.xlu0 %477 }
  0xdd   : > { %563 = vst.msk [vmem:[#allocation2 + $0x68] sm:$0xff] %vm549_vm5, %v480_v6  ;;  %562 = vst.msk [vmem:[#allocation2 + $0x60] sm:$0xff] %vm549_vm5, %v478_v42  ;;  %v3058_v6 = vsel %vm602_vm1, %v638_v43, %v639_v13  ;;  %v1114_v42 = vrot.slane %v2994_v10, 2  ;;  %v1119_v10 = vrot.slane %v3049_v7, 2 }
  0xde   : > { %836 = vrot.lane.b32.xlu1 %v627_v44, %s2389_s24  ;;  %1437 = vrot.lane.b32.xlu0 %v2949_v50, %s2393_s12 }
  0xdf   : > { %v3069_v3 = vsel %vm1080_vm2, %v1112_v8, %v1114_v42 }
  0xe0   : > { %v484_v45 = vpop.permute.xlu1 %483  ;;  %v482_v52 = vpop.permute.xlu0 %481 }
  0xe1   : > { %565 = vst.msk [vmem:[#allocation2 + $0x78] sm:$0xff] %vm549_vm5, %v484_v45  ;;  %564 = vst.msk [vmem:[#allocation2 + $0x70] sm:$0xff] %vm549_vm5, %v482_v52  ;;  %v3072_v45 = vsel %vm602_vm1, %v639_v13, %v641_v62 }
  0xe2   : > { %1439 = vrot.lane.b32.xlu1 %v2960_v59, %s2393_s12  ;;  %963 = vrot.lane.b32.xlu0 %v630_v51, %s2390_s25 }
  0xe4   : > { %v488_v30 = vpop.permute.xlu1 %487  ;;  %v486_v23 = vpop.permute.xlu0 %485 }
  0xe5   : > { %567 = vst.msk [vmem:[#allocation2 + $0x88] sm:$0xff] %vm549_vm5, %v488_v30  ;;  %566 = vst.msk [vmem:[#allocation2 + $0x80] sm:$0xff] %vm549_vm5, %v486_v23 }
  0xe6   : > { %965 = vrot.lane.b32.xlu0 %v2969_v54, %s2390_s25  ;;  %1183 = vrot.lane.b32.xlu1 %v2912_v0, %s2391_s30 }
  0xe8   : > { %v492_v57 = vpop.permute.xlu1 %491  ;;  %v490_v40 = vpop.permute.xlu0 %489 }
  0xe9   : > { %569 = vst.msk [vmem:[#allocation2 + $0x98] sm:$0xff] %vm549_vm5, %v492_v57  ;;  %568 = vst.msk [vmem:[#allocation2 + $0x90] sm:$0xff] %vm549_vm5, %v490_v40 }
  0xea   : > { %1185 = vrot.lane.b32.xlu0 %v1100_v4, %s2391_s30  ;;  %1312 = vrot.lane.b32.xlu1 %v2949_v50, %s2392_s9 }
  0xec   : > { %v496_v48 = vpop.permute.xlu1 %495  ;;  %v494_v60 = vpop.permute.xlu0 %493 }
  0xed   : > { %571 = vst.msk [vmem:[#allocation2 + $0xa8] sm:$0xff] %vm549_vm5, %v496_v48  ;;  %570 = vst.msk [vmem:[#allocation2 + $0xa0] sm:$0xff] %vm549_vm5, %v494_v60 }
  0xee   : > { %711 = vrot.lane.b32.xlu0 %v627_v44, %s2388_s23  ;;  %838 = vrot.lane.b32.xlu1 %v630_v51, %s2389_s24 }
  0xf0   : > { %v500_v11 = vpop.permute.xlu1 %499  ;;  %v498_v0 = vpop.permute.xlu0 %497 }
  0xf1   : > { %573 = vst.msk [vmem:[#allocation2 + $0xb8] sm:$0xff] %vm549_vm5, %v500_v11  ;;  %572 = vst.msk [vmem:[#allocation2 + $0xb0] sm:$0xff] %vm549_vm5, %v498_v0  ;;  %v3106_v11 = vld [vmem:[%s2433_s20 + $0xd0] sm:$0x3]  ;;  %v3115_v0 = vsel %vm602_vm1, %v643_v15, %v644_v14  ;;  %v653_v15 = vrot.slane %v2542_v24, 1 }
  0xf2   : > { %1314 = vrot.lane.b32.xlu0 %v2960_v59, %s2392_s9  ;;  %1441 = vrot.lane.b32.xlu1 %v2989_v46, %s2393_s12  ;;  %v1124_v7 = vrot.slane %v3106_v11, 2 }
  0xf4   : > { %v504_v38 = vpop.permute.xlu1 %503  ;;  %v502_v4 = vpop.permute.xlu0 %501 }
  0xf5   : > { %575 = vst.msk [vmem:[#allocation2 + $0xc8] sm:$0xff] %vm549_vm5, %v504_v38  ;;  %574 = vst.msk [vmem:[#allocation2 + $0xc0] sm:$0xff] %vm549_vm5, %v502_v4  ;;  %v3126_v38 = vsel %vm1080_vm2, %v1117_v2, %v1119_v10 }
  0xf6   : > { %840 = vrot.lane.b32.xlu0 %v2969_v54, %s2389_s24  ;;  %967 = vrot.lane.b32.xlu1 %v3003_v1, %s2390_s25 }
  0xf8   : > { %v508_v39 = vpop.permute.xlu1 %507  ;;  %v506_v44 = vpop.permute.xlu0 %505 }
  0xf9   : > { %577 = vst.msk [vmem:[#allocation2 + $0xd8] sm:$0xff] %vm549_vm5, %v508_v39  ;;  %576 = vst.msk [vmem:[#allocation2 + $0xd0] sm:$0xff] %vm549_vm5, %v506_v44 }
  0xfa   : > { %1443 = vrot.lane.b32.xlu0 %v3013_v53, %s2393_s12  ;;  %969 = vrot.lane.b32.xlu1 %v3016_v16, %s2390_s25 }
  0xfc   : > { %v512_v22 = vpop.permute.xlu1 %511  ;;  %v510_v41 = vpop.permute.xlu0 %509 }
  0xfd   : > { %579 = vst.msk [vmem:[#allocation2 + $0xe8] sm:$0xff] %vm549_vm5, %v512_v22  ;;  %578 = vst.msk [vmem:[#allocation2 + $0xe0] sm:$0xff] %vm549_vm5, %v510_v41 }
  0xfe   : > { %1187 = vrot.lane.b32.xlu0 %v2949_v50, %s2391_s30  ;;  %713 = vrot.lane.b32.xlu1 %v630_v51, %s2388_s23  ;;  %v3044_v50 = vsel %vm1080_vm2, %v1111_v55, %v1112_v8  ;;  %v1122_v55 = vrot.slane %v2515_v17, 2  ;;  %v648_v17 = vrot.slane %v2530_v20, 1 }
 0x100   : > { %v516_v56 = vpop.permute.xlu1 %515  ;;  %v514_v36 = vpop.permute.xlu0 %513 }
 0x101   : > { %581 = vst.msk [vmem:[#allocation2 + $0xf8] sm:$0xff] %vm549_vm5, %v516_v56  ;;  %580 = vst.msk [vmem:[#allocation2 + $0xf0] sm:$0xff] %vm549_vm5, %v514_v36  ;;  %v1121_v36 = vrot.slane %v2518_v18, 2  ;;  %v649_v18 = vrot.slane %v2527_v19, 1 }
 0x102   : > { %1189 = vrot.lane.b32.xlu0 %v2960_v59, %s2391_s30  ;;  %1316 = vrot.lane.b32.xlu1 %v2989_v46, %s2392_s9 }
 0x104   : > { %v696_v47 = vpop.permute.xlu1 %695  ;;  %v694_v49 = vpop.permute.xlu0 %693 }
 0x105   : > { %791 = vst.msk [vmem:[#allocation2 + $0x8] sm:$0xff] %vm789_vm6, %v696_v47  ;;  %790 = vst.msk [vmem:[#allocation2] sm:$0xff] %vm789_vm6, %v694_v49 }
 0x106   : > { %715 = vrot.lane.b32.xlu0 %v2969_v54, %s2388_s23  ;;  %842 = vrot.lane.b32.xlu1 %v3003_v1, %s2389_s24 }
 0x108   : > { %v700_v12 = vpop.permute.xlu1 %699  ;;  %v698_v37 = vpop.permute.xlu0 %697 }
 0x109   : > { %793 = vst.msk [vmem:[#allocation2 + $0x18] sm:$0xff] %vm789_vm6, %v700_v12  ;;  %792 = vst.msk [vmem:[#allocation2 + $0x10] sm:$0xff] %vm789_vm6, %v698_v37  ;;  %v3165_v12 = vld [vmem:[%s2433_s20 + $0xe8] sm:$0x3]  ;;  %v3174_v37 = vsel %vm602_vm1, %v648_v17, %v649_v18  ;;  %v3283_v17 = vld [vmem:[%s2433_s20 + $0x118] sm:$0x3] }
 0x10a   : > { %1318 = vrot.lane.b32.xlu0 %v3013_v53, %s2392_s9  ;;  %1445 = vrot.lane.b32.xlu1 %v3044_v50, %s2393_s12 }
 0x10c   : > { %v704_v59 = vpop.permute.xlu1 %703  ;;  %v702_v51 = vpop.permute.xlu0 %701 }
 0x10d   : > { %795 = vst.msk [vmem:[#allocation2 + $0x28] sm:$0xff] %vm789_vm6, %v704_v59  ;;  %794 = vst.msk [vmem:[#allocation2 + $0x20] sm:$0xff] %vm789_vm6, %v702_v51  ;;  %v3185_v59 = vsel %vm1080_vm2, %v1122_v55, %v1124_v7 }
 0x10e   : > { %844 = vrot.lane.b32.xlu0 %v3016_v16, %s2389_s24  ;;  %971 = vrot.lane.b32.xlu1 %v3058_v6, %s2390_s25 }
 0x110   : > { %v708_v52 = vpop.permute.xlu1 %707  ;;  %v706_v54 = vpop.permute.xlu0 %705 }
 0x111   : > { %797 = vst.msk [vmem:[#allocation2 + $0x38] sm:$0xff] %vm789_vm6, %v708_v52  ;;  %796 = vst.msk [vmem:[#allocation2 + $0x30] sm:$0xff] %vm789_vm6, %v706_v54 }
 0x112   : > { %1447 = vrot.lane.b32.xlu0 %v3069_v3, %s2393_s12  ;;  %973 = vrot.lane.b32.xlu1 %v3072_v45, %s2390_s25 }
 0x114   : > { %v823_v30 = vpop.permute.xlu1 %822  ;;  %v710_v23 = vpop.permute.xlu0 %709 }
 0x115   : > { %919 = vst.msk [vmem:[#allocation2] sm:$0xff] %vm918_vm7, %v823_v30 }
 0x116   : > { %798 = vst.msk [vmem:[#allocation2 + $0x40] sm:$0xff] %vm789_vm6, %v710_v23  ;;  %1191 = vrot.lane.b32.xlu0 %v2989_v46, %s2391_s30  ;;  %717 = vrot.lane.b32.xlu1 %v3003_v1, %s2388_s23  ;;  %v3101_v46 = vsel %vm1080_vm2, %v1116_v58, %v1117_v2  ;;  %v646_v1 = vrot.slane %v3106_v11, 1  ;;  %v1126_v58 = vrot.slane %v2530_v20, 2  ;;  %v1127_v2 = vrot.slane %v2527_v19, 2 }
 0x117   : > { %v654_v20 = vrot.slane %v2533_v21, 1  ;;  %v1129_v11 = vrot.slane %v3165_v12, 2 }
 0x118   : > { %v952_v57 = vpop.permute.xlu1 %951  ;;  %v825_v40 = vpop.permute.xlu0 %824  ;;  %v3129_v4 = vsel %vm602_vm1, %v644_v14, %v646_v1 }
 0x119   : > { %1048 = vst.msk [vmem:[#allocation2] sm:$0xff] %vm1047_vm8, %v952_v57 }
 0x11a   : > { %920 = vst.msk [vmem:[#allocation2 + $0x8] sm:$0xff] %vm918_vm7, %v825_v40  ;;  %1193 = vrot.lane.b32.xlu0 %v3013_v53, %s2391_s30  ;;  %1320 = vrot.lane.b32.xlu1 %v3044_v50, %s2392_s9 }
 0x11c   : > { %v1172_v48 = vpop.permute.xlu1 %1171  ;;  %v954_v60 = vpop.permute.xlu0 %953 }
 0x11d   : > { %1268 = vst.msk [vmem:[#allocation2] sm:$0xff] %vm1267_vm9, %v1172_v48 }
 0x11e   : > { %1049 = vst.msk [vmem:[#allocation2 + $0x8] sm:$0xff] %vm1047_vm8, %v954_v60  ;;  %719 = vrot.lane.b32.xlu0 %v3016_v16, %s2388_s23  ;;  %846 = vrot.lane.b32.xlu1 %v3058_v6, %s2389_s24 }
 0x120   : > { %v1301_v61 = vpop.permute.xlu1 %1300  ;;  %v1174_v63 = vpop.permute.xlu0 %1173 }
 0x121   : > { %1397 = vst.msk [vmem:[#allocation2] sm:$0xff] %vm1396_vm10, %v1301_v61  ;;  %v3224_v61 = vld [vmem:[%s2433_s20 + $0x100] sm:$0x3] }
 0x122   : > { %1269 = vst.msk [vmem:[#allocation2 + $0x8] sm:$0xff] %vm1267_vm9, %v1174_v63  ;;  %1322 = vrot.lane.b32.xlu0 %v3069_v3, %s2392_s9  ;;  %1449 = vrot.lane.b32.xlu1 %v3101_v46, %s2393_s12  ;;  %v3233_v63 = vsel %vm602_vm1, %v653_v15, %v654_v20  ;;  %v1139_v15 = vrot.slane %v3283_v17, 2 }
 0x124   : > { %v1303_v9 = vpop.permute.xlu1 %1302  ;;  %v827_v5 = vpop.permute.xlu0 %826 }
 0x125   : > { %1398 = vst.msk [vmem:[#allocation2 + $0x8] sm:$0xff] %vm1396_vm10, %v1303_v9  ;;  %v3244_v9 = vsel %vm1080_vm2, %v1127_v2, %v1129_v11 }
 0x126   : > { %921 = vst.msk [vmem:[#allocation2 + $0x10] sm:$0xff] %vm918_vm7, %v827_v5  ;;  %848 = vrot.lane.b32.xlu0 %v3072_v45, %s2389_s24  ;;  %975 = vrot.lane.b32.xlu1 %v3115_v0, %s2390_s25 }
 0x128   : > { %v829_v53 = vpop.permute.xlu1 %828  ;;  %v1430_v16 = vpop.permute.xlu0 %1429 }
 0x129   : > { %922 = vst.msk [vmem:[#allocation2 + $0x18] sm:$0xff] %vm918_vm7, %v829_v53 }
 0x12a   : > { %1526 = vst.msk [vmem:[#allocation2] sm:$0xff] %vm1525_vm11, %v1430_v16  ;;  %1451 = vrot.lane.b32.xlu0 %v3126_v38, %s2393_s12  ;;  %977 = vrot.lane.b32.xlu1 %v3129_v4, %s2390_s25 }
 0x12c   : > { %v1432_v39 = vpop.permute.xlu1 %1431  ;;  %v956_v44 = vpop.permute.xlu0 %955 }
 0x12d   : > { %1527 = vst.msk [vmem:[#allocation2 + $0x8] sm:$0xff] %vm1525_vm11, %v1432_v39 }
 0x12e   : > { %1050 = vst.msk [vmem:[#allocation2 + $0x10] sm:$0xff] %vm1047_vm8, %v956_v44  ;;  %1195 = vrot.lane.b32.xlu0 %v3044_v50, %s2391_s30  ;;  %721 = vrot.lane.b32.xlu1 %v3058_v6, %s2388_s23  ;;  %v3160_v50 = vsel %vm1080_vm2, %v1121_v36, %v1122_v55  ;;  %v651_v6 = vrot.slane %v3165_v12, 1  ;;  %v1132_v36 = vrot.slane %v2533_v21, 2 }
 0x130   : > { %v1176_v22 = vpop.permute.xlu1 %1175  ;;  %v958_v41 = vpop.permute.xlu0 %957  ;;  %v3188_v51 = vsel %vm602_vm1, %v649_v18, %v651_v6 }
 0x131   : > { %v1558_v56 = vld [vmem:[#allocation2] sm:$0xff]  ;;  %1270 = vst.msk [vmem:[#allocation2 + $0x10] sm:$0xff] %vm1267_vm9, %v1176_v22 }
 0x132   : > { %1051 = vst.msk [vmem:[#allocation2 + $0x18] sm:$0xff] %vm1047_vm8, %v958_v41  ;;  %2295 = vmatprep.mubr.msk.f32.mxu0 %vm1602_vm12, %v1558_v56  ;;  %1197 = vrot.lane.b32.xlu0 %v3069_v3, %s2391_s30  ;;  %v1131_v56 = vrot.slane %v2542_v24, 2  ;;  %v659_v24 = vrot.slane %v2545_v25, 1 }
 0x133   : > { %1324 = vrot.lane.b32.xlu1 %v3101_v46, %s2392_s9 }
 0x134   : > { %v1305_v8 = vpop.permute.xlu1 %1304  ;;  %v1178_v47 = vpop.permute.xlu0 %1177  ;;  %v1559_v49 = vld [vmem:[#allocation2 + $0x8] sm:$0xff] }
 0x135   : > { %1399 = vst.msk [vmem:[#allocation2 + $0x10] sm:$0xff] %vm1396_vm10, %v1305_v8  ;;  %2296 = vmatmul.mubr.msk.f32.vlgmr.msra.gmra.mrb[0].mxu0 %vm1602_vm12, %v1559_v49  ;;  %v658_v49 = vrot.slane %v2548_v26, 1 }
 0x136   : > { %1271 = vst.msk [vmem:[#allocation2 + $0x18] sm:$0xff] %vm1267_vm9, %v1178_v47  ;;  %723 = vrot.lane.b32.xlu0 %v3072_v45, %s2388_s23  ;;  %v3278_v47 = vsel %vm1080_vm2, %v1131_v56, %v1132_v36 }
 0x137   : > { %850 = vrot.lane.b32.xlu1 %v3115_v0, %s2389_s24  ;;  %v3292_v18 = vsel %vm602_vm1, %v658_v49, %v659_v24 }
 0x138   : > { %v1307_v43 = vpop.permute.xlu1 %1306  ;;  %v831_v13 = vpop.permute.xlu0 %830 }
 0x139   : > { %1400 = vst.msk [vmem:[#allocation2 + $0x18] sm:$0xff] %vm1396_vm10, %v1307_v43  ;;  %v1134_v43 = vrot.slane %v3224_v61, 2 }
 0x13a   : > { %923 = vst.msk [vmem:[#allocation2 + $0x20] sm:$0xff] %vm918_vm7, %v831_v13  ;;  %1326 = vrot.lane.b32.xlu0 %v3126_v38, %s2392_s9  ;;  %v661_v13 = vrot.slane %v3283_v17, 1 }
 0x13b   : > { %1453 = vrot.lane.b32.xlu1 %v3160_v50, %s2393_s12  ;;  %v3304_v6 = vsel %vm1080_vm2, %v1132_v36, %v1134_v43  ;;  %v3401_v36 = vld [vmem:[%s2433_s20 + $0x148] sm:$0x3] }
 0x13c   : > { %v833_v42 = vpop.permute.xlu1 %832  ;;  %v1434_v62 = vpop.permute.xlu0 %1433 }
 0x13d   : > { %924 = vst.msk [vmem:[#allocation2 + $0x28] sm:$0xff] %vm918_vm7, %v833_v42  ;;  %v3307_v42 = vsel %vm602_vm1, %v659_v24, %v661_v13 }
 0x13e   : > { %1528 = vst.msk [vmem:[#allocation2 + $0x10] sm:$0xff] %vm1525_vm11, %v1434_v62  ;;  %852 = vrot.lane.b32.xlu0 %v3129_v4, %s2389_s24 }
 0x13f   : > { %979 = vrot.lane.b32.xlu1 %v3174_v37, %s2390_s25 }
 0x140   : > { %v1436_v3 = vpop.permute.xlu1 %1435  ;;  %v960_v45 = vpop.permute.xlu0 %959 }
 0x141   : > { %1529 = vst.msk [vmem:[#allocation2 + $0x18] sm:$0xff] %vm1525_vm11, %v1436_v3 }
 0x142   : > { %1052 = vst.msk [vmem:[#allocation2 + $0x20] sm:$0xff] %vm1047_vm8, %v960_v45  ;;  %1455 = vrot.lane.b32.xlu0 %v3185_v59, %s2393_s12 }
 0x143   : > { %981 = vrot.lane.b32.xlu1 %v3188_v51, %s2390_s25 }
 0x144   : > { %v1180_v52 = vpop.permute.xlu1 %1179  ;;  %v962_v54 = vpop.permute.xlu0 %961 }
 0x145   : > { %v1560_v30 = vld [vmem:[#allocation2 + $0x10] sm:$0xff]  ;;  %1272 = vst.msk [vmem:[#allocation2 + $0x20] sm:$0xff] %vm1267_vm9, %v1180_v52 }
 0x146   : > { %1053 = vst.msk [vmem:[#allocation2 + $0x28] sm:$0xff] %vm1047_vm8, %v962_v54  ;;  %2298 = vmatprep.mubr.msk.f32.mxu0 %vm1602_vm12, %v1560_v30  ;;  %1199 = vrot.lane.b32.xlu0 %v3101_v46, %s2391_s30  ;;  %v3219_v46 = vsel %vm1080_vm2, %v1126_v58, %v1127_v2  ;;  %v1136_v30 = vrot.slane %v2548_v26, 2  ;;  %v663_v2 = vrot.slane %v2560_v28, 1  ;;  %v664_v26 = vrot.slane %v2557_v27, 1 }
 0x147   : > { %725 = vrot.lane.b32.xlu1 %v3115_v0, %s2388_s23  ;;  %v656_v0 = vrot.slane %v3224_v61, 1 }
 0x148   : > { %v1309_v23 = vpop.permute.xlu1 %1308  ;;  %v1182_v57 = vpop.permute.xlu0 %1181  ;;  %v1561_v40 = vld [vmem:[#allocation2 + $0x18] sm:$0xff] }
 0x149   : > { %1401 = vst.msk [vmem:[#allocation2 + $0x20] sm:$0xff] %vm1396_vm10, %v1309_v23  ;;  %2299 = vmatmul.mubr.msk.f32.gmra.mrb[2].mxu0 %vm1602_vm12, %v1561_v40  ;;  %v3247_v5 = vsel %vm602_vm1, %v654_v20, %v656_v0  ;;  %v1137_v23 = vrot.slane %v2545_v25, 2 }
 0x14a   : > { %1273 = vst.msk [vmem:[#allocation2 + $0x28] sm:$0xff] %vm1267_vm9, %v1182_v57  ;;  %1201 = vrot.lane.b32.xlu0 %v3126_v38, %s2391_s30 }
 0x14b   : > { %1328 = vrot.lane.b32.xlu1 %v3160_v50, %s2392_s9  ;;  %v3337_v58 = vsel %vm1080_vm2, %v1136_v30, %v1137_v23 }
 0x14c   : > { %v1311_v48 = vpop.permute.xlu1 %1310  ;;  %v835_v60 = vpop.permute.xlu0 %834 }
 0x14d   : > { %1402 = vst.msk [vmem:[#allocation2 + $0x28] sm:$0xff] %vm1396_vm10, %v1311_v48 }
 0x14e   : > { %925 = vst.msk [vmem:[#allocation2 + $0x30] sm:$0xff] %vm918_vm7, %v835_v60  ;;  %727 = vrot.lane.b32.xlu0 %v3129_v4, %s2388_s23  ;;  %v3342_v60 = vld [vmem:[%s2433_s20 + $0x130] sm:$0x3] }
 0x14f   : > { %854 = vrot.lane.b32.xlu1 %v3174_v37, %s2389_s24  ;;  %v666_v20 = vrot.slane %v3342_v60, 1 }
 0x150   : > { %v837_v19 = vpop.permute.xlu1 %836  ;;  %v1438_v14 = vpop.permute.xlu0 %1437 }
 0x151   : > { %926 = vst.msk [vmem:[#allocation2 + $0x38] sm:$0xff] %vm918_vm7, %v837_v19  ;;  %v3366_v11 = vsel %vm602_vm1, %v664_v26, %v666_v20 }
 0x152   : > { %1530 = vst.msk [vmem:[#allocation2 + $0x20] sm:$0xff] %vm1525_vm11, %v1438_v14  ;;  %1330 = vrot.lane.b32.xlu0 %v3185_v59, %s2392_s9 }
 0x153   : > { %1457 = vrot.lane.b32.xlu1 %v3219_v46, %s2393_s12 }
 0x154   : > { %v1440_v10 = vpop.permute.xlu1 %1439  ;;  %v964_v1 = vpop.permute.xlu0 %963 }
 0x155   : > { %1531 = vst.msk [vmem:[#allocation2 + $0x28] sm:$0xff] %vm1525_vm11, %v1440_v10 }
 0x156   : > { %1054 = vst.msk [vmem:[#allocation2 + $0x30] sm:$0xff] %vm1047_vm8, %v964_v1  ;;  %856 = vrot.lane.b32.xlu0 %v3188_v51, %s2389_s24 }
 0x157   : > { %983 = vrot.lane.b32.xlu1 %v3233_v63, %s2390_s25 }
 0x158   : > { %v966_v38 = vpop.permute.xlu0 %965  ;;  %v1184_v4 = vpop.permute.xlu1 %1183 }
 0x159   : > { %v1562_v53 = vld [vmem:[#allocation2 + $0x20] sm:$0xff]  ;;  %1055 = vst.msk [vmem:[#allocation2 + $0x38] sm:$0xff] %vm1047_vm8, %v966_v38 }
 0x15a   : > { %1274 = vst.msk [vmem:[#allocation2 + $0x30] sm:$0xff] %vm1267_vm9, %v1184_v4  ;;  %2301 = vmatprep.mubr.msk.f32.mxu0 %vm1602_vm12, %v1562_v53  ;;  %1459 = vrot.lane.b32.xlu0 %v3244_v9, %s2393_s12  ;;  %v1141_v53 = vrot.slane %v2560_v28, 2  ;;  %v669_v28 = vrot.slane %v2563_v29, 1 }
 0x15b   : > { %985 = vrot.lane.b32.xlu1 %v3247_v5, %s2390_s25 }
 0x15c   : > { %v1186_v16 = vpop.permute.xlu0 %1185  ;;  %v1313_v39 = vpop.permute.xlu1 %1312  ;;  %v1563_v44 = vld [vmem:[#allocation2 + $0x28] sm:$0xff] }
 0x15d   : > { %1275 = vst.msk [vmem:[#allocation2 + $0x38] sm:$0xff] %vm1267_vm9, %v1186_v16  ;;  %2302 = vmatmul.mubr.msk.f32.gmra.mrb[4].mxu0 %vm1602_vm12, %v1563_v44  ;;  %v1142_v16 = vrot.slane %v2557_v27, 2 }
 0x15e   : > { %1403 = vst.msk [vmem:[#allocation2 + $0x30] sm:$0xff] %vm1396_vm10, %v1313_v39  ;;  %1203 = vrot.lane.b32.xlu0 %v3160_v50, %s2391_s30 }
 0x15f   : > { %729 = vrot.lane.b32.xlu1 %v3174_v37, %s2388_s23 }
 0x160   : > { %v712_v22 = vpop.permute.xlu0 %711  ;;  %v839_v41 = vpop.permute.xlu1 %838 }
 0x161   : > { %799 = vst.msk [vmem:[#allocation2 + $0x48] sm:$0xff] %vm789_vm6, %v712_v22  ;;  %v3396_v22 = vsel %vm1080_vm2, %v1141_v53, %v1142_v16 }
 0x162   : > { %927 = vst.msk [vmem:[#allocation2 + $0x40] sm:$0xff] %vm918_vm7, %v839_v41  ;;  %1205 = vrot.lane.b32.xlu0 %v3185_v59, %s2391_s30  ;;  %v668_v41 = vrot.slane %v2581_v31, 1 }
 0x163   : > { %1332 = vrot.lane.b32.xlu1 %v3219_v46, %s2392_s9 }
 0x164   : > { %v1315_v55 = vpop.permute.xlu0 %1314  ;;  %v1442_v8 = vpop.permute.xlu1 %1441 }
 0x165   : > { %1404 = vst.msk [vmem:[#allocation2 + $0x38] sm:$0xff] %vm1396_vm10, %v1315_v55  ;;  %v3410_v55 = vsel %vm602_vm1, %v668_v41, %v669_v28 }
 0x166   : > { %1532 = vst.msk [vmem:[#allocation2 + $0x30] sm:$0xff] %vm1525_vm11, %v1442_v8  ;;  %731 = vrot.lane.b32.xlu0 %v3188_v51, %s2388_s23  ;;  %v1144_v8 = vrot.slane %v3342_v60, 2 }
 0x167   : > { %858 = vrot.lane.b32.xlu1 %v3233_v63, %s2389_s24 }
 0x168   : > { %v841_v21 = vpop.permute.xlu0 %840  ;;  %v968_v50 = vpop.permute.xlu1 %967 }
 0x169   : > { %928 = vst.msk [vmem:[#allocation2 + $0x48] sm:$0xff] %vm918_vm7, %v841_v21 }
 0x16a   : > { %1056 = vst.msk [vmem:[#allocation2 + $0x40] sm:$0xff] %vm1047_vm8, %v968_v50  ;;  %1334 = vrot.lane.b32.xlu0 %v3244_v9, %s2392_s9  ;;  %v3422_v50 = vsel %vm1080_vm2, %v1142_v16, %v1144_v8 }
 0x16b   : > { %1461 = vrot.lane.b32.xlu1 %v3278_v47, %s2393_s12 }
 0x16c   : > { %v1444_v12 = vpop.permute.xlu0 %1443  ;;  %v970_v37 = vpop.permute.xlu1 %969 }
 0x16d   : > { %v1564_v7 = vld [vmem:[#allocation2 + $0x30] sm:$0xff]  ;;  %1533 = vst.msk [vmem:[#allocation2 + $0x38] sm:$0xff] %vm1525_vm11, %v1444_v12 }
 0x16e   : > { %1057 = vst.msk [vmem:[#allocation2 + $0x48] sm:$0xff] %vm1047_vm8, %v970_v37  ;;  %2304 = vmatprep.mubr.msk.f32.mxu0 %vm1602_vm12, %v1564_v7  ;;  %860 = vrot.lane.b32.xlu0 %v3247_v5, %s2389_s24 }
 0x16f   : > { %987 = vrot.lane.b32.xlu1 %v3292_v18, %s2390_s25 }
 0x170   : > { %v1188_v62 = vpop.permute.xlu0 %1187  ;;  %v714_v59 = vpop.permute.xlu1 %713 }
 0x171   : > { %1276 = vst.msk [vmem:[#allocation2 + $0x40] sm:$0xff] %vm1267_vm9, %v1188_v62  ;;  %v1147_v62 = vrot.slane %v2563_v29, 2 }
 0x172   : > { %800 = vst.msk [vmem:[#allocation2 + $0x50] sm:$0xff] %vm789_vm6, %v714_v59  ;;  %1463 = vrot.lane.b32.xlu0 %v3304_v6, %s2393_s12 }
 0x173   : > { %989 = vrot.lane.b32.xlu1 %v3307_v42, %s2390_s25 }
 0x174   : > { %v1190_v51 = vpop.permute.xlu0 %1189  ;;  %v1317_v3 = vpop.permute.xlu1 %1316  ;;  %v1565_v45 = vld [vmem:[#allocation2 + $0x38] sm:$0xff] }
 0x175   : > { %1277 = vst.msk [vmem:[#allocation2 + $0x48] sm:$0xff] %vm1267_vm9, %v1190_v51  ;;  %2305 = vmatmul.mubr.msk.f32.gmra.mrb[6].mxu0 %vm1602_vm12, %v1565_v45  ;;  %v673_v45 = vrot.slane %v2593_v33, 1 }
 0x176   : > { %1405 = vst.msk [vmem:[#allocation2 + $0x40] sm:$0xff] %vm1396_vm10, %v1317_v3  ;;  %1207 = vrot.lane.b32.xlu0 %v3219_v46, %s2391_s30  ;;  %v3351_v46 = vsel %vm602_vm1, %v663_v2, %v664_v26 }
 0x177   : > { %733 = vrot.lane.b32.xlu1 %v3233_v63, %s2388_s23  ;;  %v3363_v63 = vsel %vm1080_vm2, %v1137_v23, %v1139_v15  ;;  %v1149_v23 = vrot.slane %v3401_v36, 2 }
 0x178   : > { %v716_v52 = vpop.permute.xlu0 %715  ;;  %v843_v54 = vpop.permute.xlu1 %842 }
 0x179   : > { %801 = vst.msk [vmem:[#allocation2 + $0x58] sm:$0xff] %vm789_vm6, %v716_v52  ;;  %v3481_v26 = vsel %vm1080_vm2, %v1147_v62, %v1149_v23 }
 0x17a   : > { %929 = vst.msk [vmem:[#allocation2 + $0x50] sm:$0xff] %vm918_vm7, %v843_v54  ;;  %1209 = vrot.lane.b32.xlu0 %v3244_v9, %s2391_s30  ;;  %v3460_v54 = vld [vmem:[%s2433_s20 + $0x160] sm:$0x3] }
 0x17b   : > { %1336 = vrot.lane.b32.xlu1 %v3278_v47, %s2392_s9 }
 0x17c   : > { %v1319_v57 = vpop.permute.xlu0 %1318  ;;  %v1446_v40 = vpop.permute.xlu1 %1445 }
 0x17d   : > { %1406 = vst.msk [vmem:[#allocation2 + $0x48] sm:$0xff] %vm1396_vm10, %v1319_v57  ;;  %v676_v57 = vrot.slane %v3460_v54, 1 }
 0x17e   : > { %1534 = vst.msk [vmem:[#allocation2 + $0x40] sm:$0xff] %vm1525_vm11, %v1446_v40  ;;  %735 = vrot.lane.b32.xlu0 %v3247_v5, %s2388_s23 }
 0x17f   : > { %862 = vrot.lane.b32.xlu1 %v3292_v18, %s2389_s24 }
 0x180   : > { %v845_v25 = vpop.permute.xlu0 %844  ;;  %v972_v48 = vpop.permute.xlu1 %971 }
 0x181   : > { %930 = vst.msk [vmem:[#allocation2 + $0x58] sm:$0xff] %vm918_vm7, %v845_v25 }
 0x182   : > { %1058 = vst.msk [vmem:[#allocation2 + $0x50] sm:$0xff] %vm1047_vm8, %v972_v48  ;;  %1338 = vrot.lane.b32.xlu0 %v3304_v6, %s2392_s9 }
 0x183   : > { %1465 = vrot.lane.b32.xlu1 %v3337_v58, %s2393_s12 }
 0x184   : > { %v1448_v19 = vpop.permute.xlu0 %1447  ;;  %v974_v14 = vpop.permute.xlu1 %973 }
 0x185   : > { %v1566_v61 = vld [vmem:[#allocation2 + $0x40] sm:$0xff]  ;;  %1535 = vst.msk [vmem:[#allocation2 + $0x48] sm:$0xff] %vm1525_vm11, %v1448_v19 }
 0x186   : > { %1059 = vst.msk [vmem:[#allocation2 + $0x58] sm:$0xff] %vm1047_vm8, %v974_v14  ;;  %2307 = vmatprep.mubr.msk.f32.mxu0 %vm1602_vm12, %v1566_v61  ;;  %864 = vrot.lane.b32.xlu0 %v3307_v42, %s2389_s24  ;;  %v1151_v61 = vrot.slane %v2593_v33, 2  ;;  %v679_v33 = vrot.slane %v2596_v34, 1 }
 0x187   : > { %991 = vrot.lane.b32.xlu1 %v3351_v46, %s2390_s25 }
 0x188   : > { %v1192_v0 = vpop.permute.xlu0 %1191  ;;  %v718_v10 = vpop.permute.xlu1 %717 }
 0x189   : > { %1278 = vst.msk [vmem:[#allocation2 + $0x50] sm:$0xff] %vm1267_vm9, %v1192_v0 }
 0x18a   : > { %802 = vst.msk [vmem:[#allocation2 + $0x60] sm:$0xff] %vm789_vm6, %v718_v10  ;;  %1467 = vrot.lane.b32.xlu0 %v3363_v63, %s2393_s12 }
 0x18b   : > { %993 = vrot.lane.b32.xlu1 %v3366_v11, %s2390_s25 }
 0x18c   : > { %v1194_v1 = vpop.permute.xlu0 %1193  ;;  %v1321_v9 = vpop.permute.xlu1 %1320  ;;  %v1567_v5 = vld [vmem:[#allocation2 + $0x48] sm:$0xff] }
 0x18d   : > { %1279 = vst.msk [vmem:[#allocation2 + $0x58] sm:$0xff] %vm1267_vm9, %v1194_v1  ;;  %2308 = vmatmul.mubr.msk.f32.gmra.mrb[8].mxu0 %vm1602_vm12, %v1567_v5  ;;  %v678_v1 = vrot.slane %v2599_v35, 1  ;;  %v3519_v5 = vld [vmem:[%s2433_s20 + $0x178] sm:$0x3] }
 0x18e   : > { %1407 = vst.msk [vmem:[#allocation2 + $0x50] sm:$0xff] %vm1396_vm10, %v1321_v9  ;;  %1211 = vrot.lane.b32.xlu0 %v3278_v47, %s2391_s30  ;;  %v671_v47 = vrot.slane %v3401_v36, 1  ;;  %v681_v53 = vrot.slane %v3519_v5, 1 }
 0x18f   : > { %737 = vrot.lane.b32.xlu1 %v3292_v18, %s2388_s23 }
 0x190   : > { %v720_v38 = vpop.permute.xlu0 %719  ;;  %v847_v4 = vpop.permute.xlu1 %846  ;;  %v3425_v17 = vsel %vm602_vm1, %v669_v28, %v671_v47  ;;  %v3543_v41 = vsel %vm602_vm1, %v679_v33, %v681_v53 }
 0x191   : > { %803 = vst.msk [vmem:[#allocation2 + $0x68] sm:$0xff] %vm789_vm6, %v720_v38  ;;  %v3528_v38 = vsel %vm602_vm1, %v678_v1, %v679_v33 }
 0x192   : > { %931 = vst.msk [vmem:[#allocation2 + $0x60] sm:$0xff] %vm918_vm7, %v847_v4  ;;  %1213 = vrot.lane.b32.xlu0 %v3304_v6, %s2391_s30  ;;  %v1154_v4 = vrot.slane %v3460_v54, 2 }
 0x193   : > { %1340 = vrot.lane.b32.xlu1 %v3337_v58, %s2392_s9 }
 0x194   : > { %v1323_v39 = vpop.permute.xlu0 %1322  ;;  %v1450_v44 = vpop.permute.xlu1 %1449 }
 0x195   : > { %1408 = vst.msk [vmem:[#allocation2 + $0x58] sm:$0xff] %vm1396_vm10, %v1323_v39 }
 0x196   : > { %1536 = vst.msk [vmem:[#allocation2 + $0x50] sm:$0xff] %vm1525_vm11, %v1450_v44  ;;  %739 = vrot.lane.b32.xlu0 %v3307_v42, %s2388_s23  ;;  %v1146_v42 = vrot.slane %v2581_v31, 2  ;;  %v674_v31 = vrot.slane %v2584_v32, 1 }
 0x197   : > { %866 = vrot.lane.b32.xlu1 %v3351_v46, %s2389_s24 }
 0x198   : > { %v849_v27 = vpop.permute.xlu0 %848  ;;  %v976_v56 = vpop.permute.xlu1 %975  ;;  %v3455_v3 = vsel %vm1080_vm2, %v1146_v42, %v1147_v62  ;;  %v3469_v30 = vsel %vm602_vm1, %v673_v45, %v674_v31  ;;  %v3484_v25 = vsel %vm602_vm1, %v674_v31, %v676_v57 }
 0x199   : > { %932 = vst.msk [vmem:[#allocation2 + $0x68] sm:$0xff] %vm918_vm7, %v849_v27 }
 0x19a   : > { %1060 = vst.msk [vmem:[#allocation2 + $0x60] sm:$0xff] %vm1047_vm8, %v976_v56  ;;  %1342 = vrot.lane.b32.xlu0 %v3363_v63, %s2392_s9 }
 0x19b   : > { %1469 = vrot.lane.b32.xlu1 %v3396_v22, %s2393_s12 }
 0x19c   : > { %v1452_v49 = vpop.permute.xlu0 %1451  ;;  %v978_v24 = vpop.permute.xlu1 %977 }
 0x19d   : > { %v1568_v21 = vld [vmem:[#allocation2 + $0x50] sm:$0xff]  ;;  %1537 = vst.msk [vmem:[#allocation2 + $0x58] sm:$0xff] %vm1525_vm11, %v1452_v49  ;;  %v1156_v49 = vrot.slane %v2599_v35, 2 }
 0x19e   : > { %1061 = vst.msk [vmem:[#allocation2 + $0x68] sm:$0xff] %vm1047_vm8, %v978_v24  ;;  %2310 = vmatprep.mubr.msk.f32.mxu0 %vm1602_vm12, %v1568_v21  ;;  %868 = vrot.lane.b32.xlu0 %v3366_v11, %s2389_s24  ;;  %v1157_v24 = vrot.slane %v2596_v34, 2 }
 0x19f   : > { %995 = vrot.lane.b32.xlu1 %v3410_v55, %s2390_s25 }
 0x1a0   : > { %v1196_v18 = vpop.permute.xlu0 %1195  ;;  %v722_v43 = vpop.permute.xlu1 %721  ;;  %v3578_v34 = vsel %vm1080_vm2, %v1156_v49, %v1157_v24 }
 0x1a1   : > { %1280 = vst.msk [vmem:[#allocation2 + $0x60] sm:$0xff] %vm1267_vm9, %v1196_v18 }
 0x1a2   : > { %804 = vst.msk [vmem:[#allocation2 + $0x70] sm:$0xff] %vm789_vm6, %v722_v43  ;;  %1471 = vrot.lane.b32.xlu0 %v3422_v50, %s2393_s12  ;;  %v2375_v43 = vld [vmem:[%s2433_s20 + $0x180] sm:$0xff] }
 0x1a3   : > { %997 = vrot.lane.b32.xlu1 %v3425_v17, %s2390_s25  ;;  %v683_v35 = vrot.slane %v2375_v43, 1 }
 0x1a4   : > { %v1198_v13 = vpop.permute.xlu0 %1197  ;;  %v1569_v37 = vld [vmem:[#allocation2 + $0x58] sm:$0xff] }
 0x1a5   : > { %v1325_v12 = vpop.permute.xlu1 %1324  ;;  %1281 = vst.msk [vmem:[#allocation2 + $0x68] sm:$0xff] %vm1267_vm9, %v1198_v13  ;;  %2311 = vmatmul.mubr.msk.f32.gmra.mrb[10].mxu0 %vm1602_vm12, %v1569_v37  ;;  %v3581_v37 = vld [vmem:[%s2433_s20 + $0x190] sm:$0x3] }
 0x1a6   : > { %1409 = vst.msk [vmem:[#allocation2 + $0x60] sm:$0xff] %vm1396_vm10, %v1325_v12  ;;  %1215 = vrot.lane.b32.xlu0 %v3337_v58, %s2391_s30  ;;  %v686_v42 = vrot.slane %v3581_v37, 1 }
 0x1a7   : > { %741 = vrot.lane.b32.xlu1 %v3351_v46, %s2388_s23 }
 0x1a8   : > { %v724_v7 = vpop.permute.xlu0 %723 }
 0x1a9   : > { %v851_v6 = vpop.permute.xlu1 %850  ;;  %805 = vst.msk [vmem:[#allocation2 + $0x78] sm:$0xff] %vm789_vm6, %v724_v7 }
 0x1aa   : > { %933 = vst.msk [vmem:[#allocation2 + $0x70] sm:$0xff] %vm918_vm7, %v851_v6  ;;  %1217 = vrot.lane.b32.xlu0 %v3363_v63, %s2391_s30  ;;  %v1152_v63 = vrot.slane %v2584_v32, 2  ;;  %v1159_v6 = vrot.slane %v3519_v5, 2 }
 0x1ab   : > { %1344 = vrot.lane.b32.xlu1 %v3396_v22, %s2392_s9 }
 0x1ac   : > { %v1327_v59 = vpop.permute.xlu0 %1326  ;;  %v3514_v10 = vsel %vm1080_vm2, %v1151_v61, %v1152_v63 }
 0x1ad   : > { %v1454_v51 = vpop.permute.xlu1 %1453  ;;  %1410 = vst.msk [vmem:[#allocation2 + $0x68] sm:$0xff] %vm1396_vm10, %v1327_v59 }
 0x1ae   : > { %1538 = vst.msk [vmem:[#allocation2 + $0x60] sm:$0xff] %vm1525_vm11, %v1454_v51  ;;  %743 = vrot.lane.b32.xlu0 %v3366_v11, %s2388_s23 }
 0x1af   : > { %870 = vrot.lane.b32.xlu1 %v3410_v55, %s2389_s24 }
 0x1b0   : > { %v853_v29 = vpop.permute.xlu0 %852 }
 0x1b1   : > { %v980_v52 = vpop.permute.xlu1 %979  ;;  %934 = vst.msk [vmem:[#allocation2 + $0x78] sm:$0xff] %vm918_vm7, %v853_v29 }
 0x1b2   : > { %1062 = vst.msk [vmem:[#allocation2 + $0x70] sm:$0xff] %vm1047_vm8, %v980_v52  ;;  %1346 = vrot.lane.b32.xlu0 %v3422_v50, %s2392_s9 }
 0x1b3   : > { %1473 = vrot.lane.b32.xlu1 %v3455_v3, %s2393_s12 }
 0x1b4   : > { %v1456_v40 = vpop.permute.xlu0 %1455 }
 0x1b5   : > { %v982_v58 = vpop.permute.xlu1 %981  ;;  %v1570_v2 = vld [vmem:[#allocation2 + $0x60] sm:$0xff]  ;;  %1539 = vst.msk [vmem:[#allocation2 + $0x68] sm:$0xff] %vm1525_vm11, %v1456_v40 }
 0x1b6   : > { %1063 = vst.msk [vmem:[#allocation2 + $0x78] sm:$0xff] %vm1047_vm8, %v982_v58  ;;  %2313 = vmatprep.mubr.msk.f32.mxu0 %vm1602_vm12, %v1570_v2  ;;  %872 = vrot.lane.b32.xlu0 %v3425_v17, %s2389_s24  ;;  %v1161_v58 = vrot.slane %v2375_v43, 2 }
 0x1b7   : > { %999 = vrot.lane.b32.xlu1 %v3469_v30, %s2390_s25 }
 0x1b8   : > { %v1200_v48 = vpop.permute.xlu0 %1199 }
 0x1b9   : > { %v726_v60 = vpop.permute.xlu1 %725  ;;  %1282 = vst.msk [vmem:[#allocation2 + $0x70] sm:$0xff] %vm1267_vm9, %v1200_v48 }
 0x1ba   : > { %806 = vst.msk [vmem:[#allocation2 + $0x80] sm:$0xff] %vm789_vm6, %v726_v60  ;;  %1475 = vrot.lane.b32.xlu0 %v3481_v26, %s2393_s12  ;;  %v2377_v60 = vld [vmem:[%s2433_s20 + $0x198] sm:$0xff] }
 0x1bb   : > { %1001 = vrot.lane.b32.xlu1 %v3484_v25, %s2390_s25 }
 0x1bc   : > { %v1202_v46 = vpop.permute.xlu0 %1201  ;;  %v1571_v20 = vld [vmem:[#allocation2 + $0x68] sm:$0xff] }
 0x1bd   : > { %v1329_v15 = vpop.permute.xlu1 %1328  ;;  %1283 = vst.msk [vmem:[#allocation2 + $0x78] sm:$0xff] %vm1267_vm9, %v1202_v46  ;;  %2314 = vmatmul.mubr.msk.f32.gmra.mrb[12].mxu0 %vm1602_vm12, %v1571_v20  ;;  %v688_v46 = vrot.slane %v2377_v60, 1 }
 0x1be   : > { %1411 = vst.msk [vmem:[#allocation2 + $0x70] sm:$0xff] %vm1396_vm10, %v1329_v15  ;;  %1219 = vrot.lane.b32.xlu0 %v3396_v22, %s2391_s30  ;;  %v3540_v22 = vsel %vm1080_vm2, %v1152_v63, %v1154_v4  ;;  %v1164_v63 = vrot.slane %v3581_v37, 2 }
 0x1bf   : > { %745 = vrot.lane.b32.xlu1 %v3410_v55, %s2388_s23 }
 0x1c0   : > { %v728_v19 = vpop.permute.xlu0 %727 }
 0x1c1   : > { %v855_v14 = vpop.permute.xlu1 %854  ;;  %807 = vst.msk [vmem:[#allocation2 + $0x88] sm:$0xff] %vm789_vm6, %v728_v19 }
 0x1c2   : > { %935 = vst.msk [vmem:[#allocation2 + $0x80] sm:$0xff] %vm918_vm7, %v855_v14  ;;  %1221 = vrot.lane.b32.xlu0 %v3422_v50, %s2391_s30  ;;  %v256_v14 = vld [vmem:[%s2433_s20 + $0x1a8] sm:$0x3] }
 0x1c3   : > { %1348 = vrot.lane.b32.xlu1 %v3455_v3, %s2392_s9 }
 0x1c4   : > { %v1331_v11 = vpop.permute.xlu0 %1330 }
 0x1c5   : > { %v1458_v0 = vpop.permute.xlu1 %1457  ;;  %1412 = vst.msk [vmem:[#allocation2 + $0x78] sm:$0xff] %vm1396_vm10, %v1331_v11  ;;  %v691_v11 = vrot.slane %v256_v14, 1 }
 0x1c6   : > { %1540 = vst.msk [vmem:[#allocation2 + $0x70] sm:$0xff] %vm1525_vm11, %v1458_v0  ;;  %747 = vrot.lane.b32.xlu0 %v3425_v17, %s2388_s23  ;;  %v3573_v17 = vld [vmem:[%s2433_s20 + $0x188] sm:$0xff] }
 0x1c7   : > { %874 = vrot.lane.b32.xlu1 %v3469_v30, %s2389_s24  ;;  %v684_v18 = vrot.slane %v3573_v17, 1  ;;  %v1162_v40 = vrot.slane %v3573_v17, 2 }
 0x1c8   : > { %v857_v32 = vpop.permute.xlu0 %856 }
 0x1c9   : > { %v984_v9 = vpop.permute.xlu1 %983  ;;  %936 = vst.msk [vmem:[#allocation2 + $0x88] sm:$0xff] %vm918_vm7, %v857_v32  ;;  %v685_v7 = vsel %vm602_vm1, %v683_v35, %v684_v18  ;;  %v687_v45 = vsel %vm602_vm1, %v684_v18, %v686_v42  ;;  %v1163_v15 = vsel %vm1080_vm2, %v1161_v58, %v1162_v40  ;;  %v1165_v33 = vsel %vm1080_vm2, %v1162_v40, %v1164_v63 }
 0x1ca   : > { %1064 = vst.msk [vmem:[#allocation2 + $0x80] sm:$0xff] %vm1047_vm8, %v984_v9  ;;  %1350 = vrot.lane.b32.xlu0 %v3481_v26, %s2392_s9 }
 0x1cb   : > { %1477 = vrot.lane.b32.xlu1 %v3514_v10, %s2393_s12 }
 0x1cc   : > { %v1460_v16 = vpop.permute.xlu0 %1459 }
 0x1cd   : > { %v986_v39 = vpop.permute.xlu1 %985  ;;  %v1572_v44 = vld [vmem:[#allocation2 + $0x70] sm:$0xff]  ;;  %1541 = vst.msk [vmem:[#allocation2 + $0x78] sm:$0xff] %vm1525_vm11, %v1460_v16  ;;  %v3658_v16 = vld [vmem:[%s3849_s2] ss:$0 sm:$0xff] }
 0x1ce   : > { %1065 = vst.msk [vmem:[#allocation2 + $0x88] sm:$0xff] %vm1047_vm8, %v986_v39  ;;  %2316 = vmatprep.mubr.msk.f32.mxu0 %vm1602_vm12, %v1572_v44  ;;  %876 = vrot.lane.b32.xlu0 %v3484_v25, %s2389_s24  ;;  %v1166_v44 = vrot.slane %v2377_v60, 2 }
 0x1cf   : > { %1003 = vrot.lane.b32.xlu1 %v3528_v38, %s2390_s25 }
 0x1d0   : > { %v1204_v28 = vpop.permute.xlu0 %1203 }
 0x1d1   : > { %v730_v27 = vpop.permute.xlu1 %729  ;;  %1284 = vst.msk [vmem:[#allocation2 + $0x80] sm:$0xff] %vm1267_vm9, %v1204_v28 }
 0x1d2   : > { %808 = vst.msk [vmem:[#allocation2 + $0x90] sm:$0xff] %vm789_vm6, %v730_v27  ;;  %1479 = vrot.lane.b32.xlu0 %v3540_v22, %s2393_s12 }
 0x1d3   : > { %1005 = vrot.lane.b32.xlu1 %v3543_v41, %s2390_s25 }
 0x1d4   : > { %v1206_v56 = vpop.permute.xlu0 %1205  ;;  %v1573_v55 = vld [vmem:[#allocation2 + $0x78] sm:$0xff] }
 0x1d5   : > { %v1333_v36 = vpop.permute.xlu1 %1332  ;;  %1285 = vst.msk [vmem:[#allocation2 + $0x88] sm:$0xff] %vm1267_vm9, %v1206_v56  ;;  %2317 = vmatmul.mubr.msk.f32.gmra.mrb[14].mxu0 %vm1602_vm12, %v1573_v55 }
 0x1d6   : > { %1413 = vst.msk [vmem:[#allocation2 + $0x80] sm:$0xff] %vm1396_vm10, %v1333_v36  ;;  %1223 = vrot.lane.b32.xlu0 %v3455_v3, %s2391_s30  ;;  %v3599_v3 = vsel %vm1080_vm2, %v1157_v24, %v1159_v6 }
 0x1d7   : > { %749 = vrot.lane.b32.xlu1 %v3469_v30, %s2388_s23 }
 0x1d8   : > { %v732_v8 = vpop.permute.xlu0 %731 }
 0x1d9   : > { %v859_v47 = vpop.permute.xlu1 %858  ;;  %809 = vst.msk [vmem:[#allocation2 + $0x98] sm:$0xff] %vm789_vm6, %v732_v8 }
 0x1da   : > { %937 = vst.msk [vmem:[#allocation2 + $0x90] sm:$0xff] %vm918_vm7, %v859_v47  ;;  %1225 = vrot.lane.b32.xlu0 %v3481_v26, %s2391_s30 }
 0x1db   : > { %1352 = vrot.lane.b32.xlu1 %v3514_v10, %s2392_s9 }
 0x1dc   : > { %v1335_v21 = vpop.permute.xlu0 %1334 }
 0x1dd   : > { %v1462_v50 = vpop.permute.xlu1 %1461  ;;  %1414 = vst.msk [vmem:[#allocation2 + $0x88] sm:$0xff] %vm1396_vm10, %v1335_v21 }
 0x1de   : > { %1542 = vst.msk [vmem:[#allocation2 + $0x80] sm:$0xff] %vm1525_vm11, %v1462_v50  ;;  %751 = vrot.lane.b32.xlu0 %v3484_v25, %s2388_s23  ;;  %v2376_v25 = vld [vmem:[%s2433_s20 + $0x1a0] sm:$0xff] }
 0x1df   : > { %878 = vrot.lane.b32.xlu1 %v3528_v38, %s2389_s24  ;;  %v689_v48 = vrot.slane %v2376_v25, 1  ;;  %v1167_v39 = vrot.slane %v2376_v25, 2 }
 0x1e0   : > { %v861_v13 = vpop.permute.xlu0 %860 }
 0x1e1   : > { %v988_v12 = vpop.permute.xlu1 %987  ;;  %938 = vst.msk [vmem:[#allocation2 + $0x98] sm:$0xff] %vm918_vm7, %v861_v13  ;;  %v690_v61 = vsel %vm602_vm1, %v688_v46, %v689_v48  ;;  %v692_v32 = vsel %vm602_vm1, %v689_v48, %v691_v11  ;;  %v1168_v47 = vsel %vm1080_vm2, %v1166_v44, %v1167_v39 }
 0x1e2   : > { %1066 = vst.msk [vmem:[#allocation2 + $0x90] sm:$0xff] %vm1047_vm8, %v988_v12  ;;  %1354 = vrot.lane.b32.xlu0 %v3540_v22, %s2392_s9 }
 0x1e3   : > { %1481 = vrot.lane.b32.xlu1 %v3578_v34, %s2393_s12 }
 0x1e4   : > { %v1464_v62 = vpop.permute.xlu0 %1463 }
 0x1e5   : > { %v990_v59 = vpop.permute.xlu1 %989  ;;  %v1574_v51 = vld [vmem:[#allocation2 + $0x80] sm:$0xff]  ;;  %1543 = vst.msk [vmem:[#allocation2 + $0x88] sm:$0xff] %vm1525_vm11, %v1464_v62 }
 0x1e6   : > { %1067 = vst.msk [vmem:[#allocation2 + $0x98] sm:$0xff] %vm1047_vm8, %v990_v59  ;;  %2319 = vmatprep.mubr.msk.f32.mxu1 %vm1602_vm12, %v1574_v51  ;;  %880 = vrot.lane.b32.xlu0 %v3543_v41, %s2389_s24 }
 0x1e7   : > { %1007 = vrot.lane.b32.xlu1 %v685_v7, %s2390_s25 }
 0x1e8   : > { %v1208_v31 = vpop.permute.xlu0 %1207 }
 0x1e9   : > { %v734_v29 = vpop.permute.xlu1 %733  ;;  %1286 = vst.msk [vmem:[#allocation2 + $0x90] sm:$0xff] %vm1267_vm9, %v1208_v31 }
 0x1ea   : > { %810 = vst.msk [vmem:[#allocation2 + $0xa0] sm:$0xff] %vm789_vm6, %v734_v29  ;;  %1483 = vrot.lane.b32.xlu0 %v3599_v3, %s2393_s12 }
 0x1eb   : > { %1009 = vrot.lane.b32.xlu1 %v687_v45, %s2390_s25 }
 0x1ec   : > { %v1210_v52 = vpop.permute.xlu0 %1209  ;;  %v1575_v30 = vld [vmem:[#allocation2 + $0x88] sm:$0xff] }
 0x1ed   : > { %v1337_v54 = vpop.permute.xlu1 %1336  ;;  %1287 = vst.msk [vmem:[#allocation2 + $0x98] sm:$0xff] %vm1267_vm9, %v1210_v52  ;;  %2320 = vmatmul.mubr.msk.f32.vlgmr.msra.gmra.mrb[0].mxu1 %vm1602_vm12, %v1575_v30 }
 0x1ee   : > { %1415 = vst.msk [vmem:[#allocation2 + $0x90] sm:$0xff] %vm1396_vm10, %v1337_v54  ;;  %1227 = vrot.lane.b32.xlu0 %v3514_v10, %s2391_s30 }
 0x1ef   : > { %753 = vrot.lane.b32.xlu1 %v3528_v38, %s2388_s23 }
 0x1f0   : > { %v736_v23 = vpop.permute.xlu0 %735 }
 0x1f1   : > { %v863_v57 = vpop.permute.xlu1 %862  ;;  %811 = vst.msk [vmem:[#allocation2 + $0xa8] sm:$0xff] %vm789_vm6, %v736_v23 }
 0x1f2   : > { %939 = vst.msk [vmem:[#allocation2 + $0xa0] sm:$0xff] %vm918_vm7, %v863_v57  ;;  %1229 = vrot.lane.b32.xlu0 %v3540_v22, %s2391_s30  ;;  %v1169_v22 = vrot.slane %v256_v14, 2 }
 0x1f3   : > { %1356 = vrot.lane.b32.xlu1 %v3578_v34, %s2392_s9 }
 0x1f4   : > { %v1339_v2 = vpop.permute.xlu0 %1338  ;;  %v1170_v49 = vsel %vm1080_vm2, %v1167_v39, %v1169_v22 }
 0x1f5   : > { %v1466_v26 = vpop.permute.xlu1 %1465  ;;  %1416 = vst.msk [vmem:[#allocation2 + $0x98] sm:$0xff] %vm1396_vm10, %v1339_v2 }
 0x1f6   : > { %1544 = vst.msk [vmem:[#allocation2 + $0x90] sm:$0xff] %vm1525_vm11, %v1466_v26  ;;  %755 = vrot.lane.b32.xlu0 %v3543_v41, %s2388_s23 }
 0x1f7   : > { %882 = vrot.lane.b32.xlu1 %v685_v7, %s2389_s24 }
 0x1f8   : > { %v865_v20 = vpop.permute.xlu0 %864 }
 0x1f9   : > { %v992_v19 = vpop.permute.xlu1 %991  ;;  %940 = vst.msk [vmem:[#allocation2 + $0xa8] sm:$0xff] %vm918_vm7, %v865_v20 }
 0x1fa   : > { %1068 = vst.msk [vmem:[#allocation2 + $0xa0] sm:$0xff] %vm1047_vm8, %v992_v19  ;;  %1358 = vrot.lane.b32.xlu0 %v3599_v3, %s2392_s9 }
 0x1fb   : > { %1485 = vrot.lane.b32.xlu1 %v1163_v15, %s2393_s12 }
 0x1fc   : > { %v1468_v0 = vpop.permute.xlu0 %1467 }
 0x1fd   : > { %v994_v10 = vpop.permute.xlu1 %993  ;;  %v1576_v1 = vld [vmem:[#allocation2 + $0x90] sm:$0xff]  ;;  %1545 = vst.msk [vmem:[#allocation2 + $0x98] sm:$0xff] %vm1525_vm11, %v1468_v0 }
 0x1fe   : > { %1069 = vst.msk [vmem:[#allocation2 + $0xa8] sm:$0xff] %vm1047_vm8, %v994_v10  ;;  %2322 = vmatprep.mubr.msk.f32.mxu1 %vm1602_vm12, %v1576_v1  ;;  %884 = vrot.lane.b32.xlu0 %v687_v45, %s2389_s24 }
 0x1ff   : > { %1011 = vrot.lane.b32.xlu1 %v690_v61, %s2390_s25 }
 0x200   : > { %v1212_v9 = vpop.permute.xlu0 %1211 }
 0x201   : > { %v738_v5 = vpop.permute.xlu1 %737  ;;  %1288 = vst.msk [vmem:[#allocation2 + $0xa0] sm:$0xff] %vm1267_vm9, %v1212_v9 }
 0x202   : > { %812 = vst.msk [vmem:[#allocation2 + $0xb0] sm:$0xff] %vm789_vm6, %v738_v5  ;;  %1487 = vrot.lane.b32.xlu0 %v1165_v33, %s2393_s12 }
 0x203   : > { %1013 = vrot.lane.b32.xlu1 %v692_v32, %s2390_s25 }
 0x204   : > { %v1214_v38 = vpop.permute.xlu0 %1213  ;;  %v1577_v53 = vld [vmem:[#allocation2 + $0x98] sm:$0xff] }
 0x205   : > { %v1341_v4 = vpop.permute.xlu1 %1340  ;;  %1289 = vst.msk [vmem:[#allocation2 + $0xa8] sm:$0xff] %vm1267_vm9, %v1214_v38  ;;  %2323 = vmatmul.mubr.msk.f32.gmra.mrb[2].mxu1 %vm1602_vm12, %v1577_v53 }
 0x206   : > { %1417 = vst.msk [vmem:[#allocation2 + $0xa0] sm:$0xff] %vm1396_vm10, %v1341_v4  ;;  %1231 = vrot.lane.b32.xlu0 %v3578_v34, %s2391_s30 }
 0x207   : > { %1233 = vrot.lane.b32.xlu1 %v3599_v3, %s2391_s30 }
 0x208   : > { %v740_v41 = vpop.permute.xlu0 %739  ;;  %v2297_v28 = vpop.f32.mrb[0].mxu0 }
 0x209   : > { %813 = vst.msk [vmem:[#allocation2 + $0xb8] sm:$0xff] %vm789_vm6, %v740_v41  ;;  %v1775_v27 = vadd.f32 %v2297_v28, %v3658_v16  ;;  %v867_v56 = vpop.permute.xlu1 %866  ;;  %v1769_v36 = vpop.f32.mrb[1].mxu0 }
 0x20a   : > { %941 = vst.msk [vmem:[#allocation2 + $0xb0] sm:$0xff] %vm918_vm7, %v867_v56  ;;  %v1770_v55 = vadd.f32 %v3658_v16, %v1769_v36  ;;  %1360 = vrot.lane.b32.xlu0 %v1163_v15, %s2392_s9 }
 0x20b   : > { %1362 = vrot.lane.b32.xlu1 %v1165_v33, %s2392_s9  ;;  %v1929_v8 = vmax.f32 %v1775_v27, 0.0 }
 0x20c   : > { %v1928_v24 = vmax.f32 %v1770_v55, 0.0  ;;  %v1343_v21 = vpop.permute.xlu0 %1342 }
 0x20d   : > { %v1962_v50 = vsel %vm1960_vm13, %v1929_v8, 0.0  ;;  %v2033_v17 = vmul.f32 %v1929_v8, %v1929_v8  ;;  %1418 = vst.msk [vmem:[#allocation2 + $0xa8] sm:$0xff] %vm1396_vm10, %v1343_v21  ;;  %v1470_v18 = vpop.permute.xlu1 %1469 }
 0x20e   : > { %v1961_v43 = vsel %vm1960_vm13, %v1928_v24, 0.0  ;;  %v2032_v35 = vmul.f32 %v1928_v24, %v1928_v24  ;;  %1546 = vst.msk [vmem:[#allocation2 + $0xa0] sm:$0xff] %vm1525_vm11, %v1470_v18  ;;  %1489 = vrot.lane.b32.xlu0 %v1168_v47, %s2393_s12 }
 0x20f   : > { %1491 = vrot.lane.b32.xlu1 %v1170_v49, %s2393_s12  ;;  %v2065_v34 = vsel %vm1960_vm13, %v2033_v17, 0.0  ;;  %v1963_v13 = vadd.f32 %v1962_v50, %v1961_v43 }
 0x210   : > { %v2064_v12 = vsel %vm1960_vm13, %v2032_v35, 0.0  ;;  %v869_v37 = vpop.permute.xlu0 %868 }
 0x211   : > { %v2066_v7 = vadd.f32 %v2065_v34, %v2064_v12  ;;  %942 = vst.msk [vmem:[#allocation2 + $0xb8] sm:$0xff] %vm918_vm7, %v869_v37  ;;  %v996_v6 = vpop.permute.xlu1 %995 }
 0x212   : > { %1070 = vst.msk [vmem:[#allocation2 + $0xb0] sm:$0xff] %vm1047_vm8, %v996_v6 }
 0x214   : > { %v1472_v42 = vpop.permute.xlu0 %1471 }
 0x215   : > { %1547 = vst.msk [vmem:[#allocation2 + $0xa8] sm:$0xff] %vm1525_vm11, %v1472_v42  ;;  %v998_v62 = vpop.permute.xlu1 %997  ;;  %v1578_v59 = vld [vmem:[#allocation2 + $0xa0] sm:$0xff] }
 0x216   : > { %1071 = vst.msk [vmem:[#allocation2 + $0xb8] sm:$0xff] %vm1047_vm8, %v998_v62  ;;  %2325 = vmatprep.mubr.msk.f32.mxu1 %vm1602_vm12, %v1578_v59 }
 0x218   : > { %v1216_v51 = vpop.permute.xlu0 %1215 }
 0x219   : > { %1290 = vst.msk [vmem:[#allocation2 + $0xb0] sm:$0xff] %vm1267_vm9, %v1216_v51  ;;  %v742_v3 = vpop.permute.xlu1 %741 }
 0x21a   : > { %814 = vst.msk [vmem:[#allocation2 + $0xc0] sm:$0xff] %vm789_vm6, %v742_v3 }
 0x21c   : > { %v1218_v45 = vpop.permute.xlu0 %1217  ;;  %v2300_v31 = vpop.f32.mrb[2].mxu0  ;;  %v1579_v29 = vld [vmem:[#allocation2 + $0xa8] sm:$0xff] }
 0x21d   : > { %1291 = vst.msk [vmem:[#allocation2 + $0xb8] sm:$0xff] %vm1267_vm9, %v1218_v45  ;;  %v1785_v52 = vadd.f32 %v2300_v31, %v3658_v16  ;;  %v1345_v54 = vpop.permute.xlu1 %1344  ;;  %v1779_v30 = vpop.f32.mrb[3].mxu0  ;;  %2326 = vmatmul.mubr.msk.f32.gmra.mrb[4].mxu1 %vm1602_vm12, %v1579_v29 }
 0x21e   : > { %1419 = vst.msk [vmem:[#allocation2 + $0xb0] sm:$0xff] %vm1396_vm10, %v1345_v54  ;;  %v1780_v23 = vadd.f32 %v3658_v16, %v1779_v30 }
 0x21f   : > { %v1931_v57 = vmax.f32 %v1785_v52, 0.0 }
 0x220   : > { %v1930_v40 = vmax.f32 %v1780_v23, 0.0  ;;  %v744_v58 = vpop.permute.xlu0 %743 }
 0x221   : > { %815 = vst.msk [vmem:[#allocation2 + $0xc8] sm:$0xff] %vm789_vm6, %v744_v58  ;;  %v871_v2 = vpop.permute.xlu1 %870  ;;  %v2035_v26 = vmul.f32 %v1931_v57, %v1931_v57  ;;  %v1966_v46 = vsel %vm1960_vm13, %v1931_v57, 0.0 }
 0x222   : > { %v1964_v25 = vsel %vm1960_vm13, %v1930_v40, 0.0  ;;  %v2034_v48 = vmul.f32 %v1930_v40, %v1930_v40  ;;  %943 = vst.msk [vmem:[#allocation2 + $0xc0] sm:$0xff] %vm918_vm7, %v871_v2 }
 0x223   : > { %v1965_v60 = vadd.f32 %v1964_v25, %v1963_v13  ;;  %v2069_v63 = vsel %vm1960_vm13, %v2035_v26, 0.0 }
 0x224   : > { %v2067_v15 = vsel %vm1960_vm13, %v2034_v48, 0.0  ;;  %v1347_v20 = vpop.permute.xlu0 %1346 }
 0x225   : > { %v2068_v19 = vadd.f32 %v2067_v15, %v2066_v7  ;;  %1420 = vst.msk [vmem:[#allocation2 + $0xb8] sm:$0xff] %vm1396_vm10, %v1347_v20  ;;  %v1474_v14 = vpop.permute.xlu1 %1473  ;;  %v1967_v61 = vadd.f32 %v1966_v46, %v1965_v60 }
 0x226   : > { %1548 = vst.msk [vmem:[#allocation2 + $0xb0] sm:$0xff] %vm1525_vm11, %v1474_v14 }
 0x227   : > { %v2070_v11 = vadd.f32 %v2069_v63, %v2068_v19 }
 0x228   : > { %v873_v0 = vpop.permute.xlu0 %872 }
 0x229   : > { %944 = vst.msk [vmem:[#allocation2 + $0xc8] sm:$0xff] %vm918_vm7, %v873_v0  ;;  %v1000_v10 = vpop.permute.xlu1 %999 }
 0x22a   : > { %1072 = vst.msk [vmem:[#allocation2 + $0xc0] sm:$0xff] %vm1047_vm8, %v1000_v10 }
 0x22c   : > { %v1476_v1 = vpop.permute.xlu0 %1475 }
 0x22d   : > { %1549 = vst.msk [vmem:[#allocation2 + $0xb8] sm:$0xff] %vm1525_vm11, %v1476_v1  ;;  %v1002_v33 = vpop.permute.xlu1 %1001  ;;  %v1580_v32 = vld [vmem:[#allocation2 + $0xb0] sm:$0xff] }
 0x22e   : > { %1073 = vst.msk [vmem:[#allocation2 + $0xc8] sm:$0xff] %vm1047_vm8, %v1002_v33  ;;  %2328 = vmatprep.mubr.msk.f32.mxu1 %vm1602_vm12, %v1580_v32 }
 0x230   : > { %v1220_v9 = vpop.permute.xlu0 %1219  ;;  %v2303_v5 = vpop.f32.mrb[4].mxu0 }
 0x231   : > { %1292 = vst.msk [vmem:[#allocation2 + $0xc0] sm:$0xff] %vm1267_vm9, %v1220_v9  ;;  %v1795_v38 = vadd.f32 %v2303_v5, %v3658_v16  ;;  %v746_v4 = vpop.permute.xlu1 %745  ;;  %v1789_v53 = vpop.f32.mrb[5].mxu0 }
 0x232   : > { %816 = vst.msk [vmem:[#allocation2 + $0xd0] sm:$0xff] %vm789_vm6, %v746_v4  ;;  %v1790_v39 = vadd.f32 %v3658_v16, %v1789_v53 }
 0x233   : > { %v1933_v44 = vmax.f32 %v1795_v38, 0.0 }
 0x234   : > { %v1932_v22 = vmax.f32 %v1790_v39, 0.0  ;;  %v1222_v41 = vpop.permute.xlu0 %1221  ;;  %v1581_v28 = vld [vmem:[#allocation2 + $0xb8] sm:$0xff] }
 0x235   : > { %1293 = vst.msk [vmem:[#allocation2 + $0xc8] sm:$0xff] %vm1267_vm9, %v1222_v41  ;;  %v1349_v27 = vpop.permute.xlu1 %1348  ;;  %2329 = vmatmul.mubr.msk.f32.gmra.mrb[6].mxu1 %vm1602_vm12, %v1581_v28  ;;  %v2037_v56 = vmul.f32 %v1933_v44, %v1933_v44  ;;  %v1970_v47 = vsel %vm1960_vm13, %v1933_v44, 0.0 }
 0x236   : > { %v1968_v36 = vsel %vm1960_vm13, %v1932_v22, 0.0  ;;  %v2036_v55 = vmul.f32 %v1932_v22, %v1932_v22  ;;  %1421 = vst.msk [vmem:[#allocation2 + $0xc0] sm:$0xff] %vm1396_vm10, %v1349_v27 }
 0x237   : > { %v1969_v8 = vadd.f32 %v1968_v36, %v1967_v61  ;;  %v2073_v18 = vsel %vm1960_vm13, %v2037_v56, 0.0 }
 0x238   : > { %v2071_v49 = vsel %vm1960_vm13, %v2036_v55, 0.0  ;;  %v748_v24 = vpop.permute.xlu0 %747 }
 0x239   : > { %v2072_v21 = vadd.f32 %v2071_v49, %v2070_v11  ;;  %817 = vst.msk [vmem:[#allocation2 + $0xd8] sm:$0xff] %vm789_vm6, %v748_v24  ;;  %v875_v50 = vpop.permute.xlu1 %874  ;;  %v1971_v17 = vadd.f32 %v1970_v47, %v1969_v8 }
 0x23a   : > { %945 = vst.msk [vmem:[#allocation2 + $0xd0] sm:$0xff] %vm918_vm7, %v875_v50 }
 0x23b   : > { %v2074_v43 = vadd.f32 %v2073_v18, %v2072_v21 }
 0x23c   : > { %v1351_v35 = vpop.permute.xlu0 %1350 }
 0x23d   : > { %1422 = vst.msk [vmem:[#allocation2 + $0xc8] sm:$0xff] %vm1396_vm10, %v1351_v35  ;;  %v1478_v34 = vpop.permute.xlu1 %1477 }
 0x23e   : > { %1550 = vst.msk [vmem:[#allocation2 + $0xc0] sm:$0xff] %vm1525_vm11, %v1478_v34 }
 0x240   : > { %v877_v13 = vpop.permute.xlu0 %876 }
 0x241   : > { %946 = vst.msk [vmem:[#allocation2 + $0xd8] sm:$0xff] %vm918_vm7, %v877_v13  ;;  %v1004_v12 = vpop.permute.xlu1 %1003 }
 0x242   : > { %1074 = vst.msk [vmem:[#allocation2 + $0xd0] sm:$0xff] %vm1047_vm8, %v1004_v12 }
 0x244   : > { %v1480_v37 = vpop.permute.xlu0 %1479 }
 0x245   : > { %1551 = vst.msk [vmem:[#allocation2 + $0xc8] sm:$0xff] %vm1525_vm11, %v1480_v37  ;;  %v1006_v7 = vpop.permute.xlu1 %1005  ;;  %v1582_v6 = vld [vmem:[#allocation2 + $0xc0] sm:$0xff] }
 0x246   : > { %1075 = vst.msk [vmem:[#allocation2 + $0xd8] sm:$0xff] %vm1047_vm8, %v1006_v7  ;;  %2331 = vmatprep.mubr.msk.f32.mxu1 %vm1602_vm12, %v1582_v6 }
 0x248   : > { %v1224_v42 = vpop.permute.xlu0 %1223  ;;  %v2306_v62 = vpop.f32.mrb[6].mxu0 }
 0x249   : > { %1294 = vst.msk [vmem:[#allocation2 + $0xd0] sm:$0xff] %vm1267_vm9, %v1224_v42  ;;  %v1805_v59 = vadd.f32 %v2306_v62, %v3658_v16  ;;  %v750_v51 = vpop.permute.xlu1 %749  ;;  %v1799_v3 = vpop.f32.mrb[7].mxu0 }
 0x24a   : > { %818 = vst.msk [vmem:[#allocation2 + $0xe0] sm:$0xff] %vm789_vm6, %v750_v51  ;;  %v1800_v45 = vadd.f32 %v3658_v16, %v1799_v3 }
 0x24b   : > { %v1935_v31 = vmax.f32 %v1805_v59, 0.0 }
 0x24c   : > { %v1934_v29 = vmax.f32 %v1800_v45, 0.0  ;;  %v1226_v52 = vpop.permute.xlu0 %1225  ;;  %v1583_v54 = vld [vmem:[#allocation2 + $0xc8] sm:$0xff] }
 0x24d   : > { %1295 = vst.msk [vmem:[#allocation2 + $0xd8] sm:$0xff] %vm1267_vm9, %v1226_v52  ;;  %v1353_v30 = vpop.permute.xlu1 %1352  ;;  %2332 = vmatmul.mubr.msk.f32.gmra.mrb[8].mxu1 %vm1602_vm12, %v1583_v54  ;;  %v2039_v23 = vmul.f32 %v1935_v31, %v1935_v31  ;;  %v1974_v2 = vsel %vm1960_vm13, %v1935_v31, 0.0 }
 0x24e   : > { %v1972_v57 = vsel %vm1960_vm13, %v1934_v29, 0.0  ;;  %v2038_v40 = vmul.f32 %v1934_v29, %v1934_v29  ;;  %1423 = vst.msk [vmem:[#allocation2 + $0xd0] sm:$0xff] %vm1396_vm10, %v1353_v30 }
 0x24f   : > { %v1973_v58 = vadd.f32 %v1972_v57, %v1971_v17  ;;  %v2077_v15 = vsel %vm1960_vm13, %v2039_v23, 0.0 }
 0x250   : > { %v2075_v26 = vsel %vm1960_vm13, %v2038_v40, 0.0  ;;  %v752_v25 = vpop.permute.xlu0 %751 }
 0x251   : > { %v2076_v48 = vadd.f32 %v2075_v26, %v2074_v43  ;;  %819 = vst.msk [vmem:[#allocation2 + $0xe8] sm:$0xff] %vm789_vm6, %v752_v25  ;;  %v879_v60 = vpop.permute.xlu1 %878  ;;  %v1975_v46 = vadd.f32 %v1974_v2, %v1973_v58 }
 0x252   : > { %947 = vst.msk [vmem:[#allocation2 + $0xe0] sm:$0xff] %vm918_vm7, %v879_v60 }
 0x253   : > { %v2078_v20 = vadd.f32 %v2077_v15, %v2076_v48 }
 0x254   : > { %v1355_v19 = vpop.permute.xlu0 %1354 }
 0x255   : > { %1424 = vst.msk [vmem:[#allocation2 + $0xd8] sm:$0xff] %vm1396_vm10, %v1355_v19  ;;  %v1482_v14 = vpop.permute.xlu1 %1481 }
 0x256   : > { %1552 = vst.msk [vmem:[#allocation2 + $0xd0] sm:$0xff] %vm1525_vm11, %v1482_v14 }
 0x258   : > { %v881_v61 = vpop.permute.xlu0 %880 }
 0x259   : > { %948 = vst.msk [vmem:[#allocation2 + $0xe8] sm:$0xff] %vm918_vm7, %v881_v61  ;;  %v1008_v63 = vpop.permute.xlu1 %1007 }
 0x25a   : > { %1076 = vst.msk [vmem:[#allocation2 + $0xe0] sm:$0xff] %vm1047_vm8, %v1008_v63 }
 0x25c   : > { %v1484_v11 = vpop.permute.xlu0 %1483 }
 0x25d   : > { %1553 = vst.msk [vmem:[#allocation2 + $0xd8] sm:$0xff] %vm1525_vm11, %v1484_v11  ;;  %v1010_v0 = vpop.permute.xlu1 %1009  ;;  %v1584_v10 = vld [vmem:[#allocation2 + $0xd0] sm:$0xff] }
 0x25e   : > { %1077 = vst.msk [vmem:[#allocation2 + $0xe8] sm:$0xff] %vm1047_vm8, %v1010_v0  ;;  %2334 = vmatprep.mubr.msk.f32.mxu1 %vm1602_vm12, %v1584_v10 }
 0x260   : > { %v1228_v1 = vpop.permute.xlu0 %1227  ;;  %v2309_v33 = vpop.f32.mrb[8].mxu0 }
 0x261   : > { %1296 = vst.msk [vmem:[#allocation2 + $0xe0] sm:$0xff] %vm1267_vm9, %v1228_v1  ;;  %v1815_v32 = vadd.f32 %v2309_v33, %v3658_v16  ;;  %v754_v9 = vpop.permute.xlu1 %753  ;;  %v1809_v5 = vpop.f32.mrb[9].mxu0 }
 0x262   : > { %820 = vst.msk [vmem:[#allocation2 + $0xf0] sm:$0xff] %vm789_vm6, %v754_v9  ;;  %v1810_v38 = vadd.f32 %v3658_v16, %v1809_v5 }
 0x263   : > { %v1937_v4 = vmax.f32 %v1815_v32, 0.0 }
 0x264   : > { %v1936_v53 = vmax.f32 %v1810_v38, 0.0  ;;  %v1230_v39 = vpop.permute.xlu0 %1229  ;;  %v1585_v44 = vld [vmem:[#allocation2 + $0xd8] sm:$0xff] }
 0x265   : > { %1297 = vst.msk [vmem:[#allocation2 + $0xe8] sm:$0xff] %vm1267_vm9, %v1230_v39  ;;  %v1357_v22 = vpop.permute.xlu1 %1356  ;;  %2335 = vmatmul.mubr.msk.f32.gmra.mrb[10].mxu1 %vm1602_vm12, %v1585_v44  ;;  %v2041_v41 = vmul.f32 %v1937_v4, %v1937_v4  ;;  %v1978_v36 = vsel %vm1960_vm13, %v1937_v4, 0.0 }
 0x266   : > { %v1976_v28 = vsel %vm1960_vm13, %v1936_v53, 0.0  ;;  %v2040_v27 = vmul.f32 %v1936_v53, %v1936_v53  ;;  %1425 = vst.msk [vmem:[#allocation2 + $0xe0] sm:$0xff] %vm1396_vm10, %v1357_v22 }
 0x267   : > { %v1977_v56 = vadd.f32 %v1976_v28, %v1975_v46  ;;  %v2081_v21 = vsel %vm1960_vm13, %v2041_v41, 0.0 }
 0x268   : > { %v2079_v55 = vsel %vm1960_vm13, %v2040_v27, 0.0  ;;  %v756_v8 = vpop.permute.xlu0 %755 }
 0x269   : > { %v2080_v47 = vadd.f32 %v2079_v55, %v2078_v20  ;;  %821 = vst.msk [vmem:[#allocation2 + $0xf8] sm:$0xff] %vm789_vm6, %v756_v8  ;;  %v883_v49 = vpop.permute.xlu1 %882  ;;  %v1979_v24 = vadd.f32 %v1978_v36, %v1977_v56 }
 0x26a   : > { %949 = vst.msk [vmem:[#allocation2 + $0xf0] sm:$0xff] %vm918_vm7, %v883_v49 }
 0x26b   : > { %v2082_v50 = vadd.f32 %v2081_v21, %v2080_v47 }
 0x26c   : > { %v1359_v17 = vpop.permute.xlu0 %1358 }
 0x26d   : > { %1426 = vst.msk [vmem:[#allocation2 + $0xe8] sm:$0xff] %vm1396_vm10, %v1359_v17  ;;  %v1486_v18 = vpop.permute.xlu1 %1485 }
 0x26e   : > { %1554 = vst.msk [vmem:[#allocation2 + $0xe0] sm:$0xff] %vm1525_vm11, %v1486_v18 }
 0x270   : > { %v885_v43 = vpop.permute.xlu0 %884 }
 0x271   : > { %950 = vst.msk [vmem:[#allocation2 + $0xf8] sm:$0xff] %vm918_vm7, %v885_v43  ;;  %v1012_v35 = vpop.permute.xlu1 %1011 }
 0x272   : > { %1078 = vst.msk [vmem:[#allocation2 + $0xf0] sm:$0xff] %vm1047_vm8, %v1012_v35 }
 0x274   : > { %v1488_v34 = vpop.permute.xlu0 %1487 }
 0x275   : > { %1555 = vst.msk [vmem:[#allocation2 + $0xe8] sm:$0xff] %vm1525_vm11, %v1488_v34  ;;  %v1014_v13 = vpop.permute.xlu1 %1013  ;;  %v1586_v12 = vld [vmem:[#allocation2 + $0xe0] sm:$0xff] }
 0x276   : > { %1079 = vst.msk [vmem:[#allocation2 + $0xf8] sm:$0xff] %vm1047_vm8, %v1014_v13  ;;  %2337 = vmatprep.mubr.msk.f32.mxu1 %vm1602_vm12, %v1586_v12 }
 0x278   : > { %v1232_v37 = vpop.permute.xlu0 %1231  ;;  %v2312_v7 = vpop.f32.mrb[10].mxu0 }
 0x279   : > { %1298 = vst.msk [vmem:[#allocation2 + $0xf0] sm:$0xff] %vm1267_vm9, %v1232_v37  ;;  %v1825_v6 = vadd.f32 %v2312_v7, %v3658_v16  ;;  %v1234_v42 = vpop.permute.xlu1 %1233  ;;  %v1819_v62 = vpop.f32.mrb[11].mxu0 }
 0x27a   : > { %1299 = vst.msk [vmem:[#allocation2 + $0xf8] sm:$0xff] %vm1267_vm9, %v1234_v42  ;;  %v1820_v59 = vadd.f32 %v3658_v16, %v1819_v62 }
 0x27b   : > { %v1939_v51 = vmax.f32 %v1825_v6, 0.0 }
 0x27c   : > { %v1938_v3 = vmax.f32 %v1820_v59, 0.0  ;;  %v1361_v45 = vpop.permute.xlu0 %1360  ;;  %v1587_v31 = vld [vmem:[#allocation2 + $0xe8] sm:$0xff] }
 0x27d   : > { %1427 = vst.msk [vmem:[#allocation2 + $0xf0] sm:$0xff] %vm1396_vm10, %v1361_v45  ;;  %v1363_v29 = vpop.permute.xlu1 %1362  ;;  %2338 = vmatmul.mubr.msk.f32.gmra.mrb[12].mxu1 %vm1602_vm12, %v1587_v31  ;;  %v2043_v52 = vmul.f32 %v1939_v51, %v1939_v51  ;;  %v1982_v57 = vsel %vm1960_vm13, %v1939_v51, 0.0 }
 0x27e   : > { %v1980_v54 = vsel %vm1960_vm13, %v1938_v3, 0.0  ;;  %v2042_v30 = vmul.f32 %v1938_v3, %v1938_v3  ;;  %1428 = vst.msk [vmem:[#allocation2 + $0xf8] sm:$0xff] %vm1396_vm10, %v1363_v29 }
 0x27f   : > { %v1981_v23 = vadd.f32 %v1980_v54, %v1979_v24  ;;  %v2085_v48 = vsel %vm1960_vm13, %v2043_v52, 0.0 }
 0x280   : > { %v2083_v40 = vsel %vm1960_vm13, %v2042_v30, 0.0  ;;  %v1490_v58 = vpop.permute.xlu0 %1489 }
 0x281   : > { %v2084_v2 = vadd.f32 %v2083_v40, %v2082_v50  ;;  %1556 = vst.msk [vmem:[#allocation2 + $0xf0] sm:$0xff] %vm1525_vm11, %v1490_v58  ;;  %v1492_v26 = vpop.permute.xlu1 %1491  ;;  %v1983_v25 = vadd.f32 %v1982_v57, %v1981_v23 }
 0x282   : > { %1557 = vst.msk [vmem:[#allocation2 + $0xf8] sm:$0xff] %vm1525_vm11, %v1492_v26 }
 0x283   : > { %v2086_v60 = vadd.f32 %v2085_v48, %v2084_v2 }
 0x288   : > { %v1588_v46 = vld [vmem:[#allocation2 + $0xf0] sm:$0xff] }
 0x289   : > { %2340 = vmatprep.mubr.msk.f32.mxu1 %vm1602_vm12, %v1588_v46  ;;  %v1589_v15 = vld [vmem:[#allocation2 + $0xf8] sm:$0xff] }
 0x28a   : > { %2341 = vmatmul.mubr.msk.f32.gmra.mrb[14].mxu1 %vm1602_vm12, %v1589_v15 }
 0x290   : > { %v2315_v20 = vpop.f32.mrb[12].mxu0 }
 0x291   : > { %v1835_v19 = vadd.f32 %v2315_v20, %v3658_v16  ;;  %v1829_v14 = vpop.f32.mrb[13].mxu0 }
 0x292   : > { %v1830_v61 = vadd.f32 %v3658_v16, %v1829_v14 }
 0x293   : > { %v1941_v63 = vmax.f32 %v1835_v19, 0.0 }
 0x294   : > { %v1940_v11 = vmax.f32 %v1830_v61, 0.0 }
 0x295   : > { %v2045_v0 = vmul.f32 %v1941_v63, %v1941_v63  ;;  %v1986_v32 = vsel %vm1960_vm13, %v1941_v63, 0.0 }
 0x296   : > { %v1984_v10 = vsel %vm1960_vm13, %v1940_v11, 0.0  ;;  %v2044_v1 = vmul.f32 %v1940_v11, %v1940_v11 }
 0x297   : > { %v1985_v33 = vadd.f32 %v1984_v10, %v1983_v25  ;;  %v2089_v4 = vsel %vm1960_vm13, %v2045_v0, 0.0 }
 0x298   : > { %v2087_v9 = vsel %vm1960_vm13, %v2044_v1, 0.0 }
 0x299   : > { %v2088_v5 = vadd.f32 %v2087_v9, %v2086_v60  ;;  %v1987_v38 = vadd.f32 %v1986_v32, %v1985_v33 }
 0x29b   : > { %v2090_v53 = vadd.f32 %v2089_v4, %v2088_v5 }
 0x2a8   : > { %v2318_v39 = vpop.f32.mrb[14].mxu0 }
 0x2a9   : > { %v1845_v44 = vadd.f32 %v2318_v39, %v3658_v16  ;;  %v1839_v22 = vpop.f32.mrb[15].mxu0 }
 0x2aa   : > { %v1840_v41 = vadd.f32 %v3658_v16, %v1839_v22 }
 0x2ab   : > { %v1943_v28 = vmax.f32 %v1845_v44, 0.0 }
 0x2ac   : > { %v1942_v27 = vmax.f32 %v1840_v41, 0.0 }
 0x2ad   : > { %v2047_v56 = vmul.f32 %v1943_v28, %v1943_v28  ;;  %v1990_v47 = vsel %vm1960_vm13, %v1943_v28, 0.0 }
 0x2ae   : > { %v1988_v36 = vsel %vm1960_vm13, %v1942_v27, 0.0  ;;  %v2046_v55 = vmul.f32 %v1942_v27, %v1942_v27 }
 0x2af   : > { %v1989_v8 = vadd.f32 %v1988_v36, %v1987_v38  ;;  %v2093_v50 = vsel %vm1960_vm13, %v2047_v56, 0.0 }
 0x2b0   : > { %v2091_v49 = vsel %vm1960_vm13, %v2046_v55, 0.0 }
 0x2b1   : > { %v2092_v24 = vadd.f32 %v2091_v49, %v2090_v53  ;;  %v1991_v21 = vadd.f32 %v1990_v47, %v1989_v8 }
 0x2b3   : > { %v2094_v17 = vadd.f32 %v2093_v50, %v2092_v24 }
 0x2c0   : > { %v2321_v18 = vpop.f32.mrb[0].mxu1 }
 0x2c1   : > { %v1855_v43 = vadd.f32 %v2321_v18, %v3658_v16  ;;  %v1849_v35 = vpop.f32.mrb[1].mxu1 }
 0x2c2   : > { %v1850_v34 = vadd.f32 %v3658_v16, %v1849_v35 }
 0x2c3   : > { %v1945_v13 = vmax.f32 %v1855_v43, 0.0 }
 0x2c4   : > { %v1944_v12 = vmax.f32 %v1850_v34, 0.0 }
 0x2c5   : > { %v2049_v37 = vmul.f32 %v1945_v13, %v1945_v13  ;;  %v1994_v62 = vsel %vm1960_vm13, %v1945_v13, 0.0 }
 0x2c6   : > { %v1992_v7 = vsel %vm1960_vm13, %v1944_v12, 0.0  ;;  %v2048_v6 = vmul.f32 %v1944_v12, %v1944_v12 }
 0x2c7   : > { %v1993_v42 = vadd.f32 %v1992_v7, %v1991_v21  ;;  %v2097_v45 = vsel %vm1960_vm13, %v2049_v37, 0.0 }
 0x2c8   : > { %v2095_v59 = vsel %vm1960_vm13, %v2048_v6, 0.0 }
 0x2c9   : > { %v2096_v51 = vadd.f32 %v2095_v59, %v2094_v17  ;;  %v1995_v3 = vadd.f32 %v1994_v62, %v1993_v42 }
 0x2cb   : > { %v2098_v31 = vadd.f32 %v2097_v45, %v2096_v51 }
 0x2d8   : > { %v2324_v29 = vpop.f32.mrb[2].mxu1 }
 0x2d9   : > { %v1865_v52 = vadd.f32 %v2324_v29, %v3658_v16  ;;  %v1859_v54 = vpop.f32.mrb[3].mxu1 }
 0x2da   : > { %v1860_v30 = vadd.f32 %v3658_v16, %v1859_v54 }
 0x2db   : > { %v1947_v23 = vmax.f32 %v1865_v52, 0.0 }
 0x2dc   : > { %v1946_v57 = vmax.f32 %v1860_v30, 0.0 }
 0x2dd   : > { %v2051_v40 = vmul.f32 %v1947_v23, %v1947_v23  ;;  %v1998_v25 = vsel %vm1960_vm13, %v1947_v23, 0.0 }
 0x2de   : > { %v1996_v58 = vsel %vm1960_vm13, %v1946_v57, 0.0  ;;  %v2050_v2 = vmul.f32 %v1946_v57, %v1946_v57 }
 0x2df   : > { %v1997_v26 = vadd.f32 %v1996_v58, %v1995_v3  ;;  %v2101_v15 = vsel %vm1960_vm13, %v2051_v40, 0.0 }
 0x2e0   : > { %v2099_v48 = vsel %vm1960_vm13, %v2050_v2, 0.0 }
 0x2e1   : > { %v2100_v60 = vadd.f32 %v2099_v48, %v2098_v31  ;;  %v1999_v46 = vadd.f32 %v1998_v25, %v1997_v26 }
 0x2e3   : > { %v2102_v20 = vadd.f32 %v2101_v15, %v2100_v60 }
 0x2f0   : > { %v2327_v19 = vpop.f32.mrb[4].mxu1 }
 0x2f1   : > { %v1875_v14 = vadd.f32 %v2327_v19, %v3658_v16  ;;  %v1869_v61 = vpop.f32.mrb[5].mxu1 }
 0x2f2   : > { %v1870_v63 = vadd.f32 %v3658_v16, %v1869_v61 }
 0x2f3   : > { %v1949_v11 = vmax.f32 %v1875_v14, 0.0 }
 0x2f4   : > { %v1948_v0 = vmax.f32 %v1870_v63, 0.0 }
 0x2f5   : > { %v2053_v10 = vmul.f32 %v1949_v11, %v1949_v11  ;;  %v2002_v9 = vsel %vm1960_vm13, %v1949_v11, 0.0 }
 0x2f6   : > { %v2000_v1 = vsel %vm1960_vm13, %v1948_v0, 0.0  ;;  %v2052_v33 = vmul.f32 %v1948_v0, %v1948_v0 }
 0x2f7   : > { %v2001_v32 = vadd.f32 %v2000_v1, %v1999_v46  ;;  %v2105_v53 = vsel %vm1960_vm13, %v2053_v10, 0.0 }
 0x2f8   : > { %v2103_v5 = vsel %vm1960_vm13, %v2052_v33, 0.0 }
 0x2f9   : > { %v2104_v38 = vadd.f32 %v2103_v5, %v2102_v20  ;;  %v2003_v4 = vadd.f32 %v2002_v9, %v2001_v32 }
 0x2fb   : > { %v2106_v39 = vadd.f32 %v2105_v53, %v2104_v38 }
 0x308   : > { %v2330_v44 = vpop.f32.mrb[6].mxu1 }
 0x309   : > { %v1885_v22 = vadd.f32 %v2330_v44, %v3658_v16  ;;  %v1879_v41 = vpop.f32.mrb[7].mxu1 }
 0x30a   : > { %v1880_v28 = vadd.f32 %v3658_v16, %v1879_v41 }
 0x30b   : > { %v1951_v27 = vmax.f32 %v1885_v22, 0.0 }
 0x30c   : > { %v1950_v56 = vmax.f32 %v1880_v28, 0.0 }
 0x30d   : > { %v2055_v36 = vmul.f32 %v1951_v27, %v1951_v27  ;;  %v2006_v49 = vsel %vm1960_vm13, %v1951_v27, 0.0 }
 0x30e   : > { %v2004_v55 = vsel %vm1960_vm13, %v1950_v56, 0.0  ;;  %v2054_v8 = vmul.f32 %v1950_v56, %v1950_v56 }
 0x30f   : > { %v2005_v47 = vadd.f32 %v2004_v55, %v2003_v4  ;;  %v2109_v17 = vsel %vm1960_vm13, %v2055_v36, 0.0 }
 0x310   : > { %v2107_v24 = vsel %vm1960_vm13, %v2054_v8, 0.0 }
 0x311   : > { %v2108_v21 = vadd.f32 %v2107_v24, %v2106_v39  ;;  %v2007_v50 = vadd.f32 %v2006_v49, %v2005_v47 }
 0x313   : > { %v2110_v18 = vadd.f32 %v2109_v17, %v2108_v21 }
 0x320   : > { %v2333_v43 = vpop.f32.mrb[8].mxu1 }
 0x321   : > { %v1895_v35 = vadd.f32 %v2333_v43, %v3658_v16  ;;  %v1889_v34 = vpop.f32.mrb[9].mxu1 }
 0x322   : > { %v1890_v13 = vadd.f32 %v3658_v16, %v1889_v34 }
 0x323   : > { %v1953_v12 = vmax.f32 %v1895_v35, 0.0 }
 0x324   : > { %v1952_v37 = vmax.f32 %v1890_v13, 0.0 }
 0x325   : > { %v2057_v7 = vmul.f32 %v1953_v12, %v1953_v12  ;;  %v2010_v59 = vsel %vm1960_vm13, %v1953_v12, 0.0 }
 0x326   : > { %v2008_v6 = vsel %vm1960_vm13, %v1952_v37, 0.0  ;;  %v2056_v42 = vmul.f32 %v1952_v37, %v1952_v37 }
 0x327   : > { %v2009_v62 = vadd.f32 %v2008_v6, %v2007_v50  ;;  %v2113_v31 = vsel %vm1960_vm13, %v2057_v7, 0.0 }
 0x328   : > { %v2111_v51 = vsel %vm1960_vm13, %v2056_v42, 0.0 }
 0x329   : > { %v2112_v3 = vadd.f32 %v2111_v51, %v2110_v18  ;;  %v2011_v45 = vadd.f32 %v2010_v59, %v2009_v62 }
 0x32b   : > { %v2114_v29 = vadd.f32 %v2113_v31, %v2112_v3 }
 0x338   : > { %v2336_v52 = vpop.f32.mrb[10].mxu1 }
 0x339   : > { %v1905_v54 = vadd.f32 %v2336_v52, %v3658_v16  ;;  %v1899_v30 = vpop.f32.mrb[11].mxu1 }
 0x33a   : > { %v1900_v23 = vadd.f32 %v3658_v16, %v1899_v30 }
 0x33b   : > { %v1955_v57 = vmax.f32 %v1905_v54, 0.0 }
 0x33c   : > { %v1954_v40 = vmax.f32 %v1900_v23, 0.0 }
 0x33d   : > { %v2059_v58 = vmul.f32 %v1955_v57, %v1955_v57  ;;  %v2014_v48 = vsel %vm1960_vm13, %v1955_v57, 0.0 }
 0x33e   : > { %v2012_v2 = vsel %vm1960_vm13, %v1954_v40, 0.0  ;;  %v2058_v26 = vmul.f32 %v1954_v40, %v1954_v40 }
 0x33f   : > { %v2013_v25 = vadd.f32 %v2012_v2, %v2011_v45  ;;  %v2117_v20 = vsel %vm1960_vm13, %v2059_v58, 0.0 }
 0x340   : > { %v2115_v60 = vsel %vm1960_vm13, %v2058_v26, 0.0 }
 0x341   : > { %v2116_v46 = vadd.f32 %v2115_v60, %v2114_v29  ;;  %v2015_v15 = vadd.f32 %v2014_v48, %v2013_v25 }
 0x343   : > { %v2118_v19 = vadd.f32 %v2117_v20, %v2116_v46 }
 0x350   : > { %v2339_v14 = vpop.f32.mrb[12].mxu1 }
 0x351   : > { %v1915_v61 = vadd.f32 %v2339_v14, %v3658_v16  ;;  %v1909_v63 = vpop.f32.mrb[13].mxu1 }
 0x352   : > { %v1910_v11 = vadd.f32 %v3658_v16, %v1909_v63 }
 0x353   : > { %v1957_v0 = vmax.f32 %v1915_v61, 0.0 }
 0x354   : > { %v1956_v10 = vmax.f32 %v1910_v11, 0.0 }
 0x355   : > { %v2061_v1 = vmul.f32 %v1957_v0, %v1957_v0  ;;  %v2018_v5 = vsel %vm1960_vm13, %v1957_v0, 0.0 }
 0x356   : > { %v2016_v33 = vsel %vm1960_vm13, %v1956_v10, 0.0  ;;  %v2060_v32 = vmul.f32 %v1956_v10, %v1956_v10 }
 0x357   : > { %v2017_v9 = vadd.f32 %v2016_v33, %v2015_v15  ;;  %v2121_v39 = vsel %vm1960_vm13, %v2061_v1, 0.0 }
 0x358   : > { %v2119_v38 = vsel %vm1960_vm13, %v2060_v32, 0.0 }
 0x359   : > { %v2120_v4 = vadd.f32 %v2119_v38, %v2118_v19  ;;  %v2019_v53 = vadd.f32 %v2018_v5, %v2017_v9 }
 0x35b   : > { %v2122_v44 = vadd.f32 %v2121_v39, %v2120_v4 }
 0x35d   : > { %v2342_v22 = vpop.f32.mrb[14].mxu1 }
 0x35e   : > { %v1925_v41 = vadd.f32 %v2342_v22, %v3658_v16  ;;  %v1919_v28 = vpop.f32.mrb[15].mxu1 }
 0x35f   : > { %v1920_v27 = vadd.f32 %v3658_v16, %v1919_v28 }
 0x360   : > { %v1959_v56 = vmax.f32 %v1925_v41, 0.0 }
 0x361   : > { %v1958_v36 = vmax.f32 %v1920_v27, 0.0 }
 0x362   : > { %v2063_v55 = vmul.f32 %v1959_v56, %v1959_v56  ;;  %v2022_v24 = vsel %vm1960_vm13, %v1959_v56, 0.0 }
 0x363   : > { %v2020_v8 = vsel %vm1960_vm13, %v1958_v36, 0.0  ;;  %v2062_v47 = vmul.f32 %v1958_v36, %v1958_v36 }
 0x364   : > { %v2021_v49 = vadd.f32 %v2020_v8, %v2019_v53  ;;  %v2125_v18 = vsel %vm1960_vm13, %v2063_v55, 0.0 }
 0x365   : > { %v2123_v21 = vsel %vm1960_vm13, %v2062_v47, 0.0 }
 0x366   : > { %v2023_v50 = vadd.f32 %v2022_v24, %v2021_v49  ;;  %v2124_v17 = vadd.f32 %v2123_v21, %v2122_v44 }
 0x368   : > { %v2024_v43 = vrot.slane %v2023_v50, 4  ;;  %v2126_v35 = vadd.f32 %v2125_v18, %v2124_v17 }
 0x36a   : > { %v2025_v16 = vadd.f32 %v2024_v43, %v2023_v50  ;;  %v2127_v34 = vrot.slane %v2126_v35, 4 }
 0x36c   : > { %v2026_v13 = vrot.slane %v2025_v16, 2  ;;  %v2128_v12 = vadd.f32 %v2127_v34, %v2126_v35 }
 0x36e   : > { %v2027_v37 = vadd.f32 %v2026_v13, %v2025_v16  ;;  %v2129_v7 = vrot.slane %v2128_v12, 2 }
 0x370   : > { %v2028_v6 = vrot.slane %v2027_v37, 1  ;;  %v2130_v42 = vadd.f32 %v2129_v7, %v2128_v12 }
 0x372   : > { %v2029_v62 = vadd.f32 %v2028_v6, %v2027_v37  ;;  %v2131_v59 = vrot.slane %v2130_v42, 1 }
 0x374   : > { %2031 = vst.msk [vmem:[%s199_s19] sm:$0x1] %vm2030_vm14, %v2029_v62  ;;  %v2132_v51 = vadd.f32 %v2131_v59, %v2130_v42 }
 0x376   : > { %2133 = vst.msk [vmem:[%s202_s22] sm:$0x1] %vm2030_vm14, %v2132_v51 }
 0x377 PF: > { %s15_s15 = sadd.s32 1, %s2384_s15  }
 0x378   : > { %p12_p4 = scmp.ge.s32.totalorder %s15_s15, 4  }
 0x37a   :  { %14 = sbr.rel (!%p12_p4) target bundleno = 1 (0x1), region = 74 }

// kernel: conv_unit_forward.3
= control target key start
LH: loop header
LB: loop body
LE: loop exit
PB: predicated region body
PF: predicated region fallthrough
CT: control target
= control target key end

     0   :  { %s3898_s18 = smov 0   ;;  %s5655_s0 = inlined_call_operand.vmem [shape: f32[2,18,18,4], index: 0, kind: input, shape index: {}]   ;;  %s5656_s1 = inlined_call_operand.vmem [shape: f32[36,8], index: 1, kind: input, shape index: {}]   ;;  %s5657_s2 = inlined_call_operand.vmem [shape: f32[1,8], index: 2, kind: input, shape index: {}]   ;;  %s5658_s3 = inlined_call_operand.vmem [shape: f32[1,8], index: 3, kind: input, shape index: {}]   ;;  %s5659_s4 = inlined_call_operand.vmem [shape: f32[1,8], index: 4, kind: input, shape index: {}]   ;;  %s5660_s5 = inlined_call_operand.vmem [shape: f32[16,8,8], index: 5, kind: output, shape index: {}]  }
   0x1 LB: > { %s3904_s19 = sadd.s32 4294967295, %s3857_s18   ;;  %p3609_p0 = scmp.ge.s32.totalorder %s3857_s18, 1  ;;  %s3857_s18 = sphi %s3898_s18, %s15_s18  }
   0x2   : > { %p187_p1 = scmp.lt.s32.totalorder %s3857_s18, 3 }
   0x4   : > { %p188_p2 = pnand %p3609_p0, %p187_p1 }
   0x6   : > { %191 = sbr.rel (%p188_p2) target bundleno = 901 (0x385), region = 40 }
   0xd   : > { %p215_p3 = scmp.lt.s32.totalorder %s3904_s19, 1  ;;  %vm280_vm0 = vcmask 31744   ;;  %s3859_s25 = smov 12   ;;  %vm625_vm1 = vcmask 1046528   ;;  %vm1103_vm2 = vcmask 1045504   ;;  %vm441_vm3 = vcmask 130144  }
   0xe   : > { %s3860_s26 = smov 24   ;;  %s3861_s27 = smov 4   ;;  %vm572_vm4 = vcmask 228544   ;;  %vm1722_vm5 = vcmask 1043456   ;;  %vm812_vm6 = vcmask 64544   ;;  %vm941_vm7 = vcmask 162944  }
   0xf   : > { %s216_s20 = scalar_select %p215_p3, %s3904_s19, 1  ;;  %vm1070_vm8 = vcmask 261344   ;;  %vm1290_vm9 = vcmask 97344   ;;  %vm1419_vm10 = vcmask 195744   ;;  %vm1548_vm11 = vcmask 294144  }
  0x10   : > { %s3862_s28 = smov 16   ;;  %s3863_s29 = smov 28   ;;  %vm1625_vm12 = vcmask 293888   ;;  %vm3469_vm13 = vcmask 1041409   ;;  %vm3471_vm14 = vcmask 1042434   ;;  %vm3473_vm15 = vcmask 1043459  }
  0x11   : > { %s3824_s21 = smul.u32 432, %s216_s20  ;;  %s3864_s30 = smov 8  }
  0x12   : > { %s3865_s6 = smov 20   ;;  %s3866_s15 = smov 32  }
  0x13   : > { %s3913_s24 = scalar_lea.vmem %s5655_s0, %s3824_s21 }
  0x14   : > { %v3916_v0 = vld [vmem:[%s3913_s24 + $0x30] sm:$0xff]  ;;  %v3919_v1 = vld [vmem:[%s3913_s24 + $0x18] sm:$0xff]  ;;  %v3929_v3 = vld [vmem:[%s3913_s24 + $0x20] sm:$0xff] }
  0x15   : > { %v3922_v2 = vld [vmem:[%s3913_s24 + $0x38] sm:$0xff]  ;;  %349 = vrot.lane.b32.xlu1 %v3916_v0, %s3859_s25  ;;  %345 = vrot.lane.b32.xlu0 %v3919_v1, %s3859_s25  ;;  %v3932_v4 = vld [vmem:[%s3913_s24 + $0x50] sm:$0xff]  ;;  %283 = vst.msk [vmem:[#allocation2 + $0x10] sm:$0xff] %vm280_vm0, %v3919_v1  ;;  %285 = vst.msk [vmem:[#allocation2 + $0x20] sm:$0xff] %vm280_vm0, %v3916_v0  ;;  %v632_v8 = vrot.slane %v3929_v3, 1  ;;  %v631_v9 = vrot.slane %v3919_v1, 1 }
  0x16   : > { %286 = vst.msk [vmem:[#allocation2 + $0x28] sm:$0xff] %vm280_vm0, %v3922_v2  ;;  %v3941_v5 = vld [vmem:[%s3913_s24 + $0x48] sm:$0xff]  ;;  %v3947_v7 = vld [vmem:[%s3913_s24 + $0x60] sm:$0xff]  ;;  %284 = vst.msk [vmem:[#allocation2 + $0x18] sm:$0xff] %vm280_vm0, %v3929_v3  ;;  %v1109_v45 = vrot.slane %v3919_v1, 2  ;;  %v1110_v46 = vrot.slane %v3929_v3, 2 }
  0x17   : > { %v3944_v6 = vld [vmem:[%s3913_s24 + $0x68] sm:$0xff]  ;;  %288 = vst.msk [vmem:[#allocation2 + $0x38] sm:$0xff] %vm280_vm0, %v3932_v4  ;;  %v3956_v10 = vld [vmem:[%s3913_s24 + $0x80] sm:$0xff]  ;;  %v3959_v11 = vld [vmem:[%s3913_s24 + $0x78] sm:$0xff]  ;;  %v3988_v16 = vsel %vm625_vm1, %v631_v9, %v632_v8 }
  0x18   : > { %v3962_v12 = vld [vmem:[%s3913_s24 + $0x98] sm:$0xff]  ;;  %287 = vst.msk [vmem:[#allocation2 + $0x30] sm:$0xff] %vm280_vm0, %v3941_v5  ;;  %289 = vst.msk [vmem:[#allocation2 + $0x40] sm:$0xff] %vm280_vm0, %v3947_v7  ;;  %v3971_v13 = vld [vmem:[%s3913_s24 + $0x90] sm:$0xff]  ;;  %v4164_v48 = vsel %vm1103_vm2, %v1109_v45, %v1110_v46 }
  0x19   : > { %290 = vst.msk [vmem:[#allocation2 + $0x48] sm:$0xff] %vm280_vm0, %v3944_v6  ;;  %v3974_v14 = vld [vmem:[%s3913_s24 + $0xb0] sm:$0xff]  ;;  %v3977_v15 = vld [vmem:[%s3913_s24 + $0xa8] sm:$0xff]  ;;  %291 = vst.msk [vmem:[#allocation2 + $0x50] sm:$0xff] %vm280_vm0, %v3959_v11  ;;  %351 = vrot.lane.b32.xlu1 %v3922_v2, %s3859_s25  ;;  %347 = vrot.lane.b32.xlu0 %v3929_v3, %s3859_s25  ;;  %v642_v3 = vrot.slane %v3932_v4, 1 }
  0x1a   : > { %5666 = vst [vmem:[#allocation3_spill] sm:$0xff] %v3974_v14  ;;  %292 = vst.msk [vmem:[#allocation2 + $0x58] sm:$0xff] %vm280_vm0, %v3956_v10  ;;  %v3995_v17 = vld [vmem:[%s3913_s24 + $0xc8] sm:$0xff]  ;;  %v3998_v18 = vld [vmem:[%s3913_s24 + $0xc0] sm:$0xff] }
  0x1b   : > { %294 = vst.msk [vmem:[#allocation2 + $0x68] sm:$0xff] %vm280_vm0, %v3962_v12  ;;  %293 = vst.msk [vmem:[#allocation2 + $0x60] sm:$0xff] %vm280_vm0, %v3971_v13  ;;  %v4007_v19 = vld [vmem:[%s3913_s24 + $0xe0] sm:$0xff]  ;;  %v4010_v20 = vld [vmem:[%s3913_s24 + $0xd8] sm:$0xff] }
  0x1c   : > { %295 = vst.msk [vmem:[#allocation2 + $0x70] sm:$0xff] %vm280_vm0, %v3977_v15  ;;  %296 = vst.msk [vmem:[#allocation2 + $0x78] sm:$0xff] %vm280_vm0, %v3974_v14  ;;  %v4013_v21 = vld [vmem:[%s3913_s24 + $0xf8] sm:$0xff]  ;;  %v4020_v22 = vld [vmem:[%s3913_s24 + $0xf0] sm:$0xff] }
  0x1d   : > { %297 = vst.msk [vmem:[#allocation2 + $0x80] sm:$0xff] %vm280_vm0, %v3998_v18  ;;  %298 = vst.msk [vmem:[#allocation2 + $0x88] sm:$0xff] %vm280_vm0, %v3995_v17  ;;  %v4023_v23 = vld [vmem:[%s3913_s24 + $0x110] sm:$0xff]  ;;  %v4026_v24 = vld [vmem:[%s3913_s24 + $0x108] sm:$0xff]  ;;  %355 = vrot.lane.b32.xlu1 %v3932_v4, %s3859_s25  ;;  %353 = vrot.lane.b32.xlu0 %v3941_v5, %s3859_s25 }
  0x1e   : > { %299 = vst.msk [vmem:[#allocation2 + $0x90] sm:$0xff] %vm280_vm0, %v4010_v20  ;;  %300 = vst.msk [vmem:[#allocation2 + $0x98] sm:$0xff] %vm280_vm0, %v4007_v19  ;;  %v4035_v25 = vld [vmem:[%s3913_s24 + $0x128] sm:$0xff]  ;;  %v4038_v26 = vld [vmem:[%s3913_s24 + $0x120] sm:$0xff] }
  0x1f   : > { %302 = vst.msk [vmem:[#allocation2 + $0xa8] sm:$0xff] %vm280_vm0, %v4013_v21  ;;  %v4041_v27 = vld [vmem:[%s3913_s24 + $0x140] sm:$0xff]  ;;  %301 = vst.msk [vmem:[#allocation2 + $0xa0] sm:$0xff] %vm280_vm0, %v4020_v22  ;;  %v4054_v28 = vld [vmem:[%s3913_s24 + $0x138] sm:$0xff] }
  0x20   : > { %303 = vst.msk [vmem:[#allocation2 + $0xb0] sm:$0xff] %vm280_vm0, %v4026_v24  ;;  %304 = vst.msk [vmem:[#allocation2 + $0xb8] sm:$0xff] %vm280_vm0, %v4023_v23  ;;  %v4057_v29 = vld [vmem:[%s3913_s24 + $0x158] sm:$0xff]  ;;  %v4066_v30 = vld [vmem:[%s3913_s24 + $0x150] sm:$0xff] }
  0x21   : > { %305 = vst.msk [vmem:[#allocation2 + $0xc0] sm:$0xff] %vm280_vm0, %v4038_v26  ;;  %306 = vst.msk [vmem:[#allocation2 + $0xc8] sm:$0xff] %vm280_vm0, %v4035_v25  ;;  %v4069_v31 = vld [vmem:[%s3913_s24 + $0x170] sm:$0xff]  ;;  %v4072_v32 = vld [vmem:[%s3913_s24 + $0x168] sm:$0xff]  ;;  %359 = vrot.lane.b32.xlu1 %v3944_v6, %s3859_s25  ;;  %357 = vrot.lane.b32.xlu0 %v3947_v7, %s3859_s25 }
  0x22   : > { %308 = vst.msk [vmem:[#allocation2 + $0xd8] sm:$0xff] %vm280_vm0, %v4041_v27  ;;  %307 = vst.msk [vmem:[#allocation2 + $0xd0] sm:$0xff] %vm280_vm0, %v4054_v28  ;;  %v226_v33 = vld [vmem:[%s3913_s24] sm:$0xff]  ;;  %v4087_v34 = vld [vmem:[%s3913_s24 + $0x8] sm:$0xff] }
  0x23   : > { %310 = vst.msk [vmem:[#allocation2 + $0xe8] sm:$0xff] %vm280_vm0, %v4057_v29  ;;  %309 = vst.msk [vmem:[#allocation2 + $0xe0] sm:$0xff] %vm280_vm0, %v4066_v30  ;;  %v627_v35 = vrot.slane %v4087_v34, 1  ;;  %v626_v36 = vrot.slane %v226_v33, 1  ;;  %v275_v38 = vld [vmem:[%s3913_s24 + $0x188] sm:$0xff]  ;;  %v274_v39 = vld [vmem:[%s3913_s24 + $0x180] sm:$0xff] }
  0x24   : > { %311 = vst.msk [vmem:[#allocation2 + $0xf0] sm:$0xff] %vm280_vm0, %v4072_v32  ;;  %312 = vst.msk [vmem:[#allocation2 + $0xf8] sm:$0xff] %vm280_vm0, %v4069_v31  ;;  %v1104_v40 = vrot.slane %v226_v33, 2  ;;  %v1105_v41 = vrot.slane %v4087_v34, 2  ;;  %v228_v43 = vld [vmem:[%s3913_s24 + $0x10] sm:$0x3] }
  0x25   : > { %281 = vst.msk [vmem:[#allocation2] sm:$0xff] %vm280_vm0, %v226_v33  ;;  %282 = vst.msk [vmem:[#allocation2 + $0x8] sm:$0xff] %vm280_vm0, %v4087_v34  ;;  %v4099_v37 = vsel %vm625_vm1, %v626_v36, %v627_v35  ;;  %363 = vrot.lane.b32.xlu1 %v3956_v10, %s3859_s25  ;;  %361 = vrot.lane.b32.xlu0 %v3959_v11, %s3859_s25  ;;  %v1107_v44 = vrot.slane %v228_v43, 2  ;;  %v231_v49 = vld [vmem:[%s3913_s24 + $0x28] sm:$0x3]  ;;  %v278_v56 = vld [vmem:[%s3913_s24 + $0x1a0] sm:$0xff] }
  0x26   : > { %v4149_v42 = vsel %vm1103_vm2, %v1104_v40, %v1105_v41  ;;  %v1112_v50 = vrot.slane %v231_v49, 2  ;;  %v277_v57 = vld [vmem:[%s3913_s24 + $0x198] sm:$0xff]  ;;  %v629_v58 = vrot.slane %v228_v43, 1  ;;  %v634_v62 = vrot.slane %v231_v49, 1  ;;  %v4238_v9 = vld [vmem:[%s3913_s24 + $0x40] sm:$0x3] }
  0x27   : > { %v4157_v47 = vsel %vm1103_vm2, %v1105_v41, %v1107_v44  ;;  %v637_v34 = vrot.slane %v3922_v2, 1  ;;  %v636_v36 = vrot.slane %v3916_v0, 1  ;;  %v4254_v40 = vld [vmem:[%s3913_s24 + $0x58] sm:$0x3]  ;;  %vm3475_vm0 = vcmask 1044484  }
  0x28   : > { %v4176_v51 = vsel %vm1103_vm2, %v1110_v46, %v1112_v50  ;;  %v630_v61 = vsel %vm625_vm1, %v627_v35, %v629_v58  ;;  %v4248_v33 = vsel %vm625_vm1, %v632_v8, %v634_v62  ;;  %v639_v35 = vrot.slane %v4238_v9, 1  ;;  %v4272_v46 = vld [vmem:[%s3913_s24 + $0x70] sm:$0x3] }
  0x29   : > { %367 = vrot.lane.b32.xlu1 %v3962_v12, %s3859_s25  ;;  %365 = vrot.lane.b32.xlu0 %v3971_v13, %s3859_s25  ;;  %v641_v8 = vrot.slane %v3941_v5, 1  ;;  %v4268_v41 = vsel %vm625_vm1, %v636_v36, %v637_v34  ;;  %v644_v43 = vrot.slane %v4254_v40, 1  ;;  %v652_v58 = vrot.slane %v3956_v10, 1 }
  0x2a   : > { %v651_v62 = vrot.slane %v3959_v11, 1 }
  0x2b   : > { %v4281_v49 = vsel %vm625_vm1, %v641_v8, %v642_v3  ;;  %v4284_v50 = vsel %vm625_vm1, %v642_v3, %v644_v43  ;;  %v656_v3 = vrot.slane %v3971_v13, 1  ;;  %v249_v8 = vld [vmem:[%s3913_s24 + $0xb8] sm:$0x3] }
  0x2c   : > { %v4318_v36 = vsel %vm625_vm1, %v651_v62, %v652_v58 }
  0x2d   : > { %371 = vrot.lane.b32.xlu1 %v3974_v14, %s3859_s25  ;;  %369 = vrot.lane.b32.xlu0 %v3977_v15, %s3859_s25 }
  0x31   : > { %375 = vrot.lane.b32.xlu1 %v3995_v17, %s3859_s25  ;;  %373 = vrot.lane.b32.xlu0 %v3998_v18, %s3859_s25 }
  0x35   : > { %379 = vrot.lane.b32.xlu1 %v4007_v19, %s3859_s25  ;;  %377 = vrot.lane.b32.xlu0 %v4010_v20, %s3859_s25 }
  0x39   : > { %383 = vrot.lane.b32.xlu1 %v4013_v21, %s3859_s25  ;;  %381 = vrot.lane.b32.xlu0 %v4020_v22, %s3859_s25 }
  0x3d   : > { %387 = vrot.lane.b32.xlu1 %v4023_v23, %s3859_s25  ;;  %385 = vrot.lane.b32.xlu0 %v4026_v24, %s3859_s25 }
  0x41   : > { %391 = vrot.lane.b32.xlu1 %v4035_v25, %s3859_s25  ;;  %389 = vrot.lane.b32.xlu0 %v4038_v26, %s3859_s25 }
  0x45   : > { %395 = vrot.lane.b32.xlu1 %v4041_v27, %s3859_s25  ;;  %393 = vrot.lane.b32.xlu0 %v4054_v28, %s3859_s25 }
  0x49   : > { %399 = vrot.lane.b32.xlu1 %v4057_v29, %s3859_s25  ;;  %397 = vrot.lane.b32.xlu0 %v4066_v30, %s3859_s25 }
  0x4d   : > { %403 = vrot.lane.b32.xlu1 %v4069_v31, %s3859_s25  ;;  %401 = vrot.lane.b32.xlu0 %v4072_v32, %s3859_s25 }
  0x51   : > { %407 = vrot.lane.b32.xlu1 %v275_v38, %s3859_s25  ;;  %405 = vrot.lane.b32.xlu0 %v274_v39, %s3859_s25 }
  0x55   : > { %478 = vrot.lane.b32.xlu1 %v3922_v2, %s3860_s26  ;;  %476 = vrot.lane.b32.xlu0 %v3916_v0, %s3860_s26 }
  0x59   : > { %482 = vrot.lane.b32.xlu1 %v3932_v4, %s3860_s26  ;;  %480 = vrot.lane.b32.xlu0 %v3941_v5, %s3860_s26 }
  0x5d   : > { %486 = vrot.lane.b32.xlu1 %v3944_v6, %s3860_s26  ;;  %484 = vrot.lane.b32.xlu0 %v3947_v7, %s3860_s26 }
  0x61   : > { %490 = vrot.lane.b32.xlu1 %v3956_v10, %s3860_s26  ;;  %488 = vrot.lane.b32.xlu0 %v3959_v11, %s3860_s26 }
  0x65   : > { %494 = vrot.lane.b32.xlu1 %v3962_v12, %s3860_s26  ;;  %492 = vrot.lane.b32.xlu0 %v3971_v13, %s3860_s26 }
  0x69   : > { %498 = vrot.lane.b32.xlu1 %v3974_v14, %s3860_s26  ;;  %496 = vrot.lane.b32.xlu0 %v3977_v15, %s3860_s26 }
  0x6d   : > { %502 = vrot.lane.b32.xlu1 %v3995_v17, %s3860_s26  ;;  %500 = vrot.lane.b32.xlu0 %v3998_v18, %s3860_s26 }
  0x71   : > { %506 = vrot.lane.b32.xlu1 %v4007_v19, %s3860_s26  ;;  %504 = vrot.lane.b32.xlu0 %v4010_v20, %s3860_s26 }
  0x75   : > { %510 = vrot.lane.b32.xlu1 %v4013_v21, %s3860_s26  ;;  %508 = vrot.lane.b32.xlu0 %v4020_v22, %s3860_s26 }
  0x79   : > { %514 = vrot.lane.b32.xlu1 %v4023_v23, %s3860_s26  ;;  %512 = vrot.lane.b32.xlu0 %v4026_v24, %s3860_s26 }
  0x7d   : > { %518 = vrot.lane.b32.xlu1 %v4035_v25, %s3860_s26  ;;  %516 = vrot.lane.b32.xlu0 %v4038_v26, %s3860_s26 }
  0x81   : > { %522 = vrot.lane.b32.xlu1 %v4041_v27, %s3860_s26  ;;  %520 = vrot.lane.b32.xlu0 %v4054_v28, %s3860_s26 }
  0x85   : > { %526 = vrot.lane.b32.xlu1 %v4057_v29, %s3860_s26  ;;  %524 = vrot.lane.b32.xlu0 %v4066_v30, %s3860_s26 }
  0x87   : > { %v350_v52 = vpop.permute.xlu1 %349  ;;  %v346_v53 = vpop.permute.xlu0 %345 }
  0x88   : > { %444 = vst.msk [vmem:[#allocation2 + $0x10] sm:$0xff] %vm441_vm3, %v350_v52  ;;  %442 = vst.msk [vmem:[#allocation2] sm:$0xff] %vm441_vm3, %v346_v53  ;;  %v647_v52 = vrot.slane %v3944_v6, 1  ;;  %v649_v53 = vrot.slane %v4272_v46, 1 }
  0x89   : > { %530 = vrot.lane.b32.xlu1 %v4069_v31, %s3860_s26  ;;  %528 = vrot.lane.b32.xlu0 %v4072_v32, %s3860_s26 }
  0x8b   : > { %v352_v54 = vpop.permute.xlu1 %351  ;;  %v348_v55 = vpop.permute.xlu0 %347 }
  0x8c   : > { %445 = vst.msk [vmem:[#allocation2 + $0x18] sm:$0xff] %vm441_vm3, %v352_v54  ;;  %443 = vst.msk [vmem:[#allocation2 + $0x8] sm:$0xff] %vm441_vm3, %v348_v55  ;;  %v646_v54 = vrot.slane %v3947_v7, 1  ;;  %v4290_v55 = vld [vmem:[%s3913_s24 + $0x88] sm:$0x3] }
  0x8d   : > { %534 = vrot.lane.b32.xlu1 %v275_v38, %s3860_s26  ;;  %532 = vrot.lane.b32.xlu0 %v274_v39, %s3860_s26 }
  0x8f   : > { %v356_v59 = vpop.permute.xlu1 %355  ;;  %v354_v60 = vpop.permute.xlu0 %353 }
  0x90   : > { %447 = vst.msk [vmem:[#allocation2 + $0x28] sm:$0xff] %vm441_vm3, %v356_v59  ;;  %446 = vst.msk [vmem:[#allocation2 + $0x20] sm:$0xff] %vm441_vm3, %v354_v60  ;;  %v654_v59 = vrot.slane %v4290_v55, 1  ;;  %v4301_v60 = vsel %vm625_vm1, %v647_v52, %v649_v53 }
  0x91   : > { %538 = vrot.lane.b32.xlu1 %v278_v56, %s3860_s26  ;;  %536 = vrot.lane.b32.xlu0 %v277_v57, %s3860_s26  ;;  %s3611_s26 = sshll.u32 %s3904_s19, 3 }
  0x92   : > { %p5315_p4 = scmp.lt.s32.totalorder %s3611_s26, 15 }
  0x93   : > { %v360_v63 = vpop.permute.xlu1 %359  ;;  %v358_v1 = vpop.permute.xlu0 %357 }
  0x94   : > { %449 = vst.msk [vmem:[#allocation2 + $0x38] sm:$0xff] %vm441_vm3, %v360_v63  ;;  %448 = vst.msk [vmem:[#allocation2 + $0x30] sm:$0xff] %vm441_vm3, %v358_v1  ;;  %s5674_s26 = smov (!%p5315_p4, %s3611_s26), 15 }
  0x95   : > { %718 = vrot.lane.b32.xlu1 %v630_v61, %s3861_s27  ;;  %716 = vrot.lane.b32.xlu0 %v4099_v37, %s3861_s27  ;;  %v4265_v37 = vsel %vm625_vm1, %v637_v34, %v639_v35  ;;  %v4304_v61 = vsel %vm625_vm1, %v646_v54, %v647_v52  ;;  %v246_v34 = vld [vmem:[%s3913_s24 + $0xa0] sm:$0x3]  ;;  %v4315_v35 = vsel %vm625_vm1, %v652_v58, %v654_v59  ;;  %v664_v52 = vrot.slane %v249_v8, 1  ;;  %v4338_v59 = vld [vmem:[%s3913_s24 + $0xd0] sm:$0x3]  ;;  %s3612_s19 = sshll.u32 %s5674_s26, 3 }
  0x97   : > { %v364_v38 = vpop.permute.xlu1 %363  ;;  %v362_v39 = vpop.permute.xlu0 %361 }
  0x98   : > { %451 = vst.msk [vmem:[#allocation2 + $0x48] sm:$0xff] %vm441_vm3, %v364_v38  ;;  %450 = vst.msk [vmem:[#allocation2 + $0x40] sm:$0xff] %vm441_vm3, %v362_v39  ;;  %v657_v38 = vrot.slane %v3962_v12, 1  ;;  %v659_v39 = vrot.slane %v246_v34, 1  ;;  %v669_v34 = vrot.slane %v4338_v59, 1 }
  0x99   : > { %722 = vrot.lane.b32.xlu1 %v4248_v33, %s3861_s27  ;;  %720 = vrot.lane.b32.xlu0 %v3988_v16, %s3861_s27 }
  0x9a   : > { %v4331_v53 = vsel %vm625_vm1, %v657_v38, %v659_v39  ;;  %v4334_v54 = vsel %vm625_vm1, %v656_v3, %v657_v38  ;;  %v666_v38 = vrot.slane %v3998_v18, 1  ;;  %v4356_v39 = vld [vmem:[%s3913_s24 + $0xe8] sm:$0x3] }
  0x9b   : > { %v368_v44 = vpop.permute.xlu1 %367  ;;  %v366_v45 = vpop.permute.xlu0 %365 }
  0x9c   : > { %453 = vst.msk [vmem:[#allocation2 + $0x58] sm:$0xff] %vm441_vm3, %v368_v44  ;;  %452 = vst.msk [vmem:[#allocation2 + $0x50] sm:$0xff] %vm441_vm3, %v366_v45  ;;  %v662_v45 = vrot.slane %v3974_v14, 1 }
  0x9d   : > { %726 = vrot.lane.b32.xlu1 %v4265_v37, %s3861_s27  ;;  %724 = vrot.lane.b32.xlu0 %v4268_v41, %s3861_s27 }
  0x9e   : > { %v4347_v62 = vsel %vm625_vm1, %v662_v45, %v664_v52 }
  0x9f   : > { %v372_v56 = vpop.permute.xlu1 %371  ;;  %v370_v57 = vpop.permute.xlu0 %369 }
  0xa0   : > { %455 = vst.msk [vmem:[#allocation2 + $0x68] sm:$0xff] %vm441_vm3, %v372_v56  ;;  %454 = vst.msk [vmem:[#allocation2 + $0x60] sm:$0xff] %vm441_vm3, %v370_v57  ;;  %v661_v56 = vrot.slane %v3977_v15, 1 }
  0xa1   : > { %730 = vrot.lane.b32.xlu1 %v4284_v50, %s3861_s27  ;;  %728 = vrot.lane.b32.xlu0 %v4281_v49, %s3861_s27 }
  0xa3   : > { %v376_v63 = vpop.permute.xlu1 %375  ;;  %v374_v1 = vpop.permute.xlu0 %373 }
  0xa4   : > { %457 = vst.msk [vmem:[#allocation2 + $0x78] sm:$0xff] %vm441_vm3, %v376_v63  ;;  %456 = vst.msk [vmem:[#allocation2 + $0x70] sm:$0xff] %vm441_vm3, %v374_v1  ;;  %v4350_v63 = vsel %vm625_vm1, %v661_v56, %v662_v45  ;;  %v667_v1 = vrot.slane %v3995_v17, 1  ;;  %v671_v56 = vrot.slane %v4010_v20, 1 }
  0xa5   : > { %734 = vrot.lane.b32.xlu1 %v4301_v60, %s3861_s27  ;;  %732 = vrot.lane.b32.xlu0 %v4304_v61, %s3861_s27 }
  0xa6   : > { %v4367_v45 = vsel %vm625_vm1, %v667_v1, %v669_v34  ;;  %v4370_v52 = vsel %vm625_vm1, %v666_v38, %v667_v1  ;;  %v677_v38 = vrot.slane %v4013_v21, 1 }
  0xa7   : > { %v380_v43 = vpop.permute.xlu1 %379  ;;  %v378_v44 = vpop.permute.xlu0 %377  ;;  %5667 = vst [vmem:[#allocation4_spill] sm:$0xff] %v4367_v45  ;;  %5668 = vst [vmem:[#allocation5_spill] sm:$0xff] %v4370_v52 }
  0xa8   : > { %459 = vst.msk [vmem:[#allocation2 + $0x88] sm:$0xff] %vm441_vm3, %v380_v43  ;;  %458 = vst.msk [vmem:[#allocation2 + $0x80] sm:$0xff] %vm441_vm3, %v378_v44  ;;  %v672_v43 = vrot.slane %v4007_v19, 1  ;;  %v674_v44 = vrot.slane %v4356_v39, 1 }
  0xa9   : > { %738 = vrot.lane.b32.xlu1 %v4315_v35, %s3861_s27  ;;  %736 = vrot.lane.b32.xlu0 %v4318_v36, %s3861_s27 }
  0xaa   : > { %v4383_v34 = vsel %vm625_vm1, %v672_v43, %v674_v44  ;;  %v4386_v1 = vsel %vm625_vm1, %v671_v56, %v672_v43  ;;  %v681_v56 = vrot.slane %v4026_v24, 1 }
  0xab   : > { %v384_v57 = vpop.permute.xlu1 %383  ;;  %v382_v58 = vpop.permute.xlu0 %381 }
  0xac   : > { %461 = vst.msk [vmem:[#allocation2 + $0x98] sm:$0xff] %vm441_vm3, %v384_v57  ;;  %460 = vst.msk [vmem:[#allocation2 + $0x90] sm:$0xff] %vm441_vm3, %v382_v58 }
  0xad   : > { %742 = vrot.lane.b32.xlu1 %v4331_v53, %s3861_s27  ;;  %740 = vrot.lane.b32.xlu0 %v4334_v54, %s3861_s27 }
  0xaf   : > { %v388_v3 = vpop.permute.xlu1 %387  ;;  %v386_v8 = vpop.permute.xlu0 %385 }
  0xb0   : > { %463 = vst.msk [vmem:[#allocation2 + $0xa8] sm:$0xff] %vm441_vm3, %v388_v3  ;;  %462 = vst.msk [vmem:[#allocation2 + $0xa0] sm:$0xff] %vm441_vm3, %v386_v8  ;;  %v4374_v3 = vld [vmem:[%s3913_s24 + $0x100] sm:$0x3] }
  0xb1   : > { %746 = vrot.lane.b32.xlu1 %v4347_v62, %s3861_s27  ;;  %744 = vrot.lane.b32.xlu0 %v4350_v63, %s3861_s27  ;;  %v679_v8 = vrot.slane %v4374_v3, 1 }
  0xb3   : > { %v392_v57 = vpop.permute.xlu1 %391  ;;  %v390_v58 = vpop.permute.xlu0 %389  ;;  %v4398_v43 = vsel %vm625_vm1, %v677_v38, %v679_v8 }
  0xb4   : > { %465 = vst.msk [vmem:[#allocation2 + $0xb8] sm:$0xff] %vm441_vm3, %v392_v57  ;;  %464 = vst.msk [vmem:[#allocation2 + $0xb0] sm:$0xff] %vm441_vm3, %v390_v58  ;;  %v676_v57 = vrot.slane %v4020_v22, 1 }
  0xb5   : > { %750 = vrot.lane.b32.xlu1 %v4367_v45, %s3861_s27  ;;  %748 = vrot.lane.b32.xlu0 %v4370_v52, %s3861_s27  ;;  %v682_v45 = vrot.slane %v4023_v23, 1 }
  0xb6   : > { %v4401_v44 = vsel %vm625_vm1, %v676_v57, %v677_v38 }
  0xb7   : > { %v396_v14 = vpop.permute.xlu1 %395  ;;  %v394_v58 = vpop.permute.xlu0 %393  ;;  %v4414_v38 = vsel %vm625_vm1, %v681_v56, %v682_v45 }
  0xb8   : > { %467 = vst.msk [vmem:[#allocation2 + $0xc8] sm:$0xff] %vm441_vm3, %v396_v14  ;;  %466 = vst.msk [vmem:[#allocation2 + $0xc0] sm:$0xff] %vm441_vm3, %v394_v58 }
  0xb9   : > { %754 = vrot.lane.b32.xlu1 %v4383_v34, %s3861_s27  ;;  %752 = vrot.lane.b32.xlu0 %v4386_v1, %s3861_s27 }
  0xbb   : > { %v400_v52 = vpop.permute.xlu1 %399  ;;  %v398_v14 = vpop.permute.xlu0 %397 }
  0xbc   : > { %469 = vst.msk [vmem:[#allocation2 + $0xd8] sm:$0xff] %vm441_vm3, %v400_v52  ;;  %468 = vst.msk [vmem:[#allocation2 + $0xd0] sm:$0xff] %vm441_vm3, %v398_v14 }
  0xbd   : > { %758 = vrot.lane.b32.xlu1 %v4398_v43, %s3861_s27  ;;  %756 = vrot.lane.b32.xlu0 %v4401_v44, %s3861_s27 }
  0xbf   : > { %v404_v8 = vpop.permute.xlu1 %403  ;;  %v402_v57 = vpop.permute.xlu0 %401 }
  0xc0   : > { %471 = vst.msk [vmem:[#allocation2 + $0xe8] sm:$0xff] %vm441_vm3, %v404_v8  ;;  %470 = vst.msk [vmem:[#allocation2 + $0xe0] sm:$0xff] %vm441_vm3, %v402_v57  ;;  %v1145_v57 = vrot.slane %v3995_v17, 2 }
  0xc1   : > { %845 = vrot.lane.b32.xlu1 %v3988_v16, %s3862_s28  ;;  %760 = vrot.lane.b32.xlu0 %v4414_v38, %s3861_s27 }
  0xc3   : > { %v408_v52 = vpop.permute.xlu1 %407  ;;  %v406_v58 = vpop.permute.xlu0 %405 }
  0xc4   : > { %473 = vst.msk [vmem:[#allocation2 + $0xf8] sm:$0xff] %vm441_vm3, %v408_v52  ;;  %472 = vst.msk [vmem:[#allocation2 + $0xf0] sm:$0xff] %vm441_vm3, %v406_v58  ;;  %vm3481_vm3 = vcmask 1047559  }
  0xc5   : > { %847 = vrot.lane.b32.xlu1 %v4248_v33, %s3862_s28  ;;  %877 = vrot.lane.b32.xlu0 %v4386_v1, %s3862_s28  ;;  %v1144_v33 = vrot.slane %v3998_v18, 2  ;;  %v1147_v18 = vrot.slane %v4338_v59, 2 }
  0xc7   : > { %v479_v56 = vpop.permute.xlu1 %478  ;;  %v477_v14 = vpop.permute.xlu0 %476 }
  0xc8   : > { %574 = vst.msk [vmem:[#allocation2 + $0x8] sm:$0xff] %vm572_vm4, %v479_v56  ;;  %573 = vst.msk [vmem:[#allocation2] sm:$0xff] %vm572_vm4, %v477_v14  ;;  %v4449_v56 = vsel %vm1103_vm2, %v1144_v33, %v1145_v57 }
  0xc9   : > { %974 = vrot.lane.b32.xlu1 %v4268_v41, %s3863_s29  ;;  %879 = vrot.lane.b32.xlu0 %v4383_v34, %s3862_s28 }
  0xcb   : > { %v483_v16 = vpop.permute.xlu1 %482  ;;  %v481_v8 = vpop.permute.xlu0 %480 }
  0xcc   : > { %576 = vst.msk [vmem:[#allocation2 + $0x18] sm:$0xff] %vm572_vm4, %v483_v16  ;;  %575 = vst.msk [vmem:[#allocation2 + $0x10] sm:$0xff] %vm572_vm4, %v481_v8  ;;  %v1149_v16 = vrot.slane %v4010_v20, 2  ;;  %v1150_v8 = vrot.slane %v4007_v19, 2  ;;  %v1114_v19 = vrot.slane %v3916_v0, 2 }
  0xcd   : > { %976 = vrot.lane.b32.xlu1 %v4265_v37, %s3863_s29  ;;  %1006 = vrot.lane.b32.xlu0 %v4401_v44, %s3863_s29 }
  0xcf   : > { %v487_v52 = vpop.permute.xlu1 %486  ;;  %v485_v58 = vpop.permute.xlu0 %484 }
  0xd0   : > { %578 = vst.msk [vmem:[#allocation2 + $0x28] sm:$0xff] %vm572_vm4, %v487_v52  ;;  %577 = vst.msk [vmem:[#allocation2 + $0x20] sm:$0xff] %vm572_vm4, %v485_v58  ;;  %v1115_v52 = vrot.slane %v3922_v2, 2  ;;  %v1152_v58 = vrot.slane %v4356_v39, 2  ;;  %v1154_v39 = vrot.slane %v4020_v22, 2 }
  0xd1   : > { %1194 = vrot.lane.b32.xlu1 %v4149_v42, %s3864_s30  ;;  %1008 = vrot.lane.b32.xlu0 %v4398_v43, %s3863_s29  ;;  %v4459_v42 = vsel %vm1103_vm2, %v1145_v57, %v1147_v18 }
  0xd2   : > { %v4494_v0 = vsel %vm1103_vm2, %v1114_v19, %v1115_v52  ;;  %v4497_v2 = vsel %vm1103_vm2, %v1150_v8, %v1152_v58  ;;  %v1617_v58 = vld [vmem:[%s5656_s1 + $0x20] sm:$0xf] }
  0xd3   : > { %v491_v14 = vpop.permute.xlu1 %490  ;;  %v489_v17 = vpop.permute.xlu0 %488 }
  0xd4   : > { %580 = vst.msk [vmem:[#allocation2 + $0x38] sm:$0xff] %vm572_vm4, %v491_v14  ;;  %579 = vst.msk [vmem:[#allocation2 + $0x30] sm:$0xff] %vm572_vm4, %v489_v17  ;;  %v1613_v17 = vld [vmem:[%s5656_s1] sm:$0xff] }
  0xd5   : > { %1196 = vrot.lane.b32.xlu1 %v4157_v47, %s3864_s30  ;;  %1226 = vrot.lane.b32.xlu0 %v4449_v56, %s3864_s30  ;;  %v4470_v47 = vsel %vm1103_vm2, %v1149_v16, %v1150_v8  ;;  %v1614_v16 = vld [vmem:[%s5656_s1 + $0x8] sm:$0xff] }
  0xd7   : > { %v495_v59 = vpop.permute.xlu1 %494  ;;  %v493_v33 = vpop.permute.xlu0 %492 }
  0xd8   : > { %582 = vst.msk [vmem:[#allocation2 + $0x48] sm:$0xff] %vm572_vm4, %v495_v59  ;;  %581 = vst.msk [vmem:[#allocation2 + $0x40] sm:$0xff] %vm572_vm4, %v493_v33  ;;  %v1155_v59 = vrot.slane %v4013_v21, 2 }
  0xd9   : > { %1323 = vrot.lane.b32.xlu1 %v4164_v48, %s3865_s6  ;;  %1228 = vrot.lane.b32.xlu0 %v4459_v42, %s3864_s30 }
  0xda   : > { %v4514_v21 = vsel %vm1103_vm2, %v1154_v39, %v1155_v59  ;;  %v4537_v39 = vld [vmem:[%s3913_s24 + $0x118] sm:$0x3] }
  0xdb   : > { %v499_v57 = vpop.permute.xlu1 %498  ;;  %v497_v20 = vpop.permute.xlu0 %496 }
  0xdc   : > { %584 = vst.msk [vmem:[#allocation2 + $0x58] sm:$0xff] %vm572_vm4, %v499_v57  ;;  %583 = vst.msk [vmem:[#allocation2 + $0x50] sm:$0xff] %vm572_vm4, %v497_v20  ;;  %v1615_v20 = vld [vmem:[%s5656_s1 + $0x10] sm:$0xff] }
  0xdd   : > { %849 = vrot.lane.b32.xlu1 %v4268_v41, %s3862_s28  ;;  %1355 = vrot.lane.b32.xlu0 %v4470_v47, %s3865_s6  ;;  %v3810_v41 = vpack.c.bf16 %v1614_v16, %v1613_v17 }
  0xdf   : > { %v503_v18 = vpop.permute.xlu1 %502  ;;  %v501_v14 = vpop.permute.xlu0 %500  ;;  %3811 = vmatprep.subr.bf16.mxu0 %v3810_v41  ;;  %3818 = vmatprep.subr.bf16.mxu1 %v3810_v41 }
  0xe0   : > { %586 = vst.msk [vmem:[#allocation2 + $0x68] sm:$0xff] %vm572_vm4, %v503_v18  ;;  %585 = vst.msk [vmem:[#allocation2 + $0x60] sm:$0xff] %vm572_vm4, %v501_v14  ;;  %3813 = vmatpush3.bf16.msra.mxu0 %v3810_v41  ;;  %3821 = vmatpush3.bf16.msra.mxu1 %v3810_v41  ;;  %v1117_v18 = vrot.slane %v4238_v9, 2  ;;  %v1157_v9 = vrot.slane %v4374_v3, 2 }
  0xe1   : > { %1325 = vrot.lane.b32.xlu1 %v4176_v51, %s3865_s6  ;;  %881 = vrot.lane.b32.xlu0 %v4401_v44, %s3862_s28  ;;  %v1616_v44 = vld [vmem:[%s5656_s1 + $0x18] sm:$0xff] }
  0xe2   : > { %v3814_v22 = vpack.c.bf16 %v1616_v44, %v1615_v20 }
  0xe3   : > { %v507_v33 = vpop.permute.xlu1 %506  ;;  %v505_v57 = vpop.permute.xlu0 %504 }
  0xe4   : > { %588 = vst.msk [vmem:[#allocation2 + $0x78] sm:$0xff] %vm572_vm4, %v507_v33  ;;  %587 = vst.msk [vmem:[#allocation2 + $0x70] sm:$0xff] %vm572_vm4, %v505_v57  ;;  %3815 = vmatprep.subr.bf16.mxu0 %v3814_v22  ;;  %3819 = vmatprep.subr.bf16.mxu1 %v3814_v22 }
  0xe5   : > { %1452 = vrot.lane.b32.xlu1 %v4494_v0, %s3866_s15  ;;  %1357 = vrot.lane.b32.xlu0 %v4497_v2, %s3865_s6 }
  0xe6   : > { %3817 = vmatpush3.bf16.msra.mxu0 %v3814_v22  ;;  %3822 = vmatpush3.bf16.msra.mxu1 %v3814_v22 }
  0xe7   : > { %v511_v8 = vpop.permute.xlu1 %510  ;;  %v509_v19 = vpop.permute.xlu0 %508  ;;  %3760 = vmatprep.subr.msk.mxu0 %vm1722_vm5, %v1617_v58  ;;  %3820 = vmatprep.subr.msk.mxu1 %vm1722_vm5, %v1617_v58 }
  0xe8   : > { %590 = vst.msk [vmem:[#allocation2 + $0x88] sm:$0xff] %vm572_vm4, %v511_v8  ;;  %589 = vst.msk [vmem:[#allocation2 + $0x80] sm:$0xff] %vm572_vm4, %v509_v19 }
  0xe9   : > { %851 = vrot.lane.b32.xlu1 %v4265_v37, %s3862_s28  ;;  %1484 = vrot.lane.b32.xlu0 %v4514_v21, %s3866_s15  ;;  %v4533_v37 = vsel %vm1103_vm2, %v1115_v52, %v1117_v18  ;;  %v684_v52 = vrot.slane %v4537_v39, 1 }
  0xea   : > { %3761 = vmatpush3.msk.msra.mxu0 %vm1722_vm5, %v1617_v58  ;;  %3823 = vmatpush3.msk.msra.mxu1 %vm1722_vm5, %v1617_v58  ;;  %v1120_v58 = vrot.slane %v3932_v4, 2 }
  0xeb   : > { %v515_v14 = vpop.permute.xlu1 %514  ;;  %v513_v17 = vpop.permute.xlu0 %512  ;;  %v4558_v57 = vsel %vm625_vm1, %v682_v45, %v684_v52  ;;  %v687_v52 = vrot.slane %v4035_v25, 1 }
  0xec   : > { %592 = vst.msk [vmem:[#allocation2 + $0x98] sm:$0xff] %vm572_vm4, %v515_v14  ;;  %591 = vst.msk [vmem:[#allocation2 + $0x90] sm:$0xff] %vm572_vm4, %v513_v17  ;;  %v1159_v17 = vrot.slane %v4026_v24, 2  ;;  %v686_v24 = vrot.slane %v4038_v26, 1 }
  0xed   : > { %978 = vrot.lane.b32.xlu1 %v4281_v49, %s3863_s29  ;;  %883 = vrot.lane.b32.xlu0 %v4398_v43, %s3862_s28  ;;  %v4546_v43 = vsel %vm1103_vm2, %v1155_v59, %v1157_v9 }
  0xef   : > { %v519_v16 = vpop.permute.xlu1 %518  ;;  %v517_v41 = vpop.permute.xlu0 %516 }
  0xf0   : > { %594 = vst.msk [vmem:[#allocation2 + $0xa8] sm:$0xff] %vm572_vm4, %v519_v16  ;;  %593 = vst.msk [vmem:[#allocation2 + $0xa0] sm:$0xff] %vm572_vm4, %v517_v41 }
  0xf1   : > { %1454 = vrot.lane.b32.xlu1 %v4533_v37, %s3866_s15  ;;  %1010 = vrot.lane.b32.xlu0 %v4414_v38, %s3863_s29 }
  0xf3   : > { %v523_v3 = vpop.permute.xlu1 %522  ;;  %v521_v33 = vpop.permute.xlu0 %520 }
  0xf4   : > { %596 = vst.msk [vmem:[#allocation2 + $0xb8] sm:$0xff] %vm572_vm4, %v523_v3  ;;  %595 = vst.msk [vmem:[#allocation2 + $0xb0] sm:$0xff] %vm572_vm4, %v521_v33 }
  0xf5   : > { %980 = vrot.lane.b32.xlu1 %v4284_v50, %s3863_s29  ;;  %1486 = vrot.lane.b32.xlu0 %v4546_v43, %s3866_s15 }
  0xf7   : > { %v527_v59 = vpop.permute.xlu1 %526  ;;  %v525_v20 = vpop.permute.xlu0 %524 }
  0xf8   : > { %598 = vst.msk [vmem:[#allocation2 + $0xc8] sm:$0xff] %vm572_vm4, %v527_v59  ;;  %597 = vst.msk [vmem:[#allocation2 + $0xc0] sm:$0xff] %vm572_vm4, %v525_v20  ;;  %v1162_v59 = vrot.slane %v4537_v39, 2 }
  0xf9   : > { %1198 = vrot.lane.b32.xlu1 %v4164_v48, %s3864_s30  ;;  %1012 = vrot.lane.b32.xlu0 %v4558_v57, %s3863_s29 }
  0xfb   : > { %v531_v44 = vpop.permute.xlu1 %530  ;;  %v529_v22 = vpop.permute.xlu0 %528 }
  0xfc   : > { %600 = vst.msk [vmem:[#allocation2 + $0xd8] sm:$0xff] %vm572_vm4, %v531_v44  ;;  %599 = vst.msk [vmem:[#allocation2 + $0xd0] sm:$0xff] %vm572_vm4, %v529_v22  ;;  %v4629_v22 = vld [vmem:[%s3913_s24 + $0x130] sm:$0x3] }
  0xfd   : > { %1200 = vrot.lane.b32.xlu1 %v4176_v51, %s3864_s30  ;;  %1230 = vrot.lane.b32.xlu0 %v4470_v47, %s3864_s30  ;;  %v1119_v51 = vrot.slane %v3941_v5, 2  ;;  %v1160_v5 = vrot.slane %v4023_v23, 2  ;;  %v1122_v23 = vrot.slane %v4254_v40, 2  ;;  %v4625_v40 = vsel %vm625_vm1, %v686_v24, %v687_v52 }
  0xfe   : > { %v692_v24 = vrot.slane %v4041_v27, 1 }
  0xff   : > { %v535_v45 = vpop.permute.xlu1 %534  ;;  %v533_v8 = vpop.permute.xlu0 %532 }
 0x100   : > { %602 = vst.msk [vmem:[#allocation2 + $0xe8] sm:$0xff] %vm572_vm4, %v535_v45  ;;  %601 = vst.msk [vmem:[#allocation2 + $0xe0] sm:$0xff] %vm572_vm4, %v533_v8  ;;  %v4638_v45 = vsel %vm1103_vm2, %v1160_v5, %v1162_v59  ;;  %v689_v8 = vrot.slane %v4629_v22, 1  ;;  %v1167_v59 = vrot.slane %v4629_v22, 2 }
 0x101   : > { %1327 = vrot.lane.b32.xlu1 %v4494_v0, %s3865_s6  ;;  %1232 = vrot.lane.b32.xlu0 %v4497_v2, %s3864_s30 }
 0x103   : > { %v539_v48 = vpop.permute.xlu1 %538  ;;  %v537_v19 = vpop.permute.xlu0 %536 }
 0x104   : > { %604 = vst.msk [vmem:[#allocation2 + $0xf8] sm:$0xff] %vm572_vm4, %v539_v48  ;;  %603 = vst.msk [vmem:[#allocation2 + $0xf0] sm:$0xff] %vm572_vm4, %v537_v19  ;;  %v4648_v19 = vsel %vm625_vm1, %v687_v52, %v689_v8  ;;  %vm3540_vm4 = vcmask 64512  }
 0x105   : > { %853 = vrot.lane.b32.xlu1 %v4281_v49, %s3862_s28  ;;  %1359 = vrot.lane.b32.xlu0 %v4514_v21, %s3865_s6  ;;  %v4593_v49 = vsel %vm1103_vm2, %v1119_v51, %v1120_v58 }
 0x107   : > { %v719_v18 = vpop.permute.xlu1 %718  ;;  %v717_v14 = vpop.permute.xlu0 %716 }
 0x108   : > { %814 = vst.msk [vmem:[#allocation2 + $0x8] sm:$0xff] %vm812_vm6, %v719_v18  ;;  %813 = vst.msk [vmem:[#allocation2] sm:$0xff] %vm812_vm6, %v717_v14 }
 0x109   : > { %1329 = vrot.lane.b32.xlu1 %v4533_v37, %s3865_s6  ;;  %885 = vrot.lane.b32.xlu0 %v4414_v38, %s3862_s28  ;;  %v4604_v38 = vsel %vm1103_vm2, %v1159_v17, %v1160_v5 }
 0x10b   : > { %v723_v4 = vpop.permute.xlu1 %722  ;;  %v721_v9 = vpop.permute.xlu0 %720 }
 0x10c   : > { %816 = vst.msk [vmem:[#allocation2 + $0x18] sm:$0xff] %vm812_vm6, %v723_v4  ;;  %815 = vst.msk [vmem:[#allocation2 + $0x10] sm:$0xff] %vm812_vm6, %v721_v9  ;;  %v1124_v9 = vrot.slane %v3947_v7, 2 }
 0x10d   : > { %1456 = vrot.lane.b32.xlu1 %v4593_v49, %s3866_s15  ;;  %1361 = vrot.lane.b32.xlu0 %v4546_v43, %s3865_s6 }
 0x10f   : > { %v727_v16 = vpop.permute.xlu1 %726  ;;  %v725_v41 = vpop.permute.xlu0 %724 }
 0x110   : > { %818 = vst.msk [vmem:[#allocation2 + $0x28] sm:$0xff] %vm812_vm6, %v727_v16  ;;  %817 = vst.msk [vmem:[#allocation2 + $0x20] sm:$0xff] %vm812_vm6, %v725_v41  ;;  %v1125_v16 = vrot.slane %v3944_v6, 2 }
 0x111   : > { %855 = vrot.lane.b32.xlu1 %v4284_v50, %s3862_s28  ;;  %1488 = vrot.lane.b32.xlu0 %v4604_v38, %s3866_s15  ;;  %v4622_v50 = vsel %vm1103_vm2, %v1120_v58, %v1122_v23 }
 0x113   : > { %v731_v3 = vpop.permute.xlu1 %730  ;;  %v729_v33 = vpop.permute.xlu0 %728 }
 0x114   : > { %820 = vst.msk [vmem:[#allocation2 + $0x38] sm:$0xff] %vm812_vm6, %v731_v3  ;;  %819 = vst.msk [vmem:[#allocation2 + $0x30] sm:$0xff] %vm812_vm6, %v729_v33 }
 0x115   : > { %982 = vrot.lane.b32.xlu1 %v4304_v61, %s3863_s29  ;;  %887 = vrot.lane.b32.xlu0 %v4558_v57, %s3862_s28 }
 0x117   : > { %v735_v20 = vpop.permute.xlu1 %734  ;;  %v733_v44 = vpop.permute.xlu0 %732 }
 0x118   : > { %822 = vst.msk [vmem:[#allocation2 + $0x48] sm:$0xff] %vm812_vm6, %v735_v20  ;;  %821 = vst.msk [vmem:[#allocation2 + $0x40] sm:$0xff] %vm812_vm6, %v733_v44  ;;  %v1127_v20 = vrot.slane %v4272_v46, 2 }
 0x119   : > { %1458 = vrot.lane.b32.xlu1 %v4622_v50, %s3866_s15  ;;  %1014 = vrot.lane.b32.xlu0 %v4625_v40, %s3863_s29 }
 0x11a   : > { %v4728_v46 = vsel %vm1103_vm2, %v1125_v16, %v1127_v20 }
 0x11b   : > { %v739_v39 = vpop.permute.xlu1 %738  ;;  %v737_v48 = vpop.permute.xlu0 %736 }
 0x11c   : > { %824 = vst.msk [vmem:[#allocation2 + $0x58] sm:$0xff] %vm812_vm6, %v739_v39  ;;  %823 = vst.msk [vmem:[#allocation2 + $0x50] sm:$0xff] %vm812_vm6, %v737_v48  ;;  %v4716_v39 = vld [vmem:[%s3913_s24 + $0x148] sm:$0x3] }
 0x11d   : > { %984 = vrot.lane.b32.xlu1 %v4301_v60, %s3863_s29  ;;  %1490 = vrot.lane.b32.xlu0 %v4638_v45, %s3866_s15  ;;  %v694_v22 = vrot.slane %v4716_v39, 1 }
 0x11f   : > { %v743_v51 = vpop.permute.xlu1 %742  ;;  %v741_v58 = vpop.permute.xlu0 %740 }
 0x120   : > { %826 = vst.msk [vmem:[#allocation2 + $0x68] sm:$0xff] %vm812_vm6, %v743_v51  ;;  %825 = vst.msk [vmem:[#allocation2 + $0x60] sm:$0xff] %vm812_vm6, %v741_v58  ;;  %v4738_v58 = vsel %vm625_vm1, %v692_v24, %v694_v22 }
 0x121   : > { %1202 = vrot.lane.b32.xlu1 %v4494_v0, %s3864_s30  ;;  %1016 = vrot.lane.b32.xlu0 %v4648_v19, %s3863_s29 }
 0x123   : > { %v747_v18 = vpop.permute.xlu1 %746  ;;  %v745_v14 = vpop.permute.xlu0 %744 }
 0x124   : > { %828 = vst.msk [vmem:[#allocation2 + $0x78] sm:$0xff] %vm812_vm6, %v747_v18  ;;  %827 = vst.msk [vmem:[#allocation2 + $0x70] sm:$0xff] %vm812_vm6, %v745_v14 }
 0x125   : > { %1204 = vrot.lane.b32.xlu1 %v4533_v37, %s3864_s30  ;;  %1234 = vrot.lane.b32.xlu0 %v4514_v21, %s3864_s30 }
 0x127   : > { %v751_v17 = vpop.permute.xlu1 %750  ;;  %v749_v5 = vpop.permute.xlu0 %748 }
 0x128   : > { %830 = vst.msk [vmem:[#allocation2 + $0x88] sm:$0xff] %vm812_vm6, %v751_v17  ;;  %829 = vst.msk [vmem:[#allocation2 + $0x80] sm:$0xff] %vm812_vm6, %v749_v5 }
 0x129   : > { %1331 = vrot.lane.b32.xlu1 %v4593_v49, %s3865_s6  ;;  %1236 = vrot.lane.b32.xlu0 %v4546_v43, %s3864_s30  ;;  %v1164_v43 = vrot.slane %v4038_v26, 2 }
 0x12b   : > { %v755_v0 = vpop.permute.xlu1 %754  ;;  %v753_v4 = vpop.permute.xlu0 %752 }
 0x12c   : > { %832 = vst.msk [vmem:[#allocation2 + $0x98] sm:$0xff] %vm812_vm6, %v755_v0  ;;  %831 = vst.msk [vmem:[#allocation2 + $0x90] sm:$0xff] %vm812_vm6, %v753_v4 }
 0x12d   : > { %762 = vrot.lane.b32.xlu1 %v4558_v57, %s3861_s27  ;;  %1363 = vrot.lane.b32.xlu0 %v4604_v38, %s3865_s6  ;;  %v1165_v57 = vrot.slane %v4035_v25, 2  ;;  %v4694_v25 = vsel %vm1103_vm2, %v1124_v9, %v1125_v16 }
 0x12f   : > { %v759_v21 = vpop.permute.xlu1 %758  ;;  %v757_v37 = vpop.permute.xlu0 %756  ;;  %v4691_v26 = vsel %vm1103_vm2, %v1164_v43, %v1165_v57  ;;  %v1129_v43 = vrot.slane %v3959_v11, 2 }
 0x130   : > { %834 = vst.msk [vmem:[#allocation2 + $0xa8] sm:$0xff] %vm812_vm6, %v759_v21  ;;  %833 = vst.msk [vmem:[#allocation2 + $0xa0] sm:$0xff] %vm812_vm6, %v757_v37 }
 0x131   : > { %889 = vrot.lane.b32.xlu1 %v4625_v40, %s3862_s28  ;;  %857 = vrot.lane.b32.xlu0 %v4304_v61, %s3862_s28  ;;  %v691_v61 = vrot.slane %v4054_v28, 1 }
 0x133   : > { %v846_v41 = vpop.permute.xlu1 %845  ;;  %v761_v23 = vpop.permute.xlu0 %760  ;;  %v4711_v33 = vsel %vm625_vm1, %v691_v61, %v692_v24 }
 0x134   : > { %942 = vst.msk [vmem:[#allocation2] sm:$0xff] %vm941_vm7, %v846_v41 }
 0x135   : > { %835 = vst.msk [vmem:[#allocation2 + $0xb0] sm:$0xff] %vm812_vm6, %v761_v23  ;;  %1365 = vrot.lane.b32.xlu1 %v4638_v45, %s3865_s6  ;;  %1333 = vrot.lane.b32.xlu0 %v4622_v50, %s3865_s6  ;;  %v696_v23 = vrot.slane %v4066_v30, 1 }
 0x137   : > { %v848_v7 = vpop.permute.xlu1 %847  ;;  %v878_v6 = vpop.permute.xlu0 %877 }
 0x138   : > { %943 = vst.msk [vmem:[#allocation2 + $0x8] sm:$0xff] %vm941_vm7, %v848_v7  ;;  %958 = vst.msk [vmem:[#allocation2 + $0x80] sm:$0xff] %vm941_vm7, %v878_v6  ;;  %v697_v7 = vrot.slane %v4057_v29, 1 }
 0x139   : > { %1492 = vrot.lane.b32.xlu1 %v4691_v26, %s3866_s15  ;;  %1460 = vrot.lane.b32.xlu0 %v4694_v25, %s3866_s15 }
 0x13a   : > { %v4809_v24 = vsel %vm625_vm1, %v696_v23, %v697_v7 }
 0x13b   : > { %v975_v52 = vpop.permute.xlu1 %974  ;;  %v880_v3 = vpop.permute.xlu0 %879 }
 0x13c   : > { %1071 = vst.msk [vmem:[#allocation2] sm:$0xff] %vm1070_vm8, %v975_v52  ;;  %v1172_v52 = vrot.slane %v4716_v39, 2 }
 0x13d   : > { %959 = vst.msk [vmem:[#allocation2 + $0x88] sm:$0xff] %vm941_vm7, %v880_v3  ;;  %891 = vrot.lane.b32.xlu1 %v4648_v19, %s3862_s28  ;;  %859 = vrot.lane.b32.xlu0 %v4301_v60, %s3862_s28  ;;  %v4725_v60 = vsel %vm1103_vm2, %v1165_v57, %v1167_v59  ;;  %v1130_v57 = vrot.slane %v3956_v10, 2  ;;  %v1132_v3 = vrot.slane %v4290_v55, 2 }
 0x13f   : > { %v977_v44 = vpop.permute.xlu1 %976  ;;  %v1007_v8 = vpop.permute.xlu0 %1006  ;;  %v4791_v10 = vsel %vm1103_vm2, %v1129_v43, %v1130_v57  ;;  %v4827_v55 = vsel %vm1103_vm2, %v1130_v57, %v1132_v3  ;;  %v702_v57 = vrot.slane %v4069_v31, 1 }
 0x140   : > { %1072 = vst.msk [vmem:[#allocation2 + $0x8] sm:$0xff] %vm1070_vm8, %v977_v44  ;;  %1087 = vst.msk [vmem:[#allocation2 + $0x80] sm:$0xff] %vm1070_vm8, %v1007_v8  ;;  %v4814_v8 = vld [vmem:[%s3913_s24 + $0x160] sm:$0x3] }
 0x141   : > { %1018 = vrot.lane.b32.xlu1 %v4711_v33, %s3863_s29  ;;  %986 = vrot.lane.b32.xlu0 %v4318_v36, %s3863_s29  ;;  %v699_v39 = vrot.slane %v4814_v8, 1 }
 0x143   : > { %v1195_v48 = vpop.permute.xlu1 %1194  ;;  %v1009_v51 = vpop.permute.xlu0 %1008 }
 0x144   : > { %1291 = vst.msk [vmem:[#allocation2] sm:$0xff] %vm1290_vm9, %v1195_v48 }
 0x145   : > { %1088 = vst.msk [vmem:[#allocation2 + $0x88] sm:$0xff] %vm1070_vm8, %v1009_v51  ;;  %1494 = vrot.lane.b32.xlu1 %v4725_v60, %s3866_s15  ;;  %1462 = vrot.lane.b32.xlu0 %v4728_v46, %s3866_s15 }
 0x147   : > { %v1197_v18 = vpop.permute.xlu1 %1196  ;;  %v1227_v14 = vpop.permute.xlu0 %1226 }
 0x148   : > { %1292 = vst.msk [vmem:[#allocation2 + $0x8] sm:$0xff] %vm1290_vm9, %v1197_v18  ;;  %1307 = vst.msk [vmem:[#allocation2 + $0x80] sm:$0xff] %vm1290_vm9, %v1227_v14  ;;  %v4838_v18 = vsel %vm625_vm1, %v697_v7, %v699_v39 }
 0x149   : > { %1020 = vrot.lane.b32.xlu1 %v4738_v58, %s3863_s29  ;;  %988 = vrot.lane.b32.xlu0 %v4315_v35, %s3863_s29 }
 0x14b   : > { %v1324_v17 = vpop.permute.xlu1 %1323  ;;  %v1229_v5 = vpop.permute.xlu0 %1228 }
 0x14c   : > { %1420 = vst.msk [vmem:[#allocation2] sm:$0xff] %vm1419_vm10, %v1324_v17 }
 0x14d   : > { %1308 = vst.msk [vmem:[#allocation2 + $0x88] sm:$0xff] %vm1290_vm9, %v1229_v5  ;;  %1238 = vrot.lane.b32.xlu1 %v4604_v38, %s3864_s30  ;;  %1206 = vrot.lane.b32.xlu0 %v4593_v49, %s3864_s30 }
 0x14f   : > { %v850_v0 = vpop.permute.xlu1 %849  ;;  %v1356_v4 = vpop.permute.xlu0 %1355 }
 0x150   : > { %944 = vst.msk [vmem:[#allocation2 + $0x10] sm:$0xff] %vm941_vm7, %v850_v0 }
 0x151   : > { %1436 = vst.msk [vmem:[#allocation2 + $0x80] sm:$0xff] %vm1419_vm10, %v1356_v4  ;;  %1208 = vrot.lane.b32.xlu1 %v4622_v50, %s3864_s30  ;;  %764 = vrot.lane.b32.xlu0 %v4625_v40, %s3861_s27 }
 0x153   : > { %v1326_v21 = vpop.permute.xlu1 %1325  ;;  %v882_v37 = vpop.permute.xlu0 %881 }
 0x154   : > { %1421 = vst.msk [vmem:[#allocation2 + $0x8] sm:$0xff] %vm1419_vm10, %v1326_v21 }
 0x155   : > { %960 = vst.msk [vmem:[#allocation2 + $0x90] sm:$0xff] %vm941_vm7, %v882_v37  ;;  %1335 = vrot.lane.b32.xlu1 %v4694_v25, %s3865_s6  ;;  %1240 = vrot.lane.b32.xlu0 %v4638_v45, %s3864_s30  ;;  %v1169_v45 = vrot.slane %v4054_v28, 2 }
 0x157   : > { %v1453_v49 = vpop.permute.xlu1 %1452  ;;  %v1358_v38 = vpop.permute.xlu0 %1357 }
 0x158   : > { %1549 = vst.msk [vmem:[#allocation2] sm:$0xff] %vm1548_vm11, %v1453_v49 }
 0x159   : > { %1437 = vst.msk [vmem:[#allocation2 + $0x88] sm:$0xff] %vm1419_vm10, %v1358_v38  ;;  %766 = vrot.lane.b32.xlu1 %v4648_v19, %s3861_s27  ;;  %1367 = vrot.lane.b32.xlu0 %v4691_v26, %s3865_s6  ;;  %v1170_v19 = vrot.slane %v4041_v27, 2 }
 0x15b   : > { %v852_v50 = vpop.permute.xlu1 %851  ;;  %v1485_v40 = vpop.permute.xlu0 %1484  ;;  %v4788_v27 = vsel %vm1103_vm2, %v1169_v45, %v1170_v19 }
 0x15c   : > { %945 = vst.msk [vmem:[#allocation2 + $0x18] sm:$0xff] %vm941_vm7, %v852_v50  ;;  %v1134_v50 = vrot.slane %v3971_v13, 2 }
 0x15d   : > { %1565 = vst.msk [vmem:[#allocation2 + $0x80] sm:$0xff] %vm1548_vm11, %v1485_v40  ;;  %893 = vrot.lane.b32.xlu1 %v4711_v33, %s3862_s28  ;;  %861 = vrot.lane.b32.xlu0 %v4318_v36, %s3862_s28  ;;  %v1135_v40 = vrot.slane %v3962_v12, 2 }
 0x15f   : > { %v979_v9 = vpop.permute.xlu1 %978  ;;  %v884_v16 = vpop.permute.xlu0 %883  ;;  %v1581_v41 = vld [vmem:[#allocation2] sm:$0xff]  ;;  %v4892_v12 = vsel %vm1103_vm2, %v1134_v50, %v1135_v40 }
 0x160   : > { %1073 = vst.msk [vmem:[#allocation2 + $0x10] sm:$0xff] %vm1070_vm8, %v979_v9  ;;  %3762 = vmatprep.mubr.msk.f32.mxu0 %vm1625_vm12, %v1581_v41 }
 0x161   : > { %961 = vst.msk [vmem:[#allocation2 + $0x98] sm:$0xff] %vm941_vm7, %v884_v16  ;;  %1369 = vrot.lane.b32.xlu1 %v4725_v60, %s3865_s6  ;;  %1337 = vrot.lane.b32.xlu0 %v4728_v46, %s3865_s6 }
 0x163   : > { %v1455_v11 = vpop.permute.xlu1 %1454  ;;  %v1011_v28 = vpop.permute.xlu0 %1010 }
 0x164   : > { %v1597_v36 = vld [vmem:[#allocation2 + $0x80] sm:$0xff]  ;;  %1550 = vst.msk [vmem:[#allocation2 + $0x8] sm:$0xff] %vm1548_vm11, %v1455_v11 }
 0x165   : > { %1089 = vst.msk [vmem:[#allocation2 + $0x90] sm:$0xff] %vm1070_vm8, %v1011_v28  ;;  %3786 = vmatprep.mubr.msk.f32.mxu1 %vm1625_vm12, %v1597_v36  ;;  %1496 = vrot.lane.b32.xlu1 %v4788_v27, %s3866_s15  ;;  %v1177_v28 = vrot.slane %v4814_v8, 2  ;;  %v3842_v36 = vld [vmem:[%s3913_s24 + $0xa0] sm:$0x3] }
 0x166   : > { %1464 = vrot.lane.b32.xlu0 %v4791_v10, %s3866_s15  ;;  %v1137_v23 = vrot.slane %v3842_v36, 2 }
 0x167   : > { %v981_v6 = vpop.permute.xlu1 %980  ;;  %v1487_v61 = vpop.permute.xlu0 %1486 }
 0x168   : > { %1074 = vst.msk [vmem:[#allocation2 + $0x18] sm:$0xff] %vm1070_vm8, %v981_v6  ;;  %v4928_v3 = vsel %vm1103_vm2, %v1135_v40, %v1137_v23 }
 0x169   : > { %1566 = vst.msk [vmem:[#allocation2 + $0x88] sm:$0xff] %vm1548_vm11, %v1487_v61  ;;  %895 = vrot.lane.b32.xlu1 %v4738_v58, %s3862_s28 }
 0x16a   : > { %863 = vrot.lane.b32.xlu0 %v4315_v35, %s3862_s28  ;;  %v4824_v35 = vsel %vm1103_vm2, %v1170_v19, %v1172_v52  ;;  %v4915_v52 = vld [vmem:[%s3913_s24 + $0x178] sm:$0x3] }
 0x16b   : > { %v1199_v59 = vpop.permute.xlu1 %1198  ;;  %v1013_v20 = vpop.permute.xlu0 %1012  ;;  %v1582_v44 = vld [vmem:[#allocation2 + $0x8] sm:$0xff] }
 0x16c   : > { %1293 = vst.msk [vmem:[#allocation2 + $0x10] sm:$0xff] %vm1290_vm9, %v1199_v59  ;;  %3763 = vmatmul.mubr.msk.f32.vlgmr.msra.gmra.mrb[0].mxu0 %vm1625_vm12, %v1582_v44  ;;  %v704_v59 = vrot.slane %v4915_v52, 1 }
 0x16d   : > { %1090 = vst.msk [vmem:[#allocation2 + $0x98] sm:$0xff] %vm1070_vm8, %v1013_v20  ;;  %1022 = vrot.lane.b32.xlu1 %v4809_v24, %s3863_s29 }
 0x16e   : > { %990 = vrot.lane.b32.xlu0 %v4334_v54, %s3863_s29  ;;  %v4938_v8 = vsel %vm625_vm1, %v702_v57, %v704_v59  ;;  %v5671_v59 = vld [vmem:[#allocation4_spill] sm:$0xff] }
 0x16f   : > { %v1201_v22 = vpop.permute.xlu1 %1200  ;;  %v1231_v48 = vpop.permute.xlu0 %1230 }
 0x170   : > { %v1598_v51 = vld [vmem:[#allocation2 + $0x88] sm:$0xff]  ;;  %1294 = vst.msk [vmem:[#allocation2 + $0x18] sm:$0xff] %vm1290_vm9, %v1201_v22  ;;  %1309 = vst.msk [vmem:[#allocation2 + $0x90] sm:$0xff] %vm1290_vm9, %v1231_v48 }
 0x171   : > { %3787 = vmatmul.mubr.msk.f32.vlgmr.msra.gmra.mrb[0].mxu1 %vm1625_vm12, %v1598_v51  ;;  %1498 = vrot.lane.b32.xlu1 %v4824_v35, %s3866_s15 }
 0x172   : > { %1466 = vrot.lane.b32.xlu0 %v4827_v55, %s3866_s15 }
 0x173   : > { %v1328_v14 = vpop.permute.xlu1 %1327  ;;  %v1233_v17 = vpop.permute.xlu0 %1232 }
 0x174   : > { %1422 = vst.msk [vmem:[#allocation2 + $0x10] sm:$0xff] %vm1419_vm10, %v1328_v14 }
 0x175   : > { %1310 = vst.msk [vmem:[#allocation2 + $0x98] sm:$0xff] %vm1290_vm9, %v1233_v17  ;;  %1024 = vrot.lane.b32.xlu1 %v4838_v18, %s3863_s29 }
 0x176   : > { %992 = vrot.lane.b32.xlu0 %v4331_v53, %s3863_s29 }
 0x177   : > { %v854_v5 = vpop.permute.xlu1 %853  ;;  %v1360_v0 = vpop.permute.xlu0 %1359 }
 0x178   : > { %946 = vst.msk [vmem:[#allocation2 + $0x20] sm:$0xff] %vm941_vm7, %v854_v5 }
 0x179   : > { %1438 = vst.msk [vmem:[#allocation2 + $0x90] sm:$0xff] %vm1419_vm10, %v1360_v0  ;;  %1242 = vrot.lane.b32.xlu1 %v4691_v26, %s3864_s30 }
 0x17a   : > { %1210 = vrot.lane.b32.xlu0 %v4694_v25, %s3864_s30 }
 0x17b   : > { %v1330_v4 = vpop.permute.xlu1 %1329  ;;  %v886_v21 = vpop.permute.xlu0 %885 }
 0x17c   : > { %1423 = vst.msk [vmem:[#allocation2 + $0x18] sm:$0xff] %vm1419_vm10, %v1330_v4 }
 0x17d   : > { %962 = vst.msk [vmem:[#allocation2 + $0xa0] sm:$0xff] %vm941_vm7, %v886_v21  ;;  %1212 = vrot.lane.b32.xlu1 %v4728_v46, %s3864_s30 }
 0x17e   : > { %768 = vrot.lane.b32.xlu0 %v4711_v33, %s3861_s27 }
 0x17f   : > { %v1457_v37 = vpop.permute.xlu1 %1456  ;;  %v1362_v49 = vpop.permute.xlu0 %1361 }
 0x180   : > { %1551 = vst.msk [vmem:[#allocation2 + $0x10] sm:$0xff] %vm1548_vm11, %v1457_v37  ;;  %v1139_v37 = vrot.slane %v3977_v15, 2 }
 0x181   : > { %1439 = vst.msk [vmem:[#allocation2 + $0x98] sm:$0xff] %vm1419_vm10, %v1362_v49  ;;  %1339 = vrot.lane.b32.xlu1 %v4791_v10, %s3865_s6  ;;  %v5669_v49 = vld [vmem:[#allocation3_spill] sm:$0xff] }
 0x182   : > { %1244 = vrot.lane.b32.xlu0 %v4725_v60, %s3864_s30  ;;  %v1174_v60 = vrot.slane %v4066_v30, 2 }
 0x183   : > { %v856_v26 = vpop.permute.xlu1 %855  ;;  %v1489_v25 = vpop.permute.xlu0 %1488 }
 0x184   : > { %947 = vst.msk [vmem:[#allocation2 + $0x28] sm:$0xff] %vm941_vm7, %v856_v26  ;;  %v1140_v26 = vrot.slane %v5669_v49, 2 }
 0x185   : > { %1567 = vst.msk [vmem:[#allocation2 + $0x90] sm:$0xff] %vm1548_vm11, %v1489_v25  ;;  %770 = vrot.lane.b32.xlu1 %v4738_v58, %s3861_s27  ;;  %v1175_v58 = vrot.slane %v4057_v29, 2 }
 0x186   : > { %1371 = vrot.lane.b32.xlu0 %v4788_v27, %s3865_s6  ;;  %v4992_v15 = vsel %vm1103_vm2, %v1139_v37, %v1140_v26 }
 0x187   : > { %v983_v33 = vpop.permute.xlu1 %982  ;;  %v888_v46 = vpop.permute.xlu0 %887  ;;  %v1583_v38 = vld [vmem:[#allocation2 + $0x10] sm:$0xff]  ;;  %v4889_v29 = vsel %vm1103_vm2, %v1174_v60, %v1175_v58  ;;  %v5005_v60 = vld [vmem:[%s3913_s24 + $0x180] sm:$0xff] }
 0x188   : > { %1075 = vst.msk [vmem:[#allocation2 + $0x20] sm:$0xff] %vm1070_vm8, %v983_v33  ;;  %3765 = vmatprep.mubr.msk.f32.mxu0 %vm1625_vm12, %v1583_v38 }
 0x189   : > { %963 = vst.msk [vmem:[#allocation2 + $0xa8] sm:$0xff] %vm941_vm7, %v888_v46  ;;  %897 = vrot.lane.b32.xlu1 %v4809_v24, %s3862_s28  ;;  %v5001_v46 = vld [vmem:[%s3913_s24 + $0x188] sm:$0xff] }
 0x18a   : > { %865 = vrot.lane.b32.xlu0 %v4334_v54, %s3862_s28  ;;  %v701_v54 = vrot.slane %v4072_v32, 1  ;;  %v707_v38 = vrot.slane %v5001_v46, 1 }
 0x18b   : > { %v1459_v45 = vpop.permute.xlu1 %1458  ;;  %v1015_v19 = vpop.permute.xlu0 %1014 }
 0x18c   : > { %v1599_v43 = vld [vmem:[#allocation2 + $0x90] sm:$0xff]  ;;  %1552 = vst.msk [vmem:[#allocation2 + $0x18] sm:$0xff] %vm1548_vm11, %v1459_v45  ;;  %v4910_v11 = vsel %vm625_vm1, %v701_v54, %v702_v57 }
 0x18d   : > { %1091 = vst.msk [vmem:[#allocation2 + $0xa0] sm:$0xff] %vm1070_vm8, %v1015_v19  ;;  %3789 = vmatprep.mubr.msk.f32.mxu1 %vm1625_vm12, %v1599_v43  ;;  %1373 = vrot.lane.b32.xlu1 %v4824_v35, %s3865_s6 }
 0x18e   : > { %1341 = vrot.lane.b32.xlu0 %v4827_v55, %s3865_s6 }
 0x18f   : > { %v985_v13 = vpop.permute.xlu1 %984  ;;  %v1491_v30 = vpop.permute.xlu0 %1490 }
 0x190   : > { %1076 = vst.msk [vmem:[#allocation2 + $0x28] sm:$0xff] %vm1070_vm8, %v985_v13  ;;  %v1182_v13 = vrot.slane %v4915_v52, 2 }
 0x191   : > { %1568 = vst.msk [vmem:[#allocation2 + $0x98] sm:$0xff] %vm1548_vm11, %v1491_v30  ;;  %1500 = vrot.lane.b32.xlu1 %v4889_v29, %s3866_s15  ;;  %v3845_v30 = vld [vmem:[%s3913_s24 + $0xb8] sm:$0x3] }
 0x192   : > { %1468 = vrot.lane.b32.xlu0 %v4892_v12, %s3866_s15  ;;  %v1142_v54 = vrot.slane %v3845_v30, 2 }
 0x193   : > { %v1203_v9 = vpop.permute.xlu1 %1202  ;;  %v1017_v16 = vpop.permute.xlu0 %1016  ;;  %v1584_v41 = vld [vmem:[#allocation2 + $0x18] sm:$0xff] }
 0x194   : > { %1295 = vst.msk [vmem:[#allocation2 + $0x20] sm:$0xff] %vm1290_vm9, %v1203_v9  ;;  %3766 = vmatmul.mubr.msk.f32.gmra.mrb[2].mxu0 %vm1625_vm12, %v1584_v41  ;;  %v5670_v41 = vld [vmem:[#allocation5_spill] sm:$0xff] }
 0x195   : > { %1092 = vst.msk [vmem:[#allocation2 + $0xa8] sm:$0xff] %vm1070_vm8, %v1017_v16  ;;  %899 = vrot.lane.b32.xlu1 %v4838_v18, %s3862_s28  ;;  %v5020_v16 = vld [vmem:[%s3913_s24 + $0x190] sm:$0x3] }
 0x196   : > { %867 = vrot.lane.b32.xlu0 %v4331_v53, %s3862_s28  ;;  %v4925_v53 = vsel %vm1103_vm2, %v1175_v58, %v1177_v28  ;;  %v706_v58 = vrot.slane %v5005_v60, 1  ;;  %v5031_v28 = vsel %vm1103_vm2, %v1140_v26, %v1142_v54  ;;  %v709_v36 = vrot.slane %v5020_v16, 1 }
 0x197   : > { %v1205_v7 = vpop.permute.xlu1 %1204  ;;  %v1235_v6 = vpop.permute.xlu0 %1234 }
 0x198   : > { %v1600_v61 = vld [vmem:[#allocation2 + $0x98] sm:$0xff]  ;;  %1296 = vst.msk [vmem:[#allocation2 + $0x28] sm:$0xff] %vm1290_vm9, %v1205_v7  ;;  %1311 = vst.msk [vmem:[#allocation2 + $0xa0] sm:$0xff] %vm1290_vm9, %v1235_v6  ;;  %v708_v43 = vsel %vm625_vm1, %v706_v58, %v707_v38  ;;  %v5041_v6 = vsel %vm625_vm1, %v707_v38, %v709_v36 }
 0x199   : > { %3790 = vmatmul.mubr.msk.f32.gmra.mrb[2].mxu1 %vm1625_vm12, %v1600_v61  ;;  %1026 = vrot.lane.b32.xlu1 %v4910_v11, %s3863_s29 }
 0x19a   : > { %994 = vrot.lane.b32.xlu0 %v4350_v63, %s3863_s29 }
 0x19b   : > { %v1332_v20 = vpop.permute.xlu1 %1331  ;;  %v1237_v44 = vpop.permute.xlu0 %1236 }
 0x19c   : > { %1424 = vst.msk [vmem:[#allocation2 + $0x20] sm:$0xff] %vm1419_vm10, %v1332_v20 }
 0x19d   : > { %1312 = vst.msk [vmem:[#allocation2 + $0xa8] sm:$0xff] %vm1290_vm9, %v1237_v44  ;;  %1502 = vrot.lane.b32.xlu1 %v4925_v53, %s3866_s15 }
 0x19e   : > { %1470 = vrot.lane.b32.xlu0 %v4928_v3, %s3866_s15 }
 0x19f   : > { %v763_v39 = vpop.permute.xlu1 %762  ;;  %v1364_v22 = vpop.permute.xlu0 %1363 }
 0x1a0   : > { %836 = vst.msk [vmem:[#allocation2 + $0xb8] sm:$0xff] %vm812_vm6, %v763_v39 }
 0x1a1   : > { %1440 = vst.msk [vmem:[#allocation2 + $0xa0] sm:$0xff] %vm1419_vm10, %v1364_v22  ;;  %1028 = vrot.lane.b32.xlu1 %v4938_v8, %s3863_s29 }
 0x1a2   : > { %996 = vrot.lane.b32.xlu0 %v4347_v62, %s3863_s29 }
 0x1a3   : > { %v890_v48 = vpop.permute.xlu1 %889  ;;  %v858_v51 = vpop.permute.xlu0 %857 }
 0x1a4   : > { %964 = vst.msk [vmem:[#allocation2 + $0xb0] sm:$0xff] %vm941_vm7, %v890_v48  ;;  %948 = vst.msk [vmem:[#allocation2 + $0x30] sm:$0xff] %vm941_vm7, %v858_v51 }
 0x1a5   : > { %1246 = vrot.lane.b32.xlu1 %v4788_v27, %s3864_s30 }
 0x1a6   : > { %1214 = vrot.lane.b32.xlu0 %v4791_v10, %s3864_s30 }
 0x1a7   : > { %v1366_v14 = vpop.permute.xlu1 %1365  ;;  %v1334_v17 = vpop.permute.xlu0 %1333 }
 0x1a8   : > { %1441 = vst.msk [vmem:[#allocation2 + $0xa8] sm:$0xff] %vm1419_vm10, %v1366_v14  ;;  %1425 = vst.msk [vmem:[#allocation2 + $0x28] sm:$0xff] %vm1419_vm10, %v1334_v17 }
 0x1a9   : > { %1216 = vrot.lane.b32.xlu1 %v4827_v55, %s3864_s30 }
 0x1aa   : > { %772 = vrot.lane.b32.xlu0 %v4809_v24, %s3861_s27 }
 0x1ab   : > { %v1493_v5 = vpop.permute.xlu1 %1492  ;;  %v1461_v0 = vpop.permute.xlu0 %1460 }
 0x1ac   : > { %1569 = vst.msk [vmem:[#allocation2 + $0xa0] sm:$0xff] %vm1548_vm11, %v1493_v5  ;;  %1553 = vst.msk [vmem:[#allocation2 + $0x20] sm:$0xff] %vm1548_vm11, %v1461_v0 }
 0x1ad   : > { %1343 = vrot.lane.b32.xlu1 %v4892_v12, %s3865_s6 }
 0x1ae   : > { %1248 = vrot.lane.b32.xlu0 %v4824_v35, %s3864_s30  ;;  %v1179_v35 = vrot.slane %v4072_v32, 2 }
 0x1af   : > { %v892_v27 = vpop.permute.xlu1 %891  ;;  %v860_v10 = vpop.permute.xlu0 %859 }
 0x1b0   : > { %965 = vst.msk [vmem:[#allocation2 + $0xb8] sm:$0xff] %vm941_vm7, %v892_v27  ;;  %949 = vst.msk [vmem:[#allocation2 + $0x38] sm:$0xff] %vm941_vm7, %v860_v10 }
 0x1b1   : > { %774 = vrot.lane.b32.xlu1 %v4838_v18, %s3861_s27  ;;  %v1180_v18 = vrot.slane %v4069_v31, 2 }
 0x1b2   : > { %1375 = vrot.lane.b32.xlu0 %v4889_v29, %s3865_s6 }
 0x1b3   : > { %v1019_v24 = vpop.permute.xlu1 %1018  ;;  %v987_v55 = vpop.permute.xlu0 %986  ;;  %v1585_v4 = vld [vmem:[#allocation2 + $0x20] sm:$0xff]  ;;  %v4989_v31 = vsel %vm1103_vm2, %v1179_v35, %v1180_v18 }
 0x1b4   : > { %v1601_v21 = vld [vmem:[#allocation2 + $0xa0] sm:$0xff]  ;;  %1093 = vst.msk [vmem:[#allocation2 + $0xb0] sm:$0xff] %vm1070_vm8, %v1019_v24  ;;  %1077 = vst.msk [vmem:[#allocation2 + $0x30] sm:$0xff] %vm1070_vm8, %v987_v55  ;;  %3768 = vmatprep.mubr.msk.f32.mxu0 %vm1625_vm12, %v1585_v4 }
 0x1b5   : > { %3792 = vmatprep.mubr.msk.f32.mxu1 %vm1625_vm12, %v1601_v21  ;;  %901 = vrot.lane.b32.xlu1 %v4910_v11, %s3862_s28  ;;  %v5095_v55 = vld [vmem:[%s3913_s24 + $0x1a0] sm:$0xff]  ;;  %v5099_v21 = vld [vmem:[%s3913_s24 + $0x198] sm:$0xff] }
 0x1b6   : > { %869 = vrot.lane.b32.xlu0 %v4350_v63, %s3862_s28  ;;  %v712_v4 = vrot.slane %v5095_v55, 1  ;;  %v711_v35 = vrot.slane %v5099_v21, 1 }
 0x1b7   : > { %v1495_v25 = vpop.permute.xlu1 %1494  ;;  %v1463_v33 = vpop.permute.xlu0 %1462 }
 0x1b8   : > { %1570 = vst.msk [vmem:[#allocation2 + $0xa8] sm:$0xff] %vm1548_vm11, %v1495_v25  ;;  %1554 = vst.msk [vmem:[#allocation2 + $0x28] sm:$0xff] %vm1548_vm11, %v1463_v33  ;;  %v713_v25 = vsel %vm625_vm1, %v711_v35, %v712_v4  ;;  %v1187_v33 = vrot.slane %v5020_v16, 2 }
 0x1b9   : > { %1377 = vrot.lane.b32.xlu1 %v4925_v53, %s3865_s6 }
 0x1ba   : > { %1345 = vrot.lane.b32.xlu0 %v4928_v3, %s3865_s6 }
 0x1bb   : > { %v1021_v32 = vpop.permute.xlu1 %1020  ;;  %v989_v63 = vpop.permute.xlu0 %988 }
 0x1bc   : > { %1094 = vst.msk [vmem:[#allocation2 + $0xb8] sm:$0xff] %vm1070_vm8, %v1021_v32  ;;  %1078 = vst.msk [vmem:[#allocation2 + $0x38] sm:$0xff] %vm1070_vm8, %v989_v63 }
 0x1bd   : > { %1504 = vrot.lane.b32.xlu1 %v4989_v31, %s3866_s15 }
 0x1be   : > { %1472 = vrot.lane.b32.xlu0 %v4992_v15, %s3866_s15 }
 0x1bf   : > { %v1239_v50 = vpop.permute.xlu1 %1238  ;;  %v1207_v40 = vpop.permute.xlu0 %1206  ;;  %v1586_v45 = vld [vmem:[#allocation2 + $0x28] sm:$0xff] }
 0x1c0   : > { %v1602_v19 = vld [vmem:[#allocation2 + $0xa8] sm:$0xff]  ;;  %1313 = vst.msk [vmem:[#allocation2 + $0xb0] sm:$0xff] %vm1290_vm9, %v1239_v50  ;;  %1297 = vst.msk [vmem:[#allocation2 + $0x30] sm:$0xff] %vm1290_vm9, %v1207_v40  ;;  %3769 = vmatmul.mubr.msk.f32.gmra.mrb[4].mxu0 %vm1625_vm12, %v1586_v45 }
 0x1c1   : > { %3793 = vmatmul.mubr.msk.f32.gmra.mrb[4].mxu1 %vm1625_vm12, %v1602_v19  ;;  %903 = vrot.lane.b32.xlu1 %v4938_v8, %s3862_s28 }
 0x1c2   : > { %871 = vrot.lane.b32.xlu0 %v4347_v62, %s3862_s28  ;;  %v5028_v62 = vsel %vm1103_vm2, %v1180_v18, %v1182_v13 }
 0x1c3   : > { %v1209_v57 = vpop.permute.xlu1 %1208  ;;  %v765_v9 = vpop.permute.xlu0 %764 }
 0x1c4   : > { %1298 = vst.msk [vmem:[#allocation2 + $0x38] sm:$0xff] %vm1290_vm9, %v1209_v57 }
 0x1c5   : > { %837 = vst.msk [vmem:[#allocation2 + $0xc0] sm:$0xff] %vm812_vm6, %v765_v9  ;;  %1030 = vrot.lane.b32.xlu1 %v708_v43, %s3863_s29 }
 0x1c6   : > { %998 = vrot.lane.b32.xlu0 %v5670_v41, %s3863_s29 }
 0x1c7   : > { %v1336_v23 = vpop.permute.xlu1 %1335  ;;  %v1241_v7 = vpop.permute.xlu0 %1240 }
 0x1c8   : > { %1426 = vst.msk [vmem:[#allocation2 + $0x30] sm:$0xff] %vm1419_vm10, %v1336_v23 }
 0x1c9   : > { %1314 = vst.msk [vmem:[#allocation2 + $0xb8] sm:$0xff] %vm1290_vm9, %v1241_v7  ;;  %1506 = vrot.lane.b32.xlu1 %v5028_v62, %s3866_s15 }
 0x1ca   : > { %1474 = vrot.lane.b32.xlu0 %v5031_v28, %s3866_s15 }
 0x1cb   : > { %v767_v61 = vpop.permute.xlu1 %766  ;;  %v1368_v52 = vpop.permute.xlu0 %1367 }
 0x1cc   : > { %838 = vst.msk [vmem:[#allocation2 + $0xc8] sm:$0xff] %vm812_vm6, %v767_v61 }
 0x1cd   : > { %1442 = vst.msk [vmem:[#allocation2 + $0xb0] sm:$0xff] %vm1419_vm10, %v1368_v52  ;;  %1032 = vrot.lane.b32.xlu1 %v5041_v6, %s3863_s29 }
 0x1ce   : > { %1000 = vrot.lane.b32.xlu0 %v5671_v59, %s3863_s29 }
 0x1cf   : > { %v894_v20 = vpop.permute.xlu1 %893  ;;  %v862_v44 = vpop.permute.xlu0 %861 }
 0x1d0   : > { %966 = vst.msk [vmem:[#allocation2 + $0xc0] sm:$0xff] %vm941_vm7, %v894_v20  ;;  %950 = vst.msk [vmem:[#allocation2 + $0x40] sm:$0xff] %vm941_vm7, %v862_v44 }
 0x1d1   : > { %1250 = vrot.lane.b32.xlu1 %v4889_v29, %s3864_s30 }
 0x1d2   : > { %1218 = vrot.lane.b32.xlu0 %v4892_v12, %s3864_s30 }
 0x1d3   : > { %v1370_v39 = vpop.permute.xlu1 %1369  ;;  %v1338_v22 = vpop.permute.xlu0 %1337 }
 0x1d4   : > { %1443 = vst.msk [vmem:[#allocation2 + $0xb8] sm:$0xff] %vm1419_vm10, %v1370_v39  ;;  %1427 = vst.msk [vmem:[#allocation2 + $0x38] sm:$0xff] %vm1419_vm10, %v1338_v22 }
 0x1d5   : > { %1220 = vrot.lane.b32.xlu1 %v4928_v3, %s3864_s30 }
 0x1d6   : > { %776 = vrot.lane.b32.xlu0 %v4910_v11, %s3861_s27 }
 0x1d7   : > { %v1497_v48 = vpop.permute.xlu1 %1496 }
 0x1d8   : > { %v1465_v51 = vpop.permute.xlu0 %1464  ;;  %1571 = vst.msk [vmem:[#allocation2 + $0xb0] sm:$0xff] %vm1548_vm11, %v1497_v48 }
 0x1d9   : > { %1555 = vst.msk [vmem:[#allocation2 + $0x30] sm:$0xff] %vm1548_vm11, %v1465_v51  ;;  %1347 = vrot.lane.b32.xlu1 %v4992_v15, %s3865_s6 }
 0x1da   : > { %1252 = vrot.lane.b32.xlu0 %v4925_v53, %s3864_s30  ;;  %v1185_v53 = vrot.slane %v5001_v46, 2  ;;  %v279_v46 = vld [vmem:[%s3913_s24 + $0x1a8] sm:$0x3] }
 0x1db   : > { %v896_v29 = vpop.permute.xlu1 %895 }
 0x1dc   : > { %v864_v12 = vpop.permute.xlu0 %863  ;;  %967 = vst.msk [vmem:[#allocation2 + $0xc8] sm:$0xff] %vm941_vm7, %v896_v29  ;;  %v1188_v38 = vsel %vm1103_vm2, %v1185_v53, %v1187_v33 }
 0x1dd   : > { %951 = vst.msk [vmem:[#allocation2 + $0x48] sm:$0xff] %vm941_vm7, %v864_v12  ;;  %778 = vrot.lane.b32.xlu1 %v4938_v8, %s3861_s27  ;;  %v1184_v8 = vrot.slane %v5005_v60, 2  ;;  %v714_v60 = vrot.slane %v279_v46, 1 }
 0x1de   : > { %1379 = vrot.lane.b32.xlu0 %v4989_v31, %s3865_s6 }
 0x1df   : > { %v1023_v11 = vpop.permute.xlu1 %1022  ;;  %v1603_v17 = vld [vmem:[#allocation2 + $0xb0] sm:$0xff]  ;;  %v1186_v27 = vsel %vm1103_vm2, %v1184_v8, %v1185_v53  ;;  %v715_v40 = vsel %vm625_vm1, %v712_v4, %v714_v60  ;;  %vm3477_vm1 = vcmask 1045509  }
 0x1e0   : > { %v991_v3 = vpop.permute.xlu0 %990  ;;  %v1587_v14 = vld [vmem:[#allocation2 + $0x30] sm:$0xff]  ;;  %1095 = vst.msk [vmem:[#allocation2 + $0xc0] sm:$0xff] %vm1070_vm8, %v1023_v11  ;;  %3795 = vmatprep.mubr.msk.f32.mxu1 %vm1625_vm12, %v1603_v17 }
 0x1e1   : > { %1079 = vst.msk [vmem:[#allocation2 + $0x40] sm:$0xff] %vm1070_vm8, %v991_v3  ;;  %3771 = vmatprep.mubr.msk.f32.mxu0 %vm1625_vm12, %v1587_v14  ;;  %905 = vrot.lane.b32.xlu1 %v708_v43, %s3862_s28 }
 0x1e2   : > { %873 = vrot.lane.b32.xlu0 %v5670_v41, %s3862_s28  ;;  %v1192_v41 = vrot.slane %v279_v46, 2 }
 0x1e3   : > { %v1499_v5 = vpop.permute.xlu1 %1498 }
 0x1e4   : > { %v1467_v0 = vpop.permute.xlu0 %1466  ;;  %1572 = vst.msk [vmem:[#allocation2 + $0xb8] sm:$0xff] %vm1548_vm11, %v1499_v5 }
 0x1e5   : > { %1556 = vst.msk [vmem:[#allocation2 + $0x38] sm:$0xff] %vm1548_vm11, %v1467_v0  ;;  %1381 = vrot.lane.b32.xlu1 %v5028_v62, %s3865_s6 }
 0x1e6   : > { %1349 = vrot.lane.b32.xlu0 %v5031_v28, %s3865_s6 }
 0x1e7   : > { %v1025_v10 = vpop.permute.xlu1 %1024 }
 0x1e8   : > { %v993_v24 = vpop.permute.xlu0 %992  ;;  %1096 = vst.msk [vmem:[#allocation2 + $0xc8] sm:$0xff] %vm1070_vm8, %v1025_v10 }
 0x1e9   : > { %1080 = vst.msk [vmem:[#allocation2 + $0x48] sm:$0xff] %vm1070_vm8, %v993_v24  ;;  %1508 = vrot.lane.b32.xlu1 %v1186_v27, %s3866_s15 }
 0x1ea   : > { %1476 = vrot.lane.b32.xlu0 %v4449_v56, %s3866_s15 }
 0x1eb   : > { %v1243_v18 = vpop.permute.xlu1 %1242  ;;  %v1604_v26 = vld [vmem:[#allocation2 + $0xb8] sm:$0xff] }
 0x1ec   : > { %v1211_v37 = vpop.permute.xlu0 %1210  ;;  %v1588_v49 = vld [vmem:[#allocation2 + $0x38] sm:$0xff]  ;;  %1315 = vst.msk [vmem:[#allocation2 + $0xc0] sm:$0xff] %vm1290_vm9, %v1243_v18  ;;  %3796 = vmatmul.mubr.msk.f32.gmra.mrb[6].mxu1 %vm1625_vm12, %v1604_v26 }
 0x1ed   : > { %1299 = vst.msk [vmem:[#allocation2 + $0x40] sm:$0xff] %vm1290_vm9, %v1211_v37  ;;  %3772 = vmatmul.mubr.msk.f32.gmra.mrb[6].mxu0 %vm1625_vm12, %v1588_v49  ;;  %907 = vrot.lane.b32.xlu1 %v5041_v6, %s3862_s28 }
 0x1ee   : > { %875 = vrot.lane.b32.xlu0 %v5671_v59, %s3862_s28 }
 0x1ef   : > { %v1213_v32 = vpop.permute.xlu1 %1212 }
 0x1f0   : > { %v769_v63 = vpop.permute.xlu0 %768  ;;  %1300 = vst.msk [vmem:[#allocation2 + $0x48] sm:$0xff] %vm1290_vm9, %v1213_v32 }
 0x1f1   : > { %839 = vst.msk [vmem:[#allocation2 + $0xd0] sm:$0xff] %vm812_vm6, %v769_v63  ;;  %1034 = vrot.lane.b32.xlu1 %v713_v25, %s3863_s29 }
 0x1f2   : > { %1002 = vrot.lane.b32.xlu0 %v4386_v1, %s3863_s29 }
 0x1f3   : > { %v1340_v58 = vpop.permute.xlu1 %1339 }
 0x1f4   : > { %v1245_v50 = vpop.permute.xlu0 %1244  ;;  %1428 = vst.msk [vmem:[#allocation2 + $0x40] sm:$0xff] %vm1419_vm10, %v1340_v58 }
 0x1f5   : > { %1316 = vst.msk [vmem:[#allocation2 + $0xc8] sm:$0xff] %vm1290_vm9, %v1245_v50  ;;  %1510 = vrot.lane.b32.xlu1 %v1188_v38, %s3866_s15 }
 0x1f6   : > { %1478 = vrot.lane.b32.xlu0 %v4459_v42, %s3866_s15 }
 0x1f7   : > { %v771_v45 = vpop.permute.xlu1 %770 }
 0x1f8   : > { %v1372_v19 = vpop.permute.xlu0 %1371  ;;  %840 = vst.msk [vmem:[#allocation2 + $0xd8] sm:$0xff] %vm812_vm6, %v771_v45 }
 0x1f9   : > { %1444 = vst.msk [vmem:[#allocation2 + $0xc0] sm:$0xff] %vm1419_vm10, %v1372_v19  ;;  %1036 = vrot.lane.b32.xlu1 %v715_v40, %s3863_s29  ;;  %v5209_v40 = vld [vmem:[%s5657_s2] ss:$0 sm:$0xff] }
 0x1fa   : > { %1004 = vrot.lane.b32.xlu0 %v4383_v34, %s3863_s29 }
 0x1fb   : > { %v898_v1 = vpop.permute.xlu1 %897 }
 0x1fc   : > { %v866_v43 = vpop.permute.xlu0 %865  ;;  %968 = vst.msk [vmem:[#allocation2 + $0xd0] sm:$0xff] %vm941_vm7, %v898_v1 }
 0x1fd   : > { %952 = vst.msk [vmem:[#allocation2 + $0x50] sm:$0xff] %vm941_vm7, %v866_v43  ;;  %1254 = vrot.lane.b32.xlu1 %v4989_v31, %s3864_s30  ;;  %v1190_v31 = vrot.slane %v5095_v55, 2 }
 0x1fe   : > { %1222 = vrot.lane.b32.xlu0 %v4992_v15, %s3864_s30  ;;  %v1189_v15 = vrot.slane %v5099_v21, 2 }
 0x1ff   : > { %v1374_v13 = vpop.permute.xlu1 %1373 }
 0x200   : > { %v1342_v30 = vpop.permute.xlu0 %1341  ;;  %1445 = vst.msk [vmem:[#allocation2 + $0xc8] sm:$0xff] %vm1419_vm10, %v1374_v13  ;;  %v1191_v16 = vsel %vm1103_vm2, %v1189_v15, %v1190_v31 }
 0x201   : > { %1429 = vst.msk [vmem:[#allocation2 + $0x48] sm:$0xff] %vm1419_vm10, %v1342_v30  ;;  %1256 = vrot.lane.b32.xlu1 %v5028_v62, %s3864_s30 }
 0x202   : > { %1224 = vrot.lane.b32.xlu0 %v5031_v28, %s3864_s30  ;;  %s5360_s30 = scalar_lea.vmem %s5660_s5, %s3612_s19 }
 0x203   : > { %v1501_v34 = vpop.permute.xlu1 %1500 }
 0x204   : > { %v1469_v54 = vpop.permute.xlu0 %1468  ;;  %1573 = vst.msk [vmem:[#allocation2 + $0xc0] sm:$0xff] %vm1548_vm11, %v1501_v34 }
 0x205   : > { %1557 = vst.msk [vmem:[#allocation2 + $0x40] sm:$0xff] %vm1548_vm11, %v1469_v54  ;;  %1383 = vrot.lane.b32.xlu1 %v1186_v27, %s3865_s6  ;;  %v5220_v54 = vld [vmem:[%s5658_s3] ss:$0 sm:$0xff] }
 0x206   : > { %1351 = vrot.lane.b32.xlu0 %v4449_v56, %s3865_s6 }
 0x207   : > { %v900_v57 = vpop.permute.xlu1 %899 }
 0x208   : > { %v868_v9 = vpop.permute.xlu0 %867  ;;  %969 = vst.msk [vmem:[#allocation2 + $0xd8] sm:$0xff] %vm941_vm7, %v900_v57  ;;  %v3867_v57 = vmov 1983009808  }
 0x209   : > { %953 = vst.msk [vmem:[#allocation2 + $0x58] sm:$0xff] %vm941_vm7, %v868_v9  ;;  %1385 = vrot.lane.b32.xlu1 %v1188_v38, %s3865_s6  ;;  %v2095_v9 = vunpack.c.l.s4 %v3867_v57 }
 0x20a   : > { %1353 = vrot.lane.b32.xlu0 %v4459_v42, %s3865_s6  ;;  %v1193_v42 = vsel %vm1103_vm2, %v1190_v31, %v1192_v41  ;;  %vm3479_vm2 = vcmask 1046534  }
 0x20b   : > { %v1027_v62 = vpop.permute.xlu1 %1026  ;;  %v1605_v36 = vld [vmem:[#allocation2 + $0xc0] sm:$0xff] }
 0x20c   : > { %v995_v56 = vpop.permute.xlu0 %994  ;;  %v1589_v28 = vld [vmem:[#allocation2 + $0x40] sm:$0xff]  ;;  %1097 = vst.msk [vmem:[#allocation2 + $0xd0] sm:$0xff] %vm1070_vm8, %v1027_v62  ;;  %3798 = vmatprep.mubr.msk.f32.mxu1 %vm1625_vm12, %v1605_v36 }
 0x20d   : > { %1081 = vst.msk [vmem:[#allocation2 + $0x50] sm:$0xff] %vm1070_vm8, %v995_v56  ;;  %3774 = vmatprep.mubr.msk.f32.mxu0 %vm1625_vm12, %v1589_v28  ;;  %1512 = vrot.lane.b32.xlu1 %v1191_v16, %s3866_s15  ;;  %v2097_v16 = vlaneseq  ;;  %v5230_v36 = vld [vmem:[%s5659_s4] ss:$0 sm:$0xff] }
 0x20e   : > { %1480 = vrot.lane.b32.xlu0 %v4470_v47, %s3866_s15 }
 0x20f   : > { %v1503_v23 = vpop.permute.xlu1 %1502 }
 0x210   : > { %v1471_v7 = vpop.permute.xlu0 %1470  ;;  %1574 = vst.msk [vmem:[#allocation2 + $0xc8] sm:$0xff] %vm1548_vm11, %v1503_v23 }
 0x211   : > { %1558 = vst.msk [vmem:[#allocation2 + $0x48] sm:$0xff] %vm1548_vm11, %v1471_v7  ;;  %1514 = vrot.lane.b32.xlu1 %v1193_v42, %s3866_s15  ;;  %v2096_v7 = vunpack.c.0.s8 %v2095_v9 }
 0x212   : > { %1482 = vrot.lane.b32.xlu0 %v4497_v2, %s3866_s15 }
 0x213   : > { %v1029_v6 = vpop.permute.xlu1 %1028 }
 0x214   : > { %v997_v61 = vpop.permute.xlu0 %996  ;;  %1098 = vst.msk [vmem:[#allocation2 + $0xd8] sm:$0xff] %vm1070_vm8, %v1029_v6  ;;  %v2098_v6 = vshrl.u32 %v2097_v16, 7 }
 0x215   : > { %1082 = vst.msk [vmem:[#allocation2 + $0x58] sm:$0xff] %vm1070_vm8, %v997_v61 }
 0x217   : > { %v1247_v47 = vpop.permute.xlu1 %1246  ;;  %v1606_v20 = vld [vmem:[#allocation2 + $0xc8] sm:$0xff] }
 0x218   : > { %v1215_v52 = vpop.permute.xlu0 %1214  ;;  %v1590_v59 = vld [vmem:[#allocation2 + $0x48] sm:$0xff]  ;;  %1317 = vst.msk [vmem:[#allocation2 + $0xd0] sm:$0xff] %vm1290_vm9, %v1247_v47  ;;  %3799 = vmatmul.mubr.msk.f32.gmra.mrb[8].mxu1 %vm1625_vm12, %v1606_v20 }
 0x219   : > { %1301 = vst.msk [vmem:[#allocation2 + $0x50] sm:$0xff] %vm1290_vm9, %v1215_v52  ;;  %3775 = vmatmul.mubr.msk.f32.gmra.mrb[8].mxu0 %vm1625_vm12, %v1590_v59 }
 0x21b   : > { %v1217_v44 = vpop.permute.xlu1 %1216 }
 0x21c   : > { %v773_v2 = vpop.permute.xlu0 %772  ;;  %1302 = vst.msk [vmem:[#allocation2 + $0x58] sm:$0xff] %vm1290_vm9, %v1217_v44 }
 0x21d   : > { %841 = vst.msk [vmem:[#allocation2 + $0xe0] sm:$0xff] %vm812_vm6, %v773_v2 }
 0x21f   : > { %v1344_v39 = vpop.permute.xlu1 %1343 }
 0x220   : > { %v1249_v22 = vpop.permute.xlu0 %1248  ;;  %1430 = vst.msk [vmem:[#allocation2 + $0x50] sm:$0xff] %vm1419_vm10, %v1344_v39  ;;  %v5237_v39 = vsub.s32 %v2096_v7, %v2098_v6 }
 0x221   : > { %1318 = vst.msk [vmem:[#allocation2 + $0xd8] sm:$0xff] %vm1290_vm9, %v1249_v22 }
 0x223   : > { %v775_v48 = vpop.permute.xlu1 %774 }
 0x224   : > { %v1376_v51 = vpop.permute.xlu0 %1375  ;;  %842 = vst.msk [vmem:[#allocation2 + $0xe8] sm:$0xff] %vm812_vm6, %v775_v48 }
 0x225   : > { %1446 = vst.msk [vmem:[#allocation2 + $0xd0] sm:$0xff] %vm1419_vm10, %v1376_v51 }
 0x227   : > { %v902_v29 = vpop.permute.xlu1 %901 }
 0x228   : > { %v870_v12 = vpop.permute.xlu0 %869  ;;  %970 = vst.msk [vmem:[#allocation2 + $0xe0] sm:$0xff] %vm941_vm7, %v902_v29 }
 0x229   : > { %954 = vst.msk [vmem:[#allocation2 + $0x60] sm:$0xff] %vm941_vm7, %v870_v12 }
 0x22b   : > { %v1378_v11 = vpop.permute.xlu1 %1377 }
 0x22c   : > { %v1346_v3 = vpop.permute.xlu0 %1345  ;;  %1447 = vst.msk [vmem:[#allocation2 + $0xd8] sm:$0xff] %vm1419_vm10, %v1378_v11 }
 0x22d   : > { %1431 = vst.msk [vmem:[#allocation2 + $0x58] sm:$0xff] %vm1419_vm10, %v1346_v3 }
 0x22f   : > { %v1505_v14 = vpop.permute.xlu1 %1504 }
 0x230   : > { %v1473_v17 = vpop.permute.xlu0 %1472  ;;  %1575 = vst.msk [vmem:[#allocation2 + $0xd0] sm:$0xff] %vm1548_vm11, %v1505_v14 }
 0x231   : > { %1559 = vst.msk [vmem:[#allocation2 + $0x50] sm:$0xff] %vm1548_vm11, %v1473_v17 }
 0x233   : > { %v904_v53 = vpop.permute.xlu1 %903 }
 0x234   : > { %v872_v8 = vpop.permute.xlu0 %871  ;;  %971 = vst.msk [vmem:[#allocation2 + $0xe8] sm:$0xff] %vm941_vm7, %v904_v53 }
 0x235   : > { %955 = vst.msk [vmem:[#allocation2 + $0x68] sm:$0xff] %vm941_vm7, %v872_v8 }
 0x237   : > { %v1031_v5 = vpop.permute.xlu1 %1030  ;;  %v1607_v10 = vld [vmem:[#allocation2 + $0xd0] sm:$0xff] }
 0x238   : > { %v999_v0 = vpop.permute.xlu0 %998  ;;  %v1591_v27 = vld [vmem:[#allocation2 + $0x50] sm:$0xff]  ;;  %1099 = vst.msk [vmem:[#allocation2 + $0xe0] sm:$0xff] %vm1070_vm8, %v1031_v5  ;;  %3801 = vmatprep.mubr.msk.f32.mxu1 %vm1625_vm12, %v1607_v10 }
 0x239   : > { %1083 = vst.msk [vmem:[#allocation2 + $0x60] sm:$0xff] %vm1070_vm8, %v999_v0  ;;  %3777 = vmatprep.mubr.msk.f32.mxu0 %vm1625_vm12, %v1591_v27 }
 0x23b   : > { %v1507_v24 = vpop.permute.xlu1 %1506 }
 0x23c   : > { %v1475_v55 = vpop.permute.xlu0 %1474  ;;  %1576 = vst.msk [vmem:[#allocation2 + $0xd8] sm:$0xff] %vm1548_vm11, %v1507_v24 }
 0x23d   : > { %1560 = vst.msk [vmem:[#allocation2 + $0x58] sm:$0xff] %vm1548_vm11, %v1475_v55 }
 0x23f   : > { %v1033_v4 = vpop.permute.xlu1 %1032  ;;  %v3764_v35 = vpop.f32.mrb[0].mxu0 }
 0x240   : > { %v1001_v21 = vpop.permute.xlu0 %1000  ;;  %1100 = vst.msk [vmem:[#allocation2 + $0xe8] sm:$0xff] %vm1070_vm8, %v1033_v4  ;;  %v1792_v18 = vpop.f32.mrb[1].mxu0  ;;  %v1798_v1 = vadd.f32 %v3764_v35, %v5209_v40 }
 0x241   : > { %1084 = vst.msk [vmem:[#allocation2 + $0x68] sm:$0xff] %vm1070_vm8, %v1001_v21  ;;  %v1793_v43 = vadd.f32 %v5209_v40, %v1792_v18  ;;  %v5260_v21 = vsub.s32 0, %v2098_v6 }
 0x242   : > { %v1952_v34 = vmax.f32 %v1798_v1, 0.0 }
 0x243   : > { %v1251_v37 = vpop.permute.xlu1 %1250  ;;  %v1608_v25 = vld [vmem:[#allocation2 + $0xd8] sm:$0xff]  ;;  %v1951_v31 = vmax.f32 %v1793_v43, 0.0 }
 0x244   : > { %v3788_v49 = vpop.f32.mrb[0].mxu1  ;;  %v1592_v26 = vld [vmem:[#allocation2 + $0x58] sm:$0xff]  ;;  %1319 = vst.msk [vmem:[#allocation2 + $0xe0] sm:$0xff] %vm1290_vm9, %v1251_v37  ;;  %v1219_v33 = vpop.permute.xlu0 %1218  ;;  %3802 = vmatmul.mubr.msk.f32.gmra.mrb[10].mxu1 %vm1625_vm12, %v1608_v25  ;;  %v1991_v28 = vmul.f32 %v5220_v54, %v1952_v34 }
 0x245   : > { %3778 = vmatmul.mubr.msk.f32.gmra.mrb[10].mxu0 %vm1625_vm12, %v1592_v26  ;;  %v1872_v32 = vpop.f32.mrb[1].mxu1  ;;  %1303 = vst.msk [vmem:[#allocation2 + $0x60] sm:$0xff] %vm1290_vm9, %v1219_v33  ;;  %v1878_v41 = vadd.f32 %v3788_v49, %v5209_v40  ;;  %v1990_v42 = vmul.f32 %v5220_v54, %v1951_v31 }
 0x246   : > { %v1873_v56 = vadd.f32 %v5209_v40, %v1872_v32  ;;  %v2030_v59 = vadd.f32 %v5230_v36, %v1991_v28 }
 0x247   : > { %v1221_v63 = vpop.permute.xlu1 %1220  ;;  %v1968_v61 = vmax.f32 %v1878_v41, 0.0  ;;  %v2029_v20 = vadd.f32 %v5230_v36, %v1990_v42 }
 0x248   : > { %1304 = vst.msk [vmem:[#allocation2 + $0x68] sm:$0xff] %vm1290_vm9, %v1221_v63  ;;  %v777_v46 = vpop.permute.xlu0 %776  ;;  %v1967_v52 = vmax.f32 %v1873_v56, 0.0  ;;  %v2110_v12 = vcombine.high %v2030_v59, %v2030_v59  ;;  %v5246_v17 = vrot.slane %v2030_v59, %v5237_v39 }
 0x249   : > { %843 = vst.msk [vmem:[#allocation2 + $0xf0] sm:$0xff] %vm812_vm6, %v777_v46  ;;  %v2007_v22 = vmul.f32 %v5220_v54, %v1968_v61  ;;  %v2093_v11 = vcombine.high %v2029_v20, %v2029_v20  ;;  %v5258_v55 = vrot.slane %v2029_v20, %v5237_v39 }
 0x24a   : > { %v2006_v29 = vmul.f32 %v5220_v54, %v1967_v52  ;;  %v5255_v24 = vrot.slane %v2110_v12, %v5237_v39  ;;  %v2125_v26 = vcombine.high %v5246_v17, %v5246_v17 }
 0x24b   : > { %v1348_v38 = vpop.permute.xlu1 %1347  ;;  %v2046_v53 = vadd.f32 %v5230_v36, %v2007_v22  ;;  %v5263_v35 = vrot.slane %v2093_v11, %v5237_v39 }
 0x24c   : > { %1432 = vst.msk [vmem:[#allocation2 + $0x60] sm:$0xff] %vm1419_vm10, %v1348_v38  ;;  %v1253_v60 = vpop.permute.xlu0 %1252  ;;  %v2045_v27 = vadd.f32 %v5230_v36, %v2006_v29 }
 0x24d   : > { %1320 = vst.msk [vmem:[#allocation2 + $0xe8] sm:$0xff] %vm1290_vm9, %v1253_v60  ;;  %v2382_v25 = vcombine.high %v2046_v53, %v2046_v53  ;;  %v5271_v38 = vrot.slane %v2046_v53, %v5237_v39 }
 0x24e   : > { %v2365_v60 = vcombine.high %v2045_v27, %v2045_v27 }
 0x24f   : > { %v779_v58 = vpop.permute.xlu1 %778  ;;  %v5288_v9 = vrot.slane %v2382_v25, %v5237_v39  ;;  %v2397_v42 = vcombine.high %v5271_v38, %v5271_v38 }
 0x250   : > { %844 = vst.msk [vmem:[#allocation2 + $0xf8] sm:$0xff] %vm812_vm6, %v779_v58  ;;  %v1380_v50 = vpop.permute.xlu0 %1379 }
 0x251   : > { %1448 = vst.msk [vmem:[#allocation2 + $0xe0] sm:$0xff] %vm1419_vm10, %v1380_v50 }
 0x253   : > { %v906_v45 = vpop.permute.xlu1 %905 }
 0x254   : > { %972 = vst.msk [vmem:[#allocation2 + $0xf0] sm:$0xff] %vm941_vm7, %v906_v45  ;;  %v874_v19 = vpop.permute.xlu0 %873  ;;  %v2126_v45 = vcombine.high %v5255_v24, %v5255_v24 }
 0x255   : > { %956 = vst.msk [vmem:[#allocation2 + $0x70] sm:$0xff] %vm941_vm7, %v874_v19  ;;  %v2108_v19 = vcombine.high %v5258_v55, %v5258_v55 }
 0x257   : > { %v1382_v13 = vpop.permute.xlu1 %1381 }
 0x258   : > { %1449 = vst.msk [vmem:[#allocation2 + $0xe8] sm:$0xff] %vm1419_vm10, %v1382_v13  ;;  %v1350_v30 = vpop.permute.xlu0 %1349  ;;  %v2109_v13 = vcombine.high %v5263_v35, %v5263_v35 }
 0x259   : > { %1433 = vst.msk [vmem:[#allocation2 + $0x68] sm:$0xff] %vm1419_vm10, %v1350_v30  ;;  %v5284_v30 = vrot.slane %v2045_v27, %v5237_v39 }
 0x25b   : > { %v1509_v15 = vpop.permute.xlu1 %1508 }
 0x25c   : > { %1577 = vst.msk [vmem:[#allocation2 + $0xe0] sm:$0xff] %vm1548_vm11, %v1509_v15  ;;  %v1477_v62 = vpop.permute.xlu0 %1476 }
 0x25d   : > { %1561 = vst.msk [vmem:[#allocation2 + $0x60] sm:$0xff] %vm1548_vm11, %v1477_v62 }
 0x25f   : > { %v908_v23 = vpop.permute.xlu1 %907 }
 0x260   : > { %973 = vst.msk [vmem:[#allocation2 + $0xf8] sm:$0xff] %vm941_vm7, %v908_v23  ;;  %v876_v47 = vpop.permute.xlu0 %875  ;;  %v5297_v23 = vrot.slane %v2365_v60, %v5237_v39 }
 0x261   : > { %957 = vst.msk [vmem:[#allocation2 + $0x78] sm:$0xff] %vm941_vm7, %v876_v47 }
 0x263   : > { %v1035_v44 = vpop.permute.xlu1 %1034  ;;  %v1609_v2 = vld [vmem:[#allocation2 + $0xe0] sm:$0xff] }
 0x264   : > { %1101 = vst.msk [vmem:[#allocation2 + $0xf0] sm:$0xff] %vm1070_vm8, %v1035_v44  ;;  %v1003_v48 = vpop.permute.xlu0 %1002  ;;  %v1593_v51 = vld [vmem:[#allocation2 + $0x60] sm:$0xff]  ;;  %3804 = vmatprep.mubr.msk.f32.mxu1 %vm1625_vm12, %v1609_v2 }
 0x265   : > { %1085 = vst.msk [vmem:[#allocation2 + $0x70] sm:$0xff] %vm1070_vm8, %v1003_v48  ;;  %3780 = vmatprep.mubr.msk.f32.mxu0 %vm1625_vm12, %v1593_v51 }
 0x267   : > { %v1511_v3 = vpop.permute.xlu1 %1510  ;;  %v3767_v14 = vpop.f32.mrb[2].mxu0 }
 0x268   : > { %1578 = vst.msk [vmem:[#allocation2 + $0xe8] sm:$0xff] %vm1548_vm11, %v1511_v3  ;;  %v1479_v8 = vpop.permute.xlu0 %1478  ;;  %v1808_v5 = vadd.f32 %v3767_v14, %v5209_v40  ;;  %v1802_v0 = vpop.f32.mrb[3].mxu0 }
 0x269   : > { %1562 = vst.msk [vmem:[#allocation2 + $0x68] sm:$0xff] %vm1548_vm11, %v1479_v8  ;;  %v1803_v10 = vadd.f32 %v5209_v40, %v1802_v0 }
 0x26a   : > { %v1954_v4 = vmax.f32 %v1808_v5, 0.0 }
 0x26b   : > { %v1953_v18 = vmax.f32 %v1803_v10, 0.0  ;;  %v1037_v37 = vpop.permute.xlu1 %1036 }
 0x26c   : > { %v3791_v49 = vpop.f32.mrb[2].mxu1  ;;  %v1993_v33 = vmul.f32 %v5220_v54, %v1954_v4  ;;  %1102 = vst.msk [vmem:[#allocation2 + $0xf8] sm:$0xff] %vm1070_vm8, %v1037_v37  ;;  %v1005_v63 = vpop.permute.xlu0 %1004  ;;  %v2398_v37 = vcombine.high %v5288_v9, %v5288_v9 }
 0x26d   : > { %v1888_v32 = vadd.f32 %v3791_v49, %v5209_v40  ;;  %v1882_v46 = vpop.f32.mrb[3].mxu1  ;;  %v1992_v58 = vmul.f32 %v5220_v54, %v1953_v18  ;;  %1086 = vst.msk [vmem:[#allocation2 + $0x78] sm:$0xff] %vm1070_vm8, %v1005_v63  ;;  %v2380_v49 = vcombine.high %v5284_v30, %v5284_v30 }
 0x26e   : > { %v1883_v50 = vadd.f32 %v5209_v40, %v1882_v46  ;;  %v2032_v1 = vadd.f32 %v5230_v36, %v1993_v33 }
 0x26f   : > { %v1970_v43 = vmax.f32 %v1888_v32, 0.0  ;;  %v2031_v34 = vadd.f32 %v5230_v36, %v1992_v58  ;;  %v1255_v15 = vpop.permute.xlu1 %1254  ;;  %v1610_v57 = vld [vmem:[#allocation2 + $0xe8] sm:$0xff] }
 0x270   : > { %v1969_v31 = vmax.f32 %v1883_v50, 0.0  ;;  %v2144_v16 = vcombine.high %v2032_v1, %v2032_v1  ;;  %v2151_v41 = vrot.slane %v2032_v1, %v5237_v39  ;;  %1321 = vst.msk [vmem:[#allocation2 + $0xf0] sm:$0xff] %vm1290_vm9, %v1255_v15  ;;  %v1223_v56 = vpop.permute.xlu0 %1222  ;;  %v1594_v28 = vld [vmem:[#allocation2 + $0x68] sm:$0xff]  ;;  %3805 = vmatmul.mubr.msk.f32.gmra.mrb[12].mxu1 %vm1625_vm12, %v1610_v57 }
 0x271   : > { %v2009_v62 = vmul.f32 %v5220_v54, %v1970_v43  ;;  %v2127_v7 = vcombine.high %v2031_v34, %v2031_v34  ;;  %v2134_v6 = vrot.slane %v2031_v34, %v5237_v39  ;;  %1305 = vst.msk [vmem:[#allocation2 + $0x70] sm:$0xff] %vm1290_vm9, %v1223_v56  ;;  %3781 = vmatmul.mubr.msk.f32.gmra.mrb[12].mxu0 %vm1625_vm12, %v1594_v28 }
 0x272   : > { %v2158_v61 = vrot.slane %v2144_v16, %v5237_v39  ;;  %v2159_v47 = vcombine.high %v2151_v41, %v2151_v41  ;;  %v2769_v52 = vmax.f32 %v5246_v17, %v2151_v41  ;;  %v2008_v59 = vmul.f32 %v5220_v54, %v1969_v31 }
 0x273   : > { %v2141_v20 = vrot.slane %v2127_v7, %v5237_v39  ;;  %v2142_v44 = vcombine.high %v2134_v6, %v2134_v6  ;;  %v2765_v2 = vmax.f32 %v5258_v55, %v2134_v6  ;;  %v2048_v22 = vadd.f32 %v5230_v36, %v2009_v62  ;;  %v1257_v48 = vpop.permute.xlu1 %1256 }
 0x274   : > { %v2160_v51 = vcombine.high %v2158_v61, %v2158_v61  ;;  %v2770_v29 = vmax.f32 %v2125_v26, %v2159_v47  ;;  %v2771_v12 = vmax.f32 %v5255_v24, %v2158_v61  ;;  %v3653_v11 = vrot.slane %v2769_v52, 9  ;;  %1322 = vst.msk [vmem:[#allocation2 + $0xf8] sm:$0xff] %vm1290_vm9, %v1257_v48  ;;  %v1225_v3 = vpop.permute.xlu0 %1224 }
 0x275   : > { %v2143_v14 = vcombine.high %v2141_v20, %v2141_v20  ;;  %v2766_v17 = vmax.f32 %v2108_v19, %v2142_v44  ;;  %v2767_v53 = vmax.f32 %v5263_v35, %v2141_v20  ;;  %v3649_v8 = vrot.slane %v2765_v2, 9  ;;  %1306 = vst.msk [vmem:[#allocation2 + $0x78] sm:$0xff] %vm1290_vm9, %v1225_v3 }
 0x276   : > { %v2772_v5 = vmax.f32 %v2126_v45, %v2160_v51  ;;  %v3654_v0 = vrot.slane %v2770_v29, 9  ;;  %v3655_v27 = vrot.slane %v2771_v12, 9  ;;  %v3089_v10 = vmax.f32 %v2769_v52, %v3653_v11 }
 0x277   : > { %v2768_v24 = vmax.f32 %v2109_v13, %v2143_v14  ;;  %v3650_v55 = vrot.slane %v2766_v17, 9  ;;  %v3651_v4 = vrot.slane %v2767_v53, 9  ;;  %v3085_v18 = vmax.f32 %v2765_v2, %v3649_v8  ;;  %v1384_v35 = vpop.permute.xlu1 %1383 }
 0x278   : > { %v3656_v26 = vrot.slane %v2772_v5, 9  ;;  %v2047_v25 = vadd.f32 %v5230_v36, %v2008_v59  ;;  %1450 = vst.msk [vmem:[#allocation2 + $0xf0] sm:$0xff] %vm1419_vm10, %v1384_v35  ;;  %v1352_v33 = vpop.permute.xlu0 %1351  ;;  %v3090_v32 = vmax.f32 %v2770_v29, %v3654_v0  ;;  %v3091_v58 = vmax.f32 %v2771_v12, %v3655_v27 }
 0x279   : > { %v3652_v63 = vrot.slane %v2768_v24, 9  ;;  %v3086_v46 = vmax.f32 %v2766_v17, %v3650_v55  ;;  %v3087_v60 = vmax.f32 %v2767_v53, %v3651_v4  ;;  %1434 = vst.msk [vmem:[#allocation2 + $0x70] sm:$0xff] %vm1419_vm10, %v1352_v33  ;;  %v3232_v50 = vrot.slane %v3089_v10, %v5260_v21 }
 0x27a   : > { %v3216_v45 = vrot.slane %v3085_v18, %v5260_v21  ;;  %v2416_v19 = vcombine.high %v2048_v22, %v2048_v22  ;;  %v2423_v34 = vrot.slane %v2048_v22, %v5237_v39  ;;  %v3092_v15 = vmax.f32 %v2772_v5, %v3656_v26 }
 0x27b   : > { %v3088_v1 = vmax.f32 %v2768_v24, %v3652_v63  ;;  %v3220_v43 = vrot.slane %v3086_v46, %v5260_v21  ;;  %v3224_v13 = vrot.slane %v3087_v60, %v5260_v21  ;;  %v1386_v31 = vpop.permute.xlu1 %1385  ;;  %v2399_v16 = vcombine.high %v2047_v25, %v2047_v25 }
 0x27c   : > { %v2430_v57 = vrot.slane %v2416_v19, %v5237_v39  ;;  %v2406_v41 = vrot.slane %v2047_v25, %v5237_v39  ;;  %1451 = vst.msk [vmem:[#allocation2 + $0xf8] sm:$0xff] %vm1419_vm10, %v1386_v31  ;;  %v1354_v62 = vpop.permute.xlu0 %1353  ;;  %v2431_v7 = vcombine.high %v2423_v34, %v2423_v34  ;;  %v2801_v6 = vmax.f32 %v5271_v38, %v2423_v34 }
 0x27d   : > { %v3228_v56 = vrot.slane %v3088_v1, %v5260_v21  ;;  %v3470_v28 = vsel %vm3469_vm13, %v3220_v43, %v3216_v45  ;;  %1435 = vst.msk [vmem:[#allocation2 + $0x78] sm:$0xff] %vm1419_vm10, %v1354_v62  ;;  %v2413_v59 = vrot.slane %v2399_v16, %v5237_v39  ;;  %v3236_v20 = vrot.slane %v3090_v32, %v5260_v21 }
 0x27e   : > { %v3472_v61 = vsel %vm3471_vm14, %v3224_v13, %v3470_v28  ;;  %v2432_v47 = vcombine.high %v2430_v57, %v2430_v57  ;;  %v2803_v52 = vmax.f32 %v5288_v9, %v2430_v57  ;;  %v2802_v2 = vmax.f32 %v2397_v42, %v2431_v7 }
 0x27f   : > { %v3474_v44 = vsel %vm3473_vm15, %v3228_v56, %v3472_v61  ;;  %v2414_v22 = vcombine.high %v2406_v41, %v2406_v41  ;;  %v1513_v48 = vpop.permute.xlu1 %1512  ;;  %v3240_v51 = vrot.slane %v3091_v58, %v5260_v21  ;;  %v2415_v11 = vcombine.high %v2413_v59, %v2413_v59 }
 0x280   : > { %v3476_v29 = vsel %vm3475_vm0, %v3232_v50, %v3474_v44  ;;  %v2804_v12 = vmax.f32 %v2398_v37, %v2432_v47  ;;  %1579 = vst.msk [vmem:[#allocation2 + $0xf0] sm:$0xff] %vm1548_vm11, %v1513_v48  ;;  %v1481_v9 = vpop.permute.xlu0 %1480  ;;  %v3244_v3 = vrot.slane %v3092_v15, %v5260_v21  ;;  %v2797_v42 = vmax.f32 %v5284_v30, %v2406_v41 }
 0x281   : > { %v3478_v38 = vsel %vm3477_vm1, %v3236_v20, %v3476_v29  ;;  %1563 = vst.msk [vmem:[#allocation2 + $0x70] sm:$0xff] %vm1548_vm11, %v1481_v9  ;;  %v2381_v14 = vcombine.high %v5297_v23, %v5297_v23  ;;  %v2798_v53 = vmax.f32 %v2380_v49, %v2414_v22  ;;  %v2799_v5 = vmax.f32 %v5297_v23, %v2413_v59 }
 0x282   : > { %v3480_v17 = vsel %vm3479_vm2, %v3240_v51, %v3478_v38  ;;  %v3685_v27 = vrot.slane %v2801_v6, 9  ;;  %v3681_v24 = vrot.slane %v2797_v42, 9  ;;  %v3686_v55 = vrot.slane %v2802_v2, 9 }
 0x283   : > { %v3482_v8 = vsel %vm3481_vm3, %v3244_v3, %v3480_v17  ;;  %v1515_v0 = vpop.permute.xlu1 %1514  ;;  %v2800_v10 = vmax.f32 %v2381_v14, %v2415_v11  ;;  %v3682_v4 = vrot.slane %v2798_v53, 9  ;;  %v3683_v18 = vrot.slane %v2799_v5, 9 }
 0x284   : > { %3541 = vst.msk [vmem:[%s5360_s30] sm:$0xff] %vm3540_vm4, %v3482_v8  ;;  %v1483_v30 = vpop.permute.xlu0 %1482  ;;  %v3687_v35 = vrot.slane %v2803_v52, 9  ;;  %v3117_v49 = vmax.f32 %v2797_v42, %v3681_v24  ;;  %v3688_v26 = vrot.slane %v2804_v12, 9  ;;  %v3121_v32 = vmax.f32 %v2801_v6, %v3685_v27 }
 0x285   : > { %1580 = vst.msk [vmem:[#allocation2 + $0xf8] sm:$0xff] %vm1548_vm11, %v1515_v0  ;;  %1564 = vst.msk [vmem:[#allocation2 + $0x78] sm:$0xff] %vm1548_vm11, %v1483_v30  ;;  %v3684_v37 = vrot.slane %v2800_v10, 9  ;;  %v3118_v25 = vmax.f32 %v2798_v53, %v3682_v4  ;;  %v3119_v23 = vmax.f32 %v2799_v5, %v3683_v18  ;;  %v3122_v60 = vmax.f32 %v2802_v2, %v3686_v55 }
 0x286   : > { %v3344_v58 = vrot.slane %v3117_v49, %v5260_v21  ;;  %v3123_v19 = vmax.f32 %v2803_v52, %v3687_v35  ;;  %v3124_v43 = vmax.f32 %v2804_v12, %v3688_v26  ;;  %v3360_v31 = vrot.slane %v3121_v32, %v5260_v21 }
 0x287   : > { %v1611_v33 = vld [vmem:[#allocation2 + $0xf0] sm:$0xff]  ;;  %v3120_v63 = vmax.f32 %v2800_v10, %v3684_v37  ;;  %v3348_v50 = vrot.slane %v3118_v25, %v5260_v21  ;;  %v3352_v45 = vrot.slane %v3119_v23, %v5260_v21  ;;  %v3364_v16 = vrot.slane %v3122_v60, %v5260_v21 }
 0x288   : > { %v1595_v46 = vld [vmem:[#allocation2 + $0x70] sm:$0xff]  ;;  %3807 = vmatprep.mubr.msk.f32.mxu1 %vm1625_vm12, %v1611_v33  ;;  %v3368_v62 = vrot.slane %v3123_v19, %v5260_v21  ;;  %v3372_v28 = vrot.slane %v3124_v43, %v5260_v21 }
 0x289   : > { %3783 = vmatprep.mubr.msk.f32.mxu0 %vm1625_vm12, %v1595_v46  ;;  %v3356_v1 = vrot.slane %v3120_v63, %v5260_v21  ;;  %v3504_v13 = vsel %vm3469_vm13, %v3348_v50, %v3344_v58 }
 0x28a   : > { %v3505_v15 = vsel %vm3471_vm14, %v3352_v45, %v3504_v13 }
 0x28b   : > { %v3506_v41 = vsel %vm3473_vm15, %v3356_v1, %v3505_v15 }
 0x28c   : > { %v1612_v34 = vld [vmem:[#allocation2 + $0xf8] sm:$0xff]  ;;  %v3507_v56 = vsel %vm3475_vm0, %v3360_v31, %v3506_v41 }
 0x28d   : > { %v1596_v57 = vld [vmem:[#allocation2 + $0x78] sm:$0xff]  ;;  %3808 = vmatmul.mubr.msk.f32.gmra.mrb[14].mxu1 %vm1625_vm12, %v1612_v34  ;;  %v3508_v7 = vsel %vm3477_vm1, %v3364_v16, %v3507_v56 }
 0x28e   : > { %3784 = vmatmul.mubr.msk.f32.gmra.mrb[14].mxu0 %vm1625_vm12, %v1596_v57  ;;  %v3509_v6 = vsel %vm3479_vm2, %v3368_v62, %v3508_v7 }
 0x28f   : > { %v3510_v61 = vsel %vm3481_vm3, %v3372_v28, %v3509_v6 }
 0x290   : > { %3545 = vst.msk [vmem:[%s5360_s30 + $0x20] sm:$0xff] %vm3540_vm4, %v3510_v61 }
 0x293   : > { %v3770_v47 = vpop.f32.mrb[4].mxu0 }
 0x294   : > { %v3794_v52 = vpop.f32.mrb[4].mxu1  ;;  %v1812_v59 = vpop.f32.mrb[5].mxu0  ;;  %v1818_v44 = vadd.f32 %v3770_v47, %v5209_v40 }
 0x295   : > { %v1892_v20 = vpop.f32.mrb[5].mxu1  ;;  %v1898_v2 = vadd.f32 %v3794_v52, %v5209_v40  ;;  %v1813_v48 = vadd.f32 %v5209_v40, %v1812_v59 }
 0x296   : > { %v1956_v22 = vmax.f32 %v1818_v44, 0.0  ;;  %v1893_v51 = vadd.f32 %v5209_v40, %v1892_v20 }
 0x297   : > { %v1972_v29 = vmax.f32 %v1898_v2, 0.0  ;;  %v1955_v11 = vmax.f32 %v1813_v48, 0.0 }
 0x298   : > { %v1995_v12 = vmul.f32 %v5220_v54, %v1956_v22  ;;  %v1971_v9 = vmax.f32 %v1893_v51, 0.0 }
 0x299   : > { %v2011_v3 = vmul.f32 %v5220_v54, %v1972_v29  ;;  %v1994_v42 = vmul.f32 %v5220_v54, %v1955_v11 }
 0x29a   : > { %v2034_v38 = vadd.f32 %v5230_v36, %v1995_v12  ;;  %v2010_v14 = vmul.f32 %v5220_v54, %v1971_v9 }
 0x29b   : > { %v2050_v17 = vadd.f32 %v5230_v36, %v2011_v3  ;;  %v2033_v30 = vadd.f32 %v5230_v36, %v1994_v42 }
 0x29c   : > { %v2178_v24 = vcombine.high %v2034_v38, %v2034_v38  ;;  %v2049_v18 = vadd.f32 %v5230_v36, %v2010_v14  ;;  %v2185_v49 = vrot.slane %v2034_v38, %v5237_v39 }
 0x29d   : > { %v2450_v26 = vcombine.high %v2050_v17, %v2050_v17  ;;  %v2457_v33 = vrot.slane %v2050_v17, %v5237_v39  ;;  %v2161_v60 = vcombine.high %v2033_v30, %v2033_v30  ;;  %v2168_v58 = vrot.slane %v2033_v30, %v5237_v39 }
 0x29e   : > { %v2192_v46 = vrot.slane %v2178_v24, %v5237_v39  ;;  %v2433_v45 = vcombine.high %v2049_v18, %v2049_v18  ;;  %v5419_v19 = vrot.slane %v2049_v18, %v5237_v39  ;;  %v2193_v13 = vcombine.high %v2185_v49, %v2185_v49 }
 0x29f   : > { %v2464_v34 = vrot.slane %v2450_v26, %v5237_v39  ;;  %v2465_v28 = vcombine.high %v2457_v33, %v2457_v33  ;;  %v2175_v7 = vrot.slane %v2161_v60, %v5237_v39 }
 0x2a0   : > { %v2194_v56 = vcombine.high %v2192_v46, %v2192_v46  ;;  %v2447_v42 = vrot.slane %v2433_v45, %v5237_v39 }
 0x2a1   : > { %v2466_v20 = vcombine.high %v2464_v34, %v2464_v34  ;;  %v2177_v30 = vcombine.high %v2175_v7, %v2175_v7 }
 0x2bf   : > { %v3797_v8 = vpop.f32.mrb[6].mxu1 }
 0x2c0   : > { %v3773_v53 = vpop.f32.mrb[6].mxu0  ;;  %v1908_v0 = vadd.f32 %v3797_v8, %v5209_v40  ;;  %v1902_v10 = vpop.f32.mrb[7].mxu1 }
 0x2c1   : > { %v1828_v5 = vadd.f32 %v3773_v53, %v5209_v40  ;;  %v1822_v27 = vpop.f32.mrb[7].mxu0  ;;  %v1903_v4 = vadd.f32 %v5209_v40, %v1902_v10 }
 0x2c2   : > { %v1823_v55 = vadd.f32 %v5209_v40, %v1822_v27  ;;  %v1974_v37 = vmax.f32 %v1908_v0, 0.0  ;;  %v2176_v0 = vcombine.high %v2168_v58, %v2168_v58  ;;  %v2448_v27 = vcombine.high %v5419_v19, %v5419_v19 }
 0x2c3   : > { %v1958_v35 = vmax.f32 %v1828_v5, 0.0  ;;  %v1973_v23 = vmax.f32 %v1903_v4, 0.0 }
 0x2c4   : > { %v1957_v25 = vmax.f32 %v1823_v55, 0.0  ;;  %v2013_v63 = vmul.f32 %v5220_v54, %v1974_v37 }
 0x2c5   : > { %v1997_v32 = vmul.f32 %v5220_v54, %v1958_v35  ;;  %v2012_v15 = vmul.f32 %v5220_v54, %v1973_v23  ;;  %v2449_v35 = vcombine.high %v2447_v42, %v2447_v42 }
 0x2c6   : > { %v1996_v50 = vmul.f32 %v5220_v54, %v1957_v25  ;;  %v2052_v43 = vadd.f32 %v5230_v36, %v2013_v63 }
 0x2c7   : > { %v2036_v1 = vadd.f32 %v5230_v36, %v1997_v32  ;;  %v2051_v22 = vadd.f32 %v5230_v36, %v2012_v15 }
 0x2c8   : > { %v2035_v31 = vadd.f32 %v5230_v36, %v1996_v50  ;;  %v2484_v41 = vcombine.high %v2052_v43, %v2052_v43  ;;  %v2491_v62 = vrot.slane %v2052_v43, %v5237_v39 }
 0x2c9   : > { %v2212_v57 = vcombine.high %v2036_v1, %v2036_v1  ;;  %v2219_v16 = vrot.slane %v2036_v1, %v5237_v39  ;;  %v2467_v4 = vcombine.high %v2051_v22, %v2051_v22  ;;  %v2474_v18 = vrot.slane %v2051_v22, %v5237_v39 }
 0x2ca   : > { %v2195_v6 = vcombine.high %v2035_v31, %v2035_v31  ;;  %v2498_v59 = vrot.slane %v2484_v41, %v5237_v39  ;;  %v2499_v44 = vcombine.high %v2491_v62, %v2491_v62  ;;  %v2809_v2 = vmax.f32 %v2457_v33, %v2491_v62 }
 0x2cb   : > { %v2226_v61 = vrot.slane %v2212_v57, %v5237_v39  ;;  %v2227_v47 = vcombine.high %v2219_v16, %v2219_v16  ;;  %v2777_v52 = vmax.f32 %v2185_v49, %v2219_v16  ;;  %v2202_v12 = vrot.slane %v2035_v31, %v5237_v39 }
 0x2cc   : > { %v2500_v9 = vcombine.high %v2498_v59, %v2498_v59  ;;  %v2810_v3 = vmax.f32 %v2465_v28, %v2499_v44  ;;  %v5433_v38 = vmax.f32 %v2464_v34, %v2498_v59  ;;  %v2209_v17 = vrot.slane %v2195_v6, %v5237_v39 }
 0x2cd   : > { %v2228_v48 = vcombine.high %v2226_v61, %v2226_v61  ;;  %v2778_v51 = vmax.f32 %v2193_v13, %v2227_v47  ;;  %v2779_v29 = vmax.f32 %v2192_v46, %v2226_v61  ;;  %v3661_v11 = vrot.slane %v2777_v52, 9 }
 0x2ce   : > { %v5437_v8 = vmax.f32 %v2466_v20, %v2500_v9  ;;  %v3693_v5 = vrot.slane %v2809_v2, 9  ;;  %v2210_v24 = vcombine.high %v2202_v12, %v2202_v12  ;;  %v3694_v37 = vrot.slane %v2810_v3, 9 }
 0x2cf   : > { %v2780_v14 = vmax.f32 %v2194_v56, %v2228_v48  ;;  %v3662_v53 = vrot.slane %v2778_v51, 9  ;;  %v3663_v10 = vrot.slane %v2779_v29, 9  ;;  %v3097_v55 = vmax.f32 %v2777_v52, %v3661_v11 }
 0x2d0   : > { %v3695_v49 = vrot.slane %v5433_v38, 9  ;;  %v2211_v26 = vcombine.high %v2209_v17, %v2209_v17  ;;  %v3129_v33 = vmax.f32 %v2809_v2, %v3693_v5  ;;  %v2773_v32 = vmax.f32 %v2168_v58, %v2202_v12 }
 0x2d1   : > { %v3664_v25 = vrot.slane %v2780_v14, 9  ;;  %v3098_v23 = vmax.f32 %v2778_v51, %v3662_v53  ;;  %v3099_v63 = vmax.f32 %v2779_v29, %v3663_v10  ;;  %v2774_v46 = vmax.f32 %v2176_v0, %v2210_v24 }
 0x2d2   : > { %v2775_v60 = vmax.f32 %v2175_v7, %v2209_v17  ;;  %v2776_v50 = vmax.f32 %v2177_v30, %v2211_v26  ;;  %v3264_v45 = vrot.slane %v3097_v55, %v5260_v21  ;;  %v3657_v1 = vrot.slane %v2773_v32, 9 }
 0x2d3   : > { %v2481_v43 = vrot.slane %v2467_v4, %v5237_v39  ;;  %v2482_v13 = vcombine.high %v2474_v18, %v2474_v18  ;;  %v3658_v34 = vrot.slane %v2774_v46, 9  ;;  %v2805_v57 = vmax.f32 %v5419_v19, %v2474_v18 }
 0x2d4   : > { %v3659_v31 = vrot.slane %v2775_v60, 9  ;;  %v3660_v15 = vrot.slane %v2776_v50, 9  ;;  %v3093_v16 = vmax.f32 %v2773_v32, %v3657_v1  ;;  %v3696_v22 = vrot.slane %v5437_v8, 9 }
 0x2d5   : > { %v2483_v41 = vcombine.high %v2481_v43, %v2481_v43  ;;  %v2806_v62 = vmax.f32 %v2448_v27, %v2482_v13  ;;  %v2807_v56 = vmax.f32 %v2447_v42, %v2481_v43  ;;  %v3094_v58 = vmax.f32 %v2774_v46, %v3658_v34 }
 0x2d6   : > { %v3095_v28 = vmax.f32 %v2775_v60, %v3659_v31  ;;  %v3096_v6 = vmax.f32 %v2776_v50, %v3660_v15  ;;  %v3689_v7 = vrot.slane %v2805_v57, 9  ;;  %v3248_v61 = vrot.slane %v3093_v16, %v5260_v21 }
 0x2d7   : > { %v2808_v47 = vmax.f32 %v2449_v35, %v2483_v41  ;;  %v3690_v52 = vrot.slane %v2806_v62, 9  ;;  %v3691_v59 = vrot.slane %v2807_v56, 9  ;;  %v3252_v20 = vrot.slane %v3094_v58, %v5260_v21 }
 0x2d8   : > { %v3256_v44 = vrot.slane %v3095_v28, %v5260_v21  ;;  %v3260_v2 = vrot.slane %v3096_v6, %v5260_v21  ;;  %v3125_v19 = vmax.f32 %v2805_v57, %v3689_v7  ;;  %v3100_v12 = vmax.f32 %v2780_v14, %v3664_v25 }
 0x2d9   : > { %v3692_v48 = vrot.slane %v2808_v47, 9  ;;  %v3126_v51 = vmax.f32 %v2806_v62, %v3690_v52  ;;  %v3127_v29 = vmax.f32 %v2807_v56, %v3691_v59  ;;  %v3130_v11 = vmax.f32 %v2810_v3, %v3694_v37 }
 0x2da   : > { %v3483_v9 = vsel %vm3469_vm13, %v3252_v20, %v3248_v61  ;;  %v3376_v42 = vrot.slane %v3125_v19, %v5260_v21  ;;  %v3268_v27 = vrot.slane %v3098_v23, %v5260_v21  ;;  %v3272_v10 = vrot.slane %v3099_v63, %v5260_v21 }
 0x2db   : > { %v3484_v17 = vsel %vm3471_vm14, %v3256_v44, %v3483_v9  ;;  %v3128_v53 = vmax.f32 %v2808_v47, %v3692_v48  ;;  %v3380_v5 = vrot.slane %v3126_v51, %v5260_v21  ;;  %v3384_v0 = vrot.slane %v3127_v29, %v5260_v21 }
 0x2dc   : > { %v3131_v24 = vmax.f32 %v5433_v38, %v3695_v49  ;;  %v3485_v14 = vsel %vm3473_vm15, %v3260_v2, %v3484_v17  ;;  %v3132_v3 = vmax.f32 %v5437_v8, %v3696_v22  ;;  %v3276_v18 = vrot.slane %v3100_v12, %v5260_v21 }
 0x2dd   : > { %v3486_v30 = vsel %vm3475_vm0, %v3264_v45, %v3485_v14  ;;  %v3388_v55 = vrot.slane %v3128_v53, %v5260_v21  ;;  %v3511_v4 = vsel %vm3469_vm13, %v3380_v5, %v3376_v42  ;;  %v3392_v35 = vrot.slane %v3129_v33, %v5260_v21 }
 0x2de   : > { %v3487_v37 = vsel %vm3477_vm1, %v3268_v27, %v3486_v30  ;;  %v3512_v38 = vsel %vm3471_vm14, %v3384_v0, %v3511_v4  ;;  %v3396_v49 = vrot.slane %v3130_v11, %v5260_v21  ;;  %v3400_v25 = vrot.slane %v3131_v24, %v5260_v21 }
 0x2df   : > { %v3488_v26 = vsel %vm3479_vm2, %v3272_v10, %v3487_v37  ;;  %v3513_v8 = vsel %vm3473_vm15, %v3388_v55, %v3512_v38  ;;  %v3404_v63 = vrot.slane %v3132_v3, %v5260_v21 }
 0x2e0   : > { %v3489_v23 = vsel %vm3481_vm3, %v3276_v18, %v3488_v26  ;;  %v3514_v32 = vsel %vm3475_vm0, %v3392_v35, %v3513_v8 }
 0x2e1   : > { %3542 = vst.msk [vmem:[%s5360_s30 + $0x8] sm:$0xff] %vm3540_vm4, %v3489_v23  ;;  %v3515_v33 = vsel %vm3477_vm1, %v3396_v49, %v3514_v32 }
 0x2e2   : > { %v3516_v46 = vsel %vm3479_vm2, %v3400_v25, %v3515_v33 }
 0x2e3   : > { %v3517_v60 = vsel %vm3481_vm3, %v3404_v63, %v3516_v46 }
 0x2e4   : > { %3546 = vst.msk [vmem:[%s5360_s30 + $0x28] sm:$0xff] %vm3540_vm4, %v3517_v60 }
 0x2eb   : > { %v3800_v45 = vpop.f32.mrb[8].mxu1 }
 0x2ec   : > { %v3776_v50 = vpop.f32.mrb[8].mxu0  ;;  %v1912_v43 = vpop.f32.mrb[9].mxu1  ;;  %v1918_v34 = vadd.f32 %v3800_v45, %v5209_v40 }
 0x2ed   : > { %v1832_v1 = vpop.f32.mrb[9].mxu0  ;;  %v1838_v13 = vadd.f32 %v3776_v50, %v5209_v40  ;;  %v1913_v57 = vadd.f32 %v5209_v40, %v1912_v43 }
 0x2ee   : > { %v1833_v15 = vadd.f32 %v5209_v40, %v1832_v1  ;;  %v1976_v16 = vmax.f32 %v1918_v34, 0.0 }
 0x2ef   : > { %v1960_v31 = vmax.f32 %v1838_v13, 0.0  ;;  %v1975_v56 = vmax.f32 %v1913_v57, 0.0 }
 0x2f0   : > { %v1959_v62 = vmax.f32 %v1833_v15, 0.0  ;;  %v2015_v58 = vmul.f32 %v5220_v54, %v1976_v16 }
 0x2f1   : > { %v1999_v41 = vmul.f32 %v5220_v54, %v1960_v31  ;;  %v2014_v7 = vmul.f32 %v5220_v54, %v1975_v56 }
 0x2f2   : > { %v1998_v6 = vmul.f32 %v5220_v54, %v1959_v62  ;;  %v2054_v61 = vadd.f32 %v5230_v36, %v2015_v58 }
 0x2f3   : > { %v2038_v28 = vadd.f32 %v5230_v36, %v1999_v41  ;;  %v2053_v29 = vadd.f32 %v5230_v36, %v2014_v7 }
 0x2f4   : > { %v2037_v22 = vadd.f32 %v5230_v36, %v1998_v6  ;;  %v2518_v42 = vcombine.high %v2054_v61, %v2054_v61  ;;  %v2525_v5 = vrot.slane %v2054_v61, %v5237_v39 }
 0x2f5   : > { %v2246_v19 = vcombine.high %v2038_v28, %v2038_v28  ;;  %v2253_v9 = vrot.slane %v2038_v28, %v5237_v39  ;;  %v2501_v3 = vcombine.high %v2053_v29, %v2053_v29  ;;  %v5506_v30 = vrot.slane %v2053_v29, %v5237_v39 }
 0x2f6   : > { %v2229_v24 = vcombine.high %v2037_v22, %v2037_v22  ;;  %v2532_v35 = vrot.slane %v2518_v42, %v5237_v39  ;;  %v2533_v32 = vcombine.high %v2525_v5, %v2525_v5 }
 0x2f7   : > { %v2260_v10 = vrot.slane %v2246_v19, %v5237_v39  ;;  %v2261_v18 = vcombine.high %v2253_v9, %v2253_v9  ;;  %v2515_v58 = vrot.slane %v2501_v3, %v5237_v39 }
 0x2f8   : > { %v2243_v63 = vrot.slane %v2229_v24, %v5237_v39  ;;  %v2534_v1 = vcombine.high %v2532_v35, %v2532_v35 }
 0x2f9   : > { %v2262_v23 = vcombine.high %v2260_v10, %v2260_v10 }
 0x317   : > { %v3803_v52 = vpop.f32.mrb[10].mxu1 }
 0x318   : > { %v3779_v47 = vpop.f32.mrb[10].mxu0  ;;  %v1928_v20 = vadd.f32 %v3803_v52, %v5209_v40  ;;  %v1922_v2 = vpop.f32.mrb[11].mxu1  ;;  %v2516_v52 = vcombine.high %v5506_v30, %v5506_v30 }
 0x319   : > { %v1848_v59 = vadd.f32 %v3779_v47, %v5209_v40  ;;  %v1842_v44 = vpop.f32.mrb[11].mxu0  ;;  %v1923_v51 = vadd.f32 %v5209_v40, %v1922_v2 }
 0x31a   : > { %v1843_v48 = vadd.f32 %v5209_v40, %v1842_v44  ;;  %v1978_v11 = vmax.f32 %v1928_v20, 0.0  ;;  %v2236_v40 = vrot.slane %v2037_v22, %v5237_v39  ;;  %v2245_v44 = vcombine.high %v2243_v63, %v2243_v63 }
 0x31b   : > { %v1962_v12 = vmax.f32 %v1848_v59, 0.0  ;;  %v1977_v53 = vmax.f32 %v1923_v51, 0.0 }
 0x31c   : > { %v1961_v17 = vmax.f32 %v1843_v48, 0.0  ;;  %v2017_v27 = vmul.f32 %v5220_v54, %v1978_v11  ;;  %v2517_v48 = vcombine.high %v2515_v58, %v2515_v58 }
 0x31d   : > { %v2001_v0 = vmul.f32 %v5220_v54, %v1962_v12  ;;  %v2016_v38 = vmul.f32 %v5220_v54, %v1977_v53 }
 0x31e   : > { %v2000_v14 = vmul.f32 %v5220_v54, %v1961_v17  ;;  %v2056_v4 = vadd.f32 %v5230_v36, %v2017_v27 }
 0x31f   : > { %v2040_v55 = vadd.f32 %v5230_v36, %v2001_v0  ;;  %v2055_v13 = vadd.f32 %v5230_v36, %v2016_v38 }
 0x320   : > { %v2039_v37 = vadd.f32 %v5230_v36, %v2000_v14  ;;  %v2552_v8 = vcombine.high %v2056_v4, %v2056_v4  ;;  %v2559_v25 = vrot.slane %v2056_v4, %v5237_v39  ;;  %v2244_v36 = vcombine.high %v2236_v40, %v2236_v40 }
 0x321   : > { %v2280_v49 = vcombine.high %v2040_v55, %v2040_v55  ;;  %v2287_v26 = vrot.slane %v2040_v55, %v5237_v39  ;;  %v2535_v19 = vcombine.high %v2055_v13, %v2055_v13  ;;  %v2542_v22 = vrot.slane %v2055_v13, %v5237_v39 }
 0x322   : > { %v2263_v33 = vcombine.high %v2039_v37, %v2039_v37  ;;  %v2566_v45 = vrot.slane %v2552_v8, %v5237_v39  ;;  %v2567_v43 = vcombine.high %v2559_v25, %v2559_v25  ;;  %v2817_v54 = vmax.f32 %v2525_v5, %v2559_v25 }
 0x323   : > { %v2294_v46 = vrot.slane %v2280_v49, %v5237_v39  ;;  %v2295_v60 = vcombine.high %v2287_v26, %v2287_v26  ;;  %v2785_v50 = vmax.f32 %v2253_v9, %v2287_v26  ;;  %v2270_v57 = vrot.slane %v2039_v37, %v5237_v39 }
 0x324   : > { %v2568_v41 = vcombine.high %v2566_v45, %v2566_v45  ;;  %v2818_v62 = vmax.f32 %v2533_v32, %v2567_v43  ;;  %v5520_v56 = vmax.f32 %v2532_v35, %v2566_v45  ;;  %v2277_v6 = vrot.slane %v2263_v33, %v5237_v39 }
 0x325   : > { %v2296_v34 = vcombine.high %v2294_v46, %v2294_v46  ;;  %v2786_v31 = vmax.f32 %v2261_v18, %v2295_v60  ;;  %v2787_v15 = vmax.f32 %v2260_v10, %v2294_v46  ;;  %v3669_v16 = vrot.slane %v2785_v50, 9 }
 0x326   : > { %v5524_v61 = vmax.f32 %v2534_v1, %v2568_v41  ;;  %v3701_v47 = vrot.slane %v2817_v54, 9  ;;  %v2278_v20 = vcombine.high %v2270_v57, %v2270_v57  ;;  %v3702_v51 = vrot.slane %v2818_v62, 9 }
 0x327   : > { %v2788_v28 = vmax.f32 %v2262_v23, %v2296_v34  ;;  %v3670_v7 = vrot.slane %v2786_v31, 9  ;;  %v3671_v59 = vrot.slane %v2787_v15, 9  ;;  %v3105_v2 = vmax.f32 %v2785_v50, %v3669_v16 }
 0x328   : > { %v3703_v29 = vrot.slane %v5520_v56, 9  ;;  %v2279_v12 = vcombine.high %v2277_v6, %v2277_v6  ;;  %v3137_v42 = vmax.f32 %v2817_v54, %v3701_v47  ;;  %v2781_v17 = vmax.f32 %v2236_v40, %v2270_v57 }
 0x329   : > { %v3672_v11 = vrot.slane %v2788_v28, 9  ;;  %v3106_v9 = vmax.f32 %v2786_v31, %v3670_v7  ;;  %v3107_v53 = vmax.f32 %v2787_v15, %v3671_v59  ;;  %v2782_v5 = vmax.f32 %v2244_v36, %v2278_v20 }
 0x32a   : > { %v2783_v0 = vmax.f32 %v2243_v63, %v2277_v6  ;;  %v2784_v27 = vmax.f32 %v2245_v44, %v2279_v12  ;;  %v3296_v10 = vrot.slane %v3105_v2, %v5260_v21  ;;  %v3665_v24 = vrot.slane %v2781_v17, 9 }
 0x32b   : > { %v2549_v14 = vrot.slane %v2535_v19, %v5237_v39  ;;  %v2550_v3 = vcombine.high %v2542_v22, %v2542_v22  ;;  %v3666_v55 = vrot.slane %v2782_v5, 9  ;;  %v2813_v35 = vmax.f32 %v5506_v30, %v2542_v22 }
 0x32c   : > { %v3667_v4 = vrot.slane %v2783_v0, 9  ;;  %v3668_v18 = vrot.slane %v2784_v27, 9  ;;  %v3101_v37 = vmax.f32 %v2781_v17, %v3665_v24  ;;  %v3704_v1 = vrot.slane %v5524_v61, 9 }
 0x32d   : > { %v2551_v38 = vcombine.high %v2549_v14, %v2549_v14  ;;  %v2814_v49 = vmax.f32 %v2516_v52, %v2550_v3  ;;  %v2815_v26 = vmax.f32 %v2515_v58, %v2549_v14  ;;  %v3102_v40 = vmax.f32 %v2782_v5, %v3666_v55 }
 0x32e   : > { %v3103_v8 = vmax.f32 %v2783_v0, %v3667_v4  ;;  %v3104_v25 = vmax.f32 %v2784_v27, %v3668_v18  ;;  %v3697_v23 = vrot.slane %v2813_v35, 9  ;;  %v3280_v32 = vrot.slane %v3101_v37, %v5260_v21  ;;  %v3849_v37 = vld [vmem:[%s5658_s3] ss:$0 sm:$0xff] }
 0x32f   : > { %v2816_v63 = vmax.f32 %v2517_v48, %v2551_v38  ;;  %v3698_v33 = vrot.slane %v2814_v49, 9  ;;  %v3699_v46 = vrot.slane %v2815_v26, 9  ;;  %v3284_v60 = vrot.slane %v3102_v40, %v5260_v21 }
 0x330   : > { %v3288_v50 = vrot.slane %v3103_v8, %v5260_v21  ;;  %v3292_v45 = vrot.slane %v3104_v25, %v5260_v21  ;;  %v3133_v30 = vmax.f32 %v2813_v35, %v3697_v23  ;;  %v3108_v34 = vmax.f32 %v2788_v28, %v3672_v11  ;;  %v3850_v8 = vld [vmem:[%s5659_s4] ss:$0 sm:$0xff] }
 0x331   : > { %v3700_v43 = vrot.slane %v2816_v63, 9  ;;  %v3134_v54 = vmax.f32 %v2814_v49, %v3698_v33  ;;  %v3135_v13 = vmax.f32 %v2815_v26, %v3699_v46  ;;  %v3138_v31 = vmax.f32 %v2818_v62, %v3702_v51 }
 0x332   : > { %v3490_v15 = vsel %vm3469_vm13, %v3284_v60, %v3280_v32  ;;  %v3408_v57 = vrot.slane %v3133_v30, %v5260_v21  ;;  %v3300_v7 = vrot.slane %v3106_v9, %v5260_v21  ;;  %v3304_v47 = vrot.slane %v3107_v53, %v5260_v21 }
 0x333   : > { %v3491_v16 = vsel %vm3471_vm14, %v3288_v50, %v3490_v15  ;;  %v3136_v41 = vmax.f32 %v2816_v63, %v3700_v43  ;;  %v3412_v58 = vrot.slane %v3134_v54, %v5260_v21  ;;  %v3416_v6 = vrot.slane %v3135_v13, %v5260_v21 }
 0x334   : > { %v3139_v36 = vmax.f32 %v5520_v56, %v3703_v29  ;;  %v3492_v28 = vsel %vm3473_vm15, %v3292_v45, %v3491_v16  ;;  %v3140_v62 = vmax.f32 %v5524_v61, %v3704_v1  ;;  %v3308_v44 = vrot.slane %v3108_v34, %v5260_v21 }
 0x335   : > { %v3493_v52 = vsel %vm3475_vm0, %v3296_v10, %v3492_v28  ;;  %v3420_v59 = vrot.slane %v3136_v41, %v5260_v21  ;;  %v3518_v20 = vsel %vm3469_vm13, %v3412_v58, %v3408_v57  ;;  %v3424_v2 = vrot.slane %v3137_v42, %v5260_v21  ;;  %v3848_v10 = vld [vmem:[%s5657_s2] ss:$0 sm:$0xff] }
 0x336   : > { %v3494_v19 = vsel %vm3477_vm1, %v3300_v7, %v3493_v52  ;;  %v3519_v56 = vsel %vm3471_vm14, %v3416_v6, %v3518_v20  ;;  %v3428_v22 = vrot.slane %v3138_v31, %v5260_v21  ;;  %v3432_v51 = vrot.slane %v3139_v36, %v5260_v21 }
 0x337   : > { %v3495_v48 = vsel %vm3479_vm2, %v3304_v47, %v3494_v19  ;;  %v3520_v61 = vsel %vm3473_vm15, %v3420_v59, %v3519_v56  ;;  %v3436_v11 = vrot.slane %v3140_v62, %v5260_v21 }
 0x338   : > { %v3496_v29 = vsel %vm3481_vm3, %v3308_v44, %v3495_v48  ;;  %v3521_v12 = vsel %vm3475_vm0, %v3424_v2, %v3520_v61 }
 0x339   : > { %3543 = vst.msk [vmem:[%s5360_s30 + $0x10] sm:$0xff] %vm3540_vm4, %v3496_v29  ;;  %v3522_v9 = vsel %vm3477_vm1, %v3428_v22, %v3521_v12 }
 0x33a   : > { %v3523_v42 = vsel %vm3479_vm2, %v3432_v51, %v3522_v9 }
 0x33b   : > { %v3524_v17 = vsel %vm3481_vm3, %v3436_v11, %v3523_v42 }
 0x33c   : > { %3547 = vst.msk [vmem:[%s5360_s30 + $0x30] sm:$0xff] %vm3540_vm4, %v3524_v17 }
 0x343   : > { %v3806_v53 = vpop.f32.mrb[12].mxu1 }
 0x344   : > { %v3782_v5 = vpop.f32.mrb[12].mxu0  ;;  %v1932_v0 = vpop.f32.mrb[13].mxu1  ;;  %v1938_v24 = vadd.f32 %v3848_v10, %v3806_v53 }
 0x345   : > { %v1852_v27 = vpop.f32.mrb[13].mxu0  ;;  %v1858_v14 = vadd.f32 %v3848_v10, %v3782_v5  ;;  %v1933_v3 = vadd.f32 %v3848_v10, %v1932_v0 }
 0x346   : > { %v1980_v55 = vmax.f32 %v1938_v24, 0.0  ;;  %v1853_v18 = vadd.f32 %v3848_v10, %v1852_v27 }
 0x347   : > { %v1964_v4 = vmax.f32 %v1858_v14, 0.0  ;;  %v1979_v35 = vmax.f32 %v1933_v3, 0.0 }
 0x348   : > { %v2019_v38 = vmul.f32 %v3849_v37, %v1980_v55  ;;  %v1963_v26 = vmax.f32 %v1853_v18, 0.0 }
 0x349   : > { %v2003_v49 = vmul.f32 %v3849_v37, %v1964_v4  ;;  %v2018_v40 = vmul.f32 %v3849_v37, %v1979_v35 }
 0x34a   : > { %v2058_v25 = vadd.f32 %v3850_v8, %v2019_v38  ;;  %v2002_v32 = vmul.f32 %v3849_v37, %v1963_v26 }
 0x34b   : > { %v2042_v23 = vadd.f32 %v3850_v8, %v2003_v49  ;;  %v2057_v33 = vadd.f32 %v3850_v8, %v2018_v40 }
 0x34c   : > { %v2586_v45 = vcombine.high %v2058_v25, %v2058_v25  ;;  %v2593_v54 = vrot.slane %v2058_v25, %v5237_v39  ;;  %v2041_v15 = vadd.f32 %v3850_v8, %v2002_v32 }
 0x34d   : > { %v2314_v31 = vcombine.high %v2042_v23, %v2042_v23  ;;  %v2321_v16 = vrot.slane %v2042_v23, %v5237_v39  ;;  %v2569_v41 = vcombine.high %v2057_v33, %v2057_v33  ;;  %v5582_v62 = vrot.slane %v2057_v33, %v5237_v39 }
 0x34e   : > { %v2600_v7 = vrot.slane %v2586_v45, %v5237_v39  ;;  %v2601_v28 = vcombine.high %v2593_v54, %v2593_v54  ;;  %v2297_v44 = vcombine.high %v2041_v15, %v2041_v15  ;;  %v2304_v2 = vrot.slane %v2041_v15, %v5237_v39 }
 0x34f   : > { %v2328_v20 = vrot.slane %v2314_v31, %v5237_v39  ;;  %v2329_v56 = vcombine.high %v2321_v16, %v2321_v16  ;;  %v5587_v22 = vrot.slane %v2569_v41, %v5237_v39  ;;  %v2584_v33 = vcombine.high %v5582_v62, %v5582_v62 }
 0x350   : > { %v2602_v51 = vcombine.high %v2600_v7, %v2600_v7  ;;  %v2311_v5 = vrot.slane %v2297_v44, %v5237_v39 }
 0x351   : > { %v2330_v24 = vcombine.high %v2328_v20, %v2328_v20 }
 0x360   : > { %v3809_v63 = vpop.f32.mrb[14].mxu1 }
 0x361   : > { %v3785_v46 = vpop.f32.mrb[14].mxu0  ;;  %v1948_v60 = vadd.f32 %v3848_v10, %v3809_v63  ;;  %v1942_v50 = vpop.f32.mrb[15].mxu1  ;;  %v2312_v63 = vcombine.high %v2304_v2, %v2304_v2 }
 0x362   : > { %v1868_v30 = vadd.f32 %v3848_v10, %v3785_v46  ;;  %v1862_v1 = vpop.f32.mrb[15].mxu0  ;;  %v1943_v43 = vadd.f32 %v3848_v10, %v1942_v50  ;;  %v2585_v46 = vcombine.high %v5587_v22, %v5587_v22 }
 0x363   : > { %v1982_v13 = vmax.f32 %v1948_v60, 0.0  ;;  %v1863_v34 = vadd.f32 %v3848_v10, %v1862_v1  ;;  %v2313_v60 = vcombine.high %v2311_v5, %v2311_v5 }
 0x364   : > { %v1966_v57 = vmax.f32 %v1868_v30, 0.0  ;;  %v1981_v36 = vmax.f32 %v1943_v43, 0.0 }
 0x365   : > { %v2021_v58 = vmul.f32 %v3849_v37, %v1982_v13  ;;  %v1965_v6 = vmax.f32 %v1863_v34, 0.0 }
 0x366   : > { %v2005_v47 = vmul.f32 %v3849_v37, %v1966_v57  ;;  %v2020_v11 = vmul.f32 %v3849_v37, %v1981_v36 }
 0x367   : > { %v2060_v52 = vadd.f32 %v3850_v8, %v2021_v58  ;;  %v2004_v59 = vmul.f32 %v3849_v37, %v1965_v6 }
 0x368   : > { %v2044_v19 = vadd.f32 %v3850_v8, %v2005_v47  ;;  %v2059_v37 = vadd.f32 %v3850_v8, %v2020_v11 }
 0x369   : > { %v2620_v48 = vcombine.high %v2060_v52, %v2060_v52  ;;  %v2627_v61 = vrot.slane %v2060_v52, %v5237_v39  ;;  %v2043_v53 = vadd.f32 %v3850_v8, %v2004_v59 }
 0x36a   : > { %v2348_v29 = vcombine.high %v2044_v19, %v2044_v19  ;;  %v2355_v12 = vrot.slane %v2044_v19, %v5237_v39  ;;  %v2603_v45 = vcombine.high %v2059_v37, %v2059_v37  ;;  %v2610_v8 = vrot.slane %v2059_v37, %v5237_v39 }
 0x36b   : > { %v2634_v9 = vrot.slane %v2620_v48, %v5237_v39  ;;  %v2635_v42 = vcombine.high %v2627_v61, %v2627_v61  ;;  %v2825_v17 = vmax.f32 %v2593_v54, %v2627_v61  ;;  %v2331_v26 = vcombine.high %v2043_v53, %v2043_v53 }
 0x36c   : > { %v2362_v0 = vrot.slane %v2348_v29, %v5237_v39  ;;  %v2363_v27 = vcombine.high %v2355_v12, %v2355_v12  ;;  %v2793_v10 = vmax.f32 %v2321_v16, %v2355_v12  ;;  %v2338_v32 = vrot.slane %v2043_v53, %v5237_v39 }
 0x36d   : > { %v2636_v14 = vcombine.high %v2634_v9, %v2634_v9  ;;  %v2826_v3 = vmax.f32 %v2601_v28, %v2635_v42  ;;  %v5594_v55 = vmax.f32 %v2600_v7, %v2634_v9  ;;  %v3709_v49 = vrot.slane %v2825_v17, 9 }
 0x36e   : > { %v2364_v4 = vcombine.high %v2362_v0, %v2362_v0  ;;  %v2794_v18 = vmax.f32 %v2329_v56, %v2363_v27  ;;  %v2795_v35 = vmax.f32 %v2328_v20, %v2362_v0  ;;  %v3677_v25 = vrot.slane %v2793_v10, 9 }
 0x36f   : > { %v5596_v38 = vmax.f32 %v2602_v51, %v2636_v14  ;;  %v3710_v23 = vrot.slane %v2826_v3, 9  ;;  %v3711_v1 = vrot.slane %v5594_v55, 9  ;;  %v5605_v43 = vmax.f32 %v2825_v17, %v3709_v49 }
 0x370   : > { %v2796_v40 = vmax.f32 %v2330_v24, %v2364_v4  ;;  %v3678_v50 = vrot.slane %v2794_v18, 9  ;;  %v3679_v30 = vrot.slane %v2795_v35, 9  ;;  %v2345_v54 = vrot.slane %v2331_v26, %v5237_v39 }
 0x371   : > { %v3113_v13 = vmax.f32 %v2793_v10, %v3677_v25  ;;  %v3712_v34 = vrot.slane %v5596_v38, 9  ;;  %v5609_v31 = vmax.f32 %v2826_v3, %v3710_v23  ;;  %v2346_v15 = vcombine.high %v2338_v32, %v2338_v32 }
 0x372   : > { %v3680_v57 = vrot.slane %v2796_v40, 9  ;;  %v2347_v16 = vcombine.high %v2345_v54, %v2345_v54  ;;  %v2789_v41 = vmax.f32 %v2304_v2, %v2338_v32  ;;  %v2791_v58 = vmax.f32 %v2311_v5, %v2345_v54 }
 0x373   : > { %v3114_v6 = vmax.f32 %v2794_v18, %v3678_v50  ;;  %v2790_v7 = vmax.f32 %v2312_v63, %v2346_v15  ;;  %v2617_v47 = vrot.slane %v2603_v45, %v5237_v39  ;;  %v2618_v36 = vcombine.high %v2610_v8, %v2610_v8 }
 0x374   : > { %v2792_v28 = vmax.f32 %v2313_v60, %v2347_v16  ;;  %v3673_v52 = vrot.slane %v2789_v41, 9  ;;  %v3675_v59 = vrot.slane %v2791_v58, 9  ;;  %v2821_v20 = vmax.f32 %v5582_v62, %v2610_v8 }
 0x375   : > { %v3674_v44 = vrot.slane %v2790_v7, 9  ;;  %v2619_v19 = vcombine.high %v2617_v47, %v2617_v47  ;;  %v2822_v56 = vmax.f32 %v2584_v33, %v2618_v36  ;;  %v2823_v48 = vmax.f32 %v5587_v22, %v2617_v47 }
 0x376   : > { %v3676_v61 = vrot.slane %v2792_v28, 9  ;;  %v3109_v51 = vmax.f32 %v2789_v41, %v3673_v52  ;;  %v3111_v29 = vmax.f32 %v2791_v58, %v3675_v59  ;;  %v3705_v2 = vrot.slane %v2821_v20, 9 }
 0x377   : > { %v3110_v12 = vmax.f32 %v2790_v7, %v3674_v44  ;;  %v2824_v11 = vmax.f32 %v2585_v46, %v2619_v19  ;;  %v3706_v9 = vrot.slane %v2822_v56, 9  ;;  %v3707_v42 = vrot.slane %v2823_v48, 9 }
 0x378   : > { %v3112_v39 = vmax.f32 %v2792_v28, %v3676_v61  ;;  %v3312_v17 = vrot.slane %v3109_v51, %v5260_v21  ;;  %v3320_v53 = vrot.slane %v3111_v29, %v5260_v21  ;;  %v3141_v5 = vmax.f32 %v2821_v20, %v3705_v2 }
 0x379   : > { %v3316_v62 = vrot.slane %v3110_v12, %v5260_v21  ;;  %v3708_v0 = vrot.slane %v2824_v11, 9  ;;  %v3142_v27 = vmax.f32 %v2822_v56, %v3706_v9  ;;  %v3143_v10 = vmax.f32 %v2823_v48, %v3707_v42 }
 0x37a   : > { %v3115_v22 = vmax.f32 %v2795_v35, %v3679_v30  ;;  %v3116_v24 = vmax.f32 %v2796_v40, %v3680_v57  ;;  %v3324_v14 = vrot.slane %v3112_v39, %v5260_v21  ;;  %v3440_v3 = vrot.slane %v3141_v5, %v5260_v21 }
 0x37b   : > { %v3497_v4 = vsel %vm3469_vm13, %v3316_v62, %v3312_v17  ;;  %v3144_v18 = vmax.f32 %v2824_v11, %v3708_v0  ;;  %v3444_v37 = vrot.slane %v3142_v27, %v5260_v21  ;;  %v3448_v49 = vrot.slane %v3143_v10, %v5260_v21 }
 0x37c   : > { %v3328_v26 = vrot.slane %v3113_v13, %v5260_v21  ;;  %v3147_v25 = vmax.f32 %v5594_v55, %v3711_v1  ;;  %v3148_v23 = vmax.f32 %v5596_v38, %v3712_v34  ;;  %v3498_v35 = vsel %vm3471_vm14, %v3320_v53, %v3497_v4 }
 0x37d   : > { %v3332_v40 = vrot.slane %v3114_v6, %v5260_v21  ;;  %v3499_v32 = vsel %vm3473_vm15, %v3324_v14, %v3498_v35  ;;  %v3452_v63 = vrot.slane %v3144_v18, %v5260_v21  ;;  %v3525_v33 = vsel %vm3469_vm13, %v3444_v37, %v3440_v3 }
 0x37e   : > { %v3336_v46 = vrot.slane %v3115_v22, %v5260_v21  ;;  %v3456_v60 = vrot.slane %v5605_v43, %v5260_v21  ;;  %v3500_v55 = vsel %vm3475_vm0, %v3328_v26, %v3499_v32  ;;  %v3526_v38 = vsel %vm3471_vm14, %v3448_v49, %v3525_v33 }
 0x37f   : > { %v3340_v50 = vrot.slane %v3116_v24, %v5260_v21  ;;  %v3460_v45 = vrot.slane %v5609_v31, %v5260_v21  ;;  %v3501_v8 = vsel %vm3477_vm1, %v3332_v40, %v3500_v55  ;;  %v3527_v30 = vsel %vm3473_vm15, %v3452_v63, %v3526_v38 }
 0x380   : > { %v3464_v1 = vrot.slane %v3147_v25, %v5260_v21  ;;  %v3502_v54 = vsel %vm3479_vm2, %v3336_v46, %v3501_v8  ;;  %v3528_v43 = vsel %vm3475_vm0, %v3456_v60, %v3527_v30  ;;  %v3468_v13 = vrot.slane %v3148_v23, %v5260_v21 }
 0x381   : > { %v3503_v34 = vsel %vm3481_vm3, %v3340_v50, %v3502_v54  ;;  %v3529_v15 = vsel %vm3477_vm1, %v3460_v45, %v3528_v43 }
 0x382   : > { %3544 = vst.msk [vmem:[%s5360_s30 + $0x18] sm:$0xff] %vm3540_vm4, %v3503_v34  ;;  %v3530_v31 = vsel %vm3479_vm2, %v3464_v1, %v3529_v15 }
 0x383   : > { %v3531_v57 = vsel %vm3481_vm3, %v3468_v13, %v3530_v31 }
 0x384   : > { %3548 = vst.msk [vmem:[%s5360_s30 + $0x38] sm:$0xff] %vm3540_vm4, %v3531_v57 }
 0x385 PF: > { %s15_s18 = sadd.s32 1, %s3857_s18  }
 0x386   : > { %p12_p5 = scmp.ge.s32.totalorder %s15_s18, 4  }
 0x388   :  { %14 = sbr.rel (!%p12_p5) target bundleno = 1 (0x1), region = 70 }

</bundles_post_ra>
